<compile_context>
chip_gen: v6e
topology: v6e:2x2x1
jax: 0.10.0
libtpu: 0.0.40
codegen_flags: <defaults>
</compile_context>

<pallas_src>
import functools

import jax
import jax.numpy as jnp
from jax import lax
from jax.experimental import pallas as pl
from jax.experimental.pallas import tpu as pltpu

INPUT_DIM = 128      # embedding dim (hard-coded in the PyTorch module)
HIDDEN_DIM = 64      # 2*H == 128 == INPUT_DIM, required by the ELMo mix
VOCAB = 64           # len(vocab): small synthetic vocabulary
V_EMB_PAD = 128      # embedding table rows padded to one full lane group
V_PAD = 128          # final layer padded to a lane-dense 128-wide output
BATCH = 2
BATCH_PAD = 8        # per-timestep row group padded to one sublane group
SEQ = 8

assert INPUT_DIM == 2 * HIDDEN_DIM

# PyTorch LSTM gate-row order is [i, f, g, o]; the kernel wants the three
# sigmoid gates contiguous, so the combined column order is [i, f, o, g].
_GATE_ORDER = (0, 1, 3, 2)


# ---------------------------------------------------------------------------
# Fused kernel (no grid, everything resident in VMEM).
#   tok_ref   : (T*BP, 1) int32, rows time-major (t, b), pad rows = token 0
#   emb_ref   : (128, D)  f32 frozen embedding table, rows >= V zeroed
#   w_ih*_ref : (Din, 8H) bf16, columns [i_f|i_b|f_f|f_b|o_f|o_b|g_f|g_b]
#   w_hh*_ref : (2H, 8H)  bf16, block-diagonal (fwd rows->fwd cols, bwd->bwd)
#   b*_ref    : (1, 8H)   f32, b_ih + b_hh, same column order
#   w_fin_ref : (2H, Vp)  bf16, final Linear * 1/3, zero-padded beyond V
#   b_fin_ref : (1, Vp)   f32
#   out_ref   : (T*BP, Vp) f32 logits, rows time-major (t, b)
#   gx_ref    : (T, BP, 8H) f32 scratch — per-step selected gate inputs
#   hs_ref    : (T, BP, 2H) f32 scratch — per-step hidden states
#   acc_ref   : (T*BP, 2H)  f32 scratch — ELMo sum accumulator
# ---------------------------------------------------------------------------
def _elmo_fused_kernel(tok_ref, emb_ref,
                       w_ih1_ref, w_hh1_ref, b1_ref,
                       w_ih2_ref, w_hh2_ref, b2_ref,
                       w_fin_ref, b_fin_ref,
                       out_ref,
                       gx_ref, hs_ref, acc_ref,
                       *, seq_len, batch_pad):
    T, BP = seq_len, batch_pad
    N = T * BP
    VE = emb_ref.shape[0]            # 128 (lane-dense padded vocab)
    H2 = w_hh1_ref.shape[0]          # 2*H
    H = H2 // 2
    G = 4 * H2                       # 8*H gate columns (both directions)

    # --- embedding lookup as a lane-dense one-hot MXU matmul ----------------
    tok = tok_ref[...]                                           # (N, 1)
    vocab_iota = lax.broadcasted_iota(jnp.int32, (N, VE), 1)
    onehot = jnp.where(vocab_iota == tok,
                       jnp.float32(1.0), jnp.float32(0.0))       # (N, 128)
    emb = jnp.dot(onehot, emb_ref[...],
                  preferred_element_type=jnp.float32)            # (N, D)
    acc_ref[...] = emb            # ELMo sum accumulator (1/3 folded into w_fin)

    # --- masks hoisted out of both layers / all timesteps --------------------
    fwd_cols = (lax.broadcasted_iota(jnp.int32, (BP, G), 1) % H2) < H
    fwd_half = lax.broadcasted_iota(jnp.int32, (BP, H2), 1) < H

    def bilstm(x, w_ih_ref, w_hh_ref, b_ref):
        """x: (N, Din) time-major.  Returns time-aligned (N, 2H) [fwd | bwd]."""
        # Hoisted input projection for all timesteps (bf16 weights, f32 acc);
        # bias added once here.
        xw = jnp.dot(x.astype(jnp.bfloat16), w_ih_ref[...],
                     preferred_element_type=jnp.float32) + b_ref[...]   # (N, G)
        # fwd(t)/bwd(T-1-t) gate-input selection hoisted OFF the recurrence
        # critical path; 8-row slices are tile-aligned after sublane padding.
        for t in range(T):
            gx_ref[t] = jnp.where(fwd_cols,
                                  xw[t * BP:(t + 1) * BP, :],
                                  xw[(T - 1 - t) * BP:(T - t) * BP, :])

        h = jnp.zeros((BP, H2), jnp.float32)
        c = jnp.zeros((BP, H2), jnp.float32)
        for t in range(T):            # fully unrolled (T static and small);
            # per step: one MXU dot (bf16 weights loaded here, not hoisted),
            # EUP sigmoid/tanh, VPU state update.
            gates = gx_ref[t] + jnp.dot(h.astype(jnp.bfloat16), w_hh_ref[...],
                                        preferred_element_type=jnp.float32)
            sg = jax.nn.sigmoid(gates[:, :3 * H2])        # i, f, o (both dirs)
            i_g = sg[:, 0 * H2:1 * H2]
            f_g = sg[:, 1 * H2:2 * H2]
            o_g = sg[:, 2 * H2:3 * H2]
            g_g = jnp.tanh(gates[:, 3 * H2:4 * H2])
            c = f_g * c + i_g * g_g
            h = o_g * jnp.tanh(c)
            hs_ref[t] = h             # park per-step state in VMEM scratch

        # time-aligned output: fwd half from step t, bwd half from step T-1-t.
        # Pure tile stacking + per-tile VPU selects (no big repack concats).
        return jnp.concatenate(
            [jnp.where(fwd_half, hs_ref[t], hs_ref[T - 1 - t])
             for t in range(T)], axis=0)

    out1 = bilstm(emb, w_ih1_ref, w_hh1_ref, b1_ref)       # (N, 2H)
    acc_ref[...] = acc_ref[...] + out1
    out2 = bilstm(out1, w_ih2_ref, w_hh2_ref, b2_ref)      # (N, 2H)

    elmo_sum = acc_ref[...] + out2            # emb + l1 + l2 (D == 2H)
    out_ref[...] = (jnp.dot(elmo_sum.astype(jnp.bfloat16), w_fin_ref[...],
                            preferred_element_type=jnp.float32)
                    + b_fin_ref[...])


# ---------------------------------------------------------------------------
# Wrapper: one kernel launch; only token layout + final slice live in XLA.
# ---------------------------------------------------------------------------
@jax.jit
def elmo_forward(params, tokens):
    B, T = tokens.shape
    BP = BATCH_PAD
    # time-major tokens padded to 8 sublane rows per step; pad rows = token 0
    tok_tm = jnp.transpose(tokens).astype(jnp.int32)                 # (T, B)
    tok_pad = jnp.zeros((T, BP), jnp.int32).at[:, :B].set(tok_tm)
    tok_flat = tok_pad.reshape(T * BP, 1)

    kernel = functools.partial(_elmo_fused_kernel, seq_len=T, batch_pad=BP)
    out_pad = pl.pallas_call(
        kernel,
        out_shape=jax.ShapeDtypeStruct((T * BP, V_PAD), jnp.float32),
        scratch_shapes=[
            pltpu.VMEM((T, BP, 8 * HIDDEN_DIM), jnp.float32),   # gx
            pltpu.VMEM((T, BP, 2 * HIDDEN_DIM), jnp.float32),   # hs
            pltpu.VMEM((T * BP, 2 * HIDDEN_DIM), jnp.float32),  # acc
        ],
    )(tok_flat, params["embedding_pad"],
      params["w_ih1"], params["w_hh1"], params["b1"],
      params["w_ih2"], params["w_hh2"], params["b2"],
      params["w_fin_pad"], params["b_fin_pad"])

    out = jnp.transpose(out_pad.reshape(T, BP, V_PAD), (1, 0, 2))  # (BP, T, Vp)
    return out[:B, :, :VOCAB]


# ---------------------------------------------------------------------------
# Parameter init (deterministic, synthetic — no checkpoint load).
# Weights are pre-rounded to bf16-representable values so the f32 reference
# and the bf16 kernel share identical weights (only activation rounding left).
# ---------------------------------------------------------------------------
def _round_bf16(x):
    return x.astype(jnp.bfloat16).astype(jnp.float32)


def _lstm_dir_params(key, in_dim, hidden):
    ks = jax.random.split(key, 4)
    bound = 1.0 / (hidden ** 0.5)

    def u(k, shape):
        return jax.random.uniform(k, shape, jnp.float32, -bound, bound)

    return {
        "w_ih": _round_bf16(u(ks[0], (4 * hidden, in_dim))),   # (4H, in)
        "w_hh": _round_bf16(u(ks[1], (4 * hidden, hidden))),   # (4H, H)
        "b": u(ks[2], (4 * hidden,)) + u(ks[3], (4 * hidden,)),  # b_ih + b_hh
    }


def _combine_bilstm_params(fwd, bwd, hidden):
    """Pack both directions into the fused kernel layout (bf16 weights)."""
    H = hidden
    zeros = jnp.zeros((H, H), jnp.float32)
    ih_cols, hh_cols, b_parts = [], [], []
    for g in _GATE_ORDER:
        sl = slice(g * H, (g + 1) * H)
        ih_cols += [fwd["w_ih"][sl].T, bwd["w_ih"][sl].T]
        hh_cols += [jnp.concatenate([fwd["w_hh"][sl].T, zeros], axis=0),
                    jnp.concatenate([zeros, bwd["w_hh"][sl].T], axis=0)]
        b_parts += [fwd["b"][sl], bwd["b"][sl]]
    return (jnp.concatenate(ih_cols, axis=1).astype(jnp.bfloat16),   # (in, 8H)
            jnp.concatenate(hh_cols, axis=1).astype(jnp.bfloat16),   # (2H, 8H)
            jnp.concatenate(b_parts).reshape(1, 8 * H))              # (1, 8H) f32


def init_params(key):
    H, D, V = HIDDEN_DIM, INPUT_DIM, VOCAB
    k_emb, k1f, k1b, k2f, k2b, kw, kb = jax.random.split(key, 7)

    # frozen "pretrained" embedding table, padding_idx=0 row zeroed
    emb_table = jax.random.normal(k_emb, (V, D), jnp.float32) * 0.1
    emb_table = emb_table.at[0].set(0.0)
    emb_pad = jnp.zeros((V_EMB_PAD, D), jnp.float32).at[:V].set(emb_table)

    l1_f = _lstm_dir_params(k1f, D, H)
    l1_b = _lstm_dir_params(k1b, D, H)
    l2_f = _lstm_dir_params(k2f, 2 * H, H)
    l2_b = _lstm_dir_params(k2b, 2 * H, H)

    w_ih1, w_hh1, b1 = _combine_bilstm_params(l1_f, l1_b, H)
    w_ih2, w_hh2, b2 = _combine_bilstm_params(l2_f, l2_b, H)

    fb = 1.0 / ((2 * H) ** 0.5)
    w_fin = _round_bf16(jax.random.uniform(kw, (V, 2 * H), jnp.float32, -fb, fb))
    b_fin = jax.random.uniform(kb, (V,), jnp.float32, -fb, fb)
    # 1/3 ELMo mix folded into the final weight (bias NOT scaled).
    w_fin_pad = (jnp.zeros((2 * H, V_PAD), jnp.float32)
                 .at[:, :V].set(w_fin.T / 3.0)).astype(jnp.bfloat16)
    b_fin_pad = jnp.zeros((1, V_PAD), jnp.float32).at[0, :V].set(b_fin)

    params = {
        "embedding_pad": emb_pad,
        "w_ih1": w_ih1, "w_hh1": w_hh1, "b1": b1,
        "w_ih2": w_ih2, "w_hh2": w_hh2, "b2": b2,
        "w_fin_pad": w_fin_pad, "b_fin_pad": b_fin_pad,
    }
    # raw per-direction weights kept only for the pure-JAX reference check
    ref_params = {
        "embedding": emb_table,
        "l1": {"f": l1_f, "b": l1_b},
        "l2": {"f": l2_f, "b": l2_b},
        "w_fin": w_fin, "b_fin": b_fin,
    }
    return params, ref_params


# ---------------------------------------------------------------------------
# Pure-JAX reference (matches the PyTorch forward semantics).
# ---------------------------------------------------------------------------
def _lstm_dir_ref(x_tbd, p, reverse):
    T, B, _ = x_tbd.shape
    H = p["w_hh"].shape[1]
    if reverse:
        x_tbd = x_tbd[::-1]
    h = jnp.zeros((B, H), jnp.float32)
    c = jnp.zeros((B, H), jnp.float32)
    hp = lax.Precision.HIGHEST
    outs = []
    for t in range(T):
        gates = (jnp.dot(x_tbd[t], p["w_ih"].T, precision=hp)
                 + jnp.dot(h, p["w_hh"].T, precision=hp) + p["b"])
        i = jax.nn.sigmoid(gates[:, 0 * H:1 * H])
        f = jax.nn.sigmoid(gates[:, 1 * H:2 * H])
        g = jnp.tanh(gates[:, 2 * H:3 * H])
        o = jax.nn.sigmoid(gates[:, 3 * H:4 * H])
        c = f * c + i * g
        h = o * jnp.tanh(c)
        outs.append(h)
    out = jnp.stack(outs)                      # (T, B, H)
    if reverse:
        out = out[::-1]
    return out


@jax.jit
def reference_forward(ref_params, tokens):
    emb = jnp.take(ref_params["embedding"], tokens, axis=0)     # (B, T, D)
    x = jnp.transpose(emb, (1, 0, 2))                           # (T, B, D)

    def bilstm(xs, p):
        return jnp.concatenate([_lstm_dir_ref(xs, p["f"], False),
                                _lstm_dir_ref(xs, p["b"], True)], axis=-1)

    o1 = bilstm(x, ref_params["l1"])
    o2 = bilstm(o1, ref_params["l2"])
    elmo = (x + o1 + o2) / 3.0
    logits = jnp.dot(elmo, ref_params["w_fin"].T,
                     precision=lax.Precision.HIGHEST) + ref_params["b_fin"]
    return jnp.transpose(logits, (1, 0, 2))                     # (B, T, V)


if __name__ == "__main__":
    key = jax.random.PRNGKey(0)
    pkey, tkey = jax.random.split(key)
    params, ref_params = init_params(pkey)
    tokens = jax.random.randint(tkey, (BATCH, SEQ), 0, VOCAB, dtype=jnp.int32)

    out = elmo_forward(params, tokens)
    jax.block_until_ready(out)
    assert out.shape == (BATCH, SEQ, VOCAB)
    assert out.dtype == jnp.float32

    ref = reference_forward(ref_params, tokens)
    err = float(jnp.max(jnp.abs(out - ref)))
    assert err < 2e-2, f"Pallas kernel mismatch vs reference (max abs err {err})"

    print("KERNEL_OK")
</pallas_src>

<mosaic_0001>
module attributes {stable_mosaic.version = 11 : i64} {
  func.func @_elmo_fused_kernel(%arg0: memref<64x1xi32, #tpu.memory_space<vmem>>, %arg1: memref<128x128xf32, #tpu.memory_space<vmem>>, %arg2: memref<128x512xbf16, #tpu.memory_space<vmem>>, %arg3: memref<128x512xbf16, #tpu.memory_space<vmem>>, %arg4: memref<1x512xf32, #tpu.memory_space<vmem>>, %arg5: memref<128x512xbf16, #tpu.memory_space<vmem>>, %arg6: memref<128x512xbf16, #tpu.memory_space<vmem>>, %arg7: memref<1x512xf32, #tpu.memory_space<vmem>>, %arg8: memref<128x128xbf16, #tpu.memory_space<vmem>>, %arg9: memref<1x128xf32, #tpu.memory_space<vmem>>, %arg10: memref<64x128xf32, #tpu.memory_space<vmem>>, %arg11: memref<8x8x512xf32, #tpu.memory_space<vmem>>, %arg12: memref<8x8x128xf32, #tpu.memory_space<vmem>>, %arg13: memref<64x128xf32, #tpu.memory_space<vmem>>) attributes {dimension_semantics = [], scalar_prefetch = 0 : i64, scratch_operands = 3 : i64, tpu.core_type = #tpu.core_type<tc>} {
    %c0 = arith.constant 0 : index
    %c0_0 = arith.constant 0 : index
    %0 = vector.load %arg0[%c0, %c0_0] : memref<64x1xi32, #tpu.memory_space<vmem>>, vector<64x1xi32>
    %1 = tpu.iota {dimensions = array<i32: 1>} : vector<64x128xi32>
    %2 = vector.broadcast %0 : vector<64x1xi32> to vector<64x128xi32>
    %3 = arith.cmpi eq, %1, %2 : vector<64x128xi32>
    %cst = arith.constant 1.000000e+00 : f32
    %cst_1 = arith.constant 0.000000e+00 : f32
    %4 = vector.broadcast %cst : f32 to vector<64x128xf32>
    %5 = vector.broadcast %cst_1 : f32 to vector<64x128xf32>
    %6 = arith.select %3, %4, %5 : vector<64x128xi1>, vector<64x128xf32>
    %c0_2 = arith.constant 0 : index
    %c0_3 = arith.constant 0 : index
    %7 = vector.load %arg1[%c0_2, %c0_3] : memref<128x128xf32, #tpu.memory_space<vmem>>, vector<128x128xf32>
    %cst_4 = arith.constant dense<0.000000e+00> : vector<64x128xf32>
    %8 = tpu.matmul %6, %7, %cst_4 {dimension_numbers = #tpu.dot_dimension_numbers<[1], [0], [0], [1], [0, 0, 1, 1], [], []>} : vector<64x128xf32>, vector<128x128xf32>, vector<64x128xf32> -> vector<64x128xf32>
    %c0_5 = arith.constant 0 : index
    %c0_6 = arith.constant 0 : index
    %9 = vector.load %arg13[%c0_5, %c0_6] : memref<64x128xf32, #tpu.memory_space<vmem>>, vector<64x128xf32>
    tpu.vector_store %arg13[%c0_5, %c0_6], %8 {strides = array<i32>} : memref<64x128xf32, #tpu.memory_space<vmem>>, vector<64x128xf32>,
    %10 = tpu.iota {dimensions = array<i32: 1>} : vector<8x512xi32>
    %c128_i32 = arith.constant 128 : i32
    %c0_i32 = arith.constant 0 : i32
    %11 = arith.cmpi eq, %c128_i32, %c0_i32 : i32
    %c1_i32 = arith.constant 1 : i32
    %12 = arith.select %11, %c1_i32, %c128_i32 : i32
    %13 = vector.broadcast %12 : i32 to vector<8x512xi32>
    %14 = arith.remsi %10, %13 : vector<8x512xi32>
    %c0_i32_7 = arith.constant 0 : i32
    %15 = vector.broadcast %c0_i32_7 : i32 to vector<8x512xi32>
    %16 = arith.cmpi ne, %14, %15 : vector<8x512xi32>
    %c0_i32_8 = arith.constant 0 : i32
    %17 = vector.broadcast %c0_i32_8 : i32 to vector<8x512xi32>
    %18 = arith.cmpi slt, %14, %17 : vector<8x512xi32>
    %c0_i32_9 = arith.constant 0 : i32
    %19 = arith.cmpi slt, %12, %c0_i32_9 : i32
    %20 = vector.broadcast %19 : i1 to vector<8x512xi1>
    %21 = vector.broadcast %20 : vector<8x512xi1> to vector<8x512xi1>
    %22 = arith.xori %18, %21 : vector<8x512xi1>
    %23 = arith.andi %22, %16 : vector<8x512xi1>
    %24 = vector.broadcast %12 : i32 to vector<8x512xi32>
    %25 = arith.addi %14, %24 : vector<8x512xi32>
    %26 = arith.select %23, %25, %14 : vector<8x512xi1>, vector<8x512xi32>
    %c64_i32 = arith.constant 64 : i32
    %27 = vector.broadcast %c64_i32 : i32 to vector<8x512xi32>
    %28 = arith.cmpi slt, %26, %27 : vector<8x512xi32>
    %29 = tpu.iota {dimensions = array<i32: 1>} : vector<8x128xi32>
    %c64_i32_10 = arith.constant 64 : i32
    %30 = vector.broadcast %c64_i32_10 : i32 to vector<8x128xi32>
    %31 = arith.cmpi slt, %29, %30 : vector<8x128xi32>
    %32 = arith.truncf %8 : vector<64x128xf32> to vector<64x128xbf16>
    %c0_11 = arith.constant 0 : index
    %c0_12 = arith.constant 0 : index
    %33 = vector.load %arg2[%c0_11, %c0_12] : memref<128x512xbf16, #tpu.memory_space<vmem>>, vector<128x512xbf16>
    %cst_13 = arith.constant dense<0.000000e+00> : vector<64x512xf32>
    %34 = tpu.matmul %32, %33, %cst_13 {dimension_numbers = #tpu.dot_dimension_numbers<[1], [0], [0], [1], [0, 0, 1, 1], [], []>} : vector<64x128xbf16>, vector<128x512xbf16>, vector<64x512xf32> -> vector<64x512xf32>
    %c0_14 = arith.constant 0 : index
    %c0_15 = arith.constant 0 : index
    %35 = vector.load %arg4[%c0_14, %c0_15] : memref<1x512xf32, #tpu.memory_space<vmem>>, vector<1x512xf32>
    %36 = vector.broadcast %35 : vector<1x512xf32> to vector<64x512xf32>
    %37 = arith.addf %34, %36 : vector<64x512xf32>
    %38 = vector.extract_strided_slice %37 {offsets = [0, 0], sizes = [8, 512], strides = [1, 1]} : vector<64x512xf32> to vector<8x512xf32>
    %39 = vector.extract_strided_slice %37 {offsets = [56, 0], sizes = [8, 512], strides = [1, 1]} : vector<64x512xf32> to vector<8x512xf32>
    %40 = arith.select %28, %38, %39 : vector<8x512xi1>, vector<8x512xf32>
    %c0_16 = arith.constant 0 : index
    %c0_17 = arith.constant 0 : index
    %c0_18 = arith.constant 0 : index
    %41 = vector.load %arg11[%c0_16, %c0_17, %c0_18] : memref<8x8x512xf32, #tpu.memory_space<vmem>>, vector<1x8x512xf32>
    %42 = vector.shape_cast %41 : vector<1x8x512xf32> to vector<8x512xf32>
    %43 = vector.shape_cast %40 : vector<8x512xf32> to vector<1x8x512xf32>
    tpu.vector_store %arg11[%c0_16, %c0_17, %c0_18], %43 {strides = array<i32>} : memref<8x8x512xf32, #tpu.memory_space<vmem>>, vector<1x8x512xf32>,
    %44 = vector.extract_strided_slice %37 {offsets = [8, 0], sizes = [8, 512], strides = [1, 1]} : vector<64x512xf32> to vector<8x512xf32>
    %45 = vector.extract_strided_slice %37 {offsets = [48, 0], sizes = [8, 512], strides = [1, 1]} : vector<64x512xf32> to vector<8x512xf32>
    %46 = arith.select %28, %44, %45 : vector<8x512xi1>, vector<8x512xf32>
    %c1 = arith.constant 1 : index
    %c0_19 = arith.constant 0 : index
    %c0_20 = arith.constant 0 : index
    %47 = vector.load %arg11[%c1, %c0_19, %c0_20] : memref<8x8x512xf32, #tpu.memory_space<vmem>>, vector<1x8x512xf32>
    %48 = vector.shape_cast %47 : vector<1x8x512xf32> to vector<8x512xf32>
    %49 = vector.shape_cast %46 : vector<8x512xf32> to vector<1x8x512xf32>
    tpu.vector_store %arg11[%c1, %c0_19, %c0_20], %49 {strides = array<i32>} : memref<8x8x512xf32, #tpu.memory_space<vmem>>, vector<1x8x512xf32>,
    %50 = vector.extract_strided_slice %37 {offsets = [16, 0], sizes = [8, 512], strides = [1, 1]} : vector<64x512xf32> to vector<8x512xf32>
    %51 = vector.extract_strided_slice %37 {offsets = [40, 0], sizes = [8, 512], strides = [1, 1]} : vector<64x512xf32> to vector<8x512xf32>
    %52 = arith.select %28, %50, %51 : vector<8x512xi1>, vector<8x512xf32>
    %c2 = arith.constant 2 : index
    %c0_21 = arith.constant 0 : index
    %c0_22 = arith.constant 0 : index
    %53 = vector.load %arg11[%c2, %c0_21, %c0_22] : memref<8x8x512xf32, #tpu.memory_space<vmem>>, vector<1x8x512xf32>
    %54 = vector.shape_cast %53 : vector<1x8x512xf32> to vector<8x512xf32>
    %55 = vector.shape_cast %52 : vector<8x512xf32> to vector<1x8x512xf32>
    tpu.vector_store %arg11[%c2, %c0_21, %c0_22], %55 {strides = array<i32>} : memref<8x8x512xf32, #tpu.memory_space<vmem>>, vector<1x8x512xf32>,
    %56 = vector.extract_strided_slice %37 {offsets = [24, 0], sizes = [8, 512], strides = [1, 1]} : vector<64x512xf32> to vector<8x512xf32>
    %57 = vector.extract_strided_slice %37 {offsets = [32, 0], sizes = [8, 512], strides = [1, 1]} : vector<64x512xf32> to vector<8x512xf32>
    %58 = arith.select %28, %56, %57 : vector<8x512xi1>, vector<8x512xf32>
    %c3 = arith.constant 3 : index
    %c0_23 = arith.constant 0 : index
    %c0_24 = arith.constant 0 : index
    %59 = vector.load %arg11[%c3, %c0_23, %c0_24] : memref<8x8x512xf32, #tpu.memory_space<vmem>>, vector<1x8x512xf32>
    %60 = vector.shape_cast %59 : vector<1x8x512xf32> to vector<8x512xf32>
    %61 = vector.shape_cast %58 : vector<8x512xf32> to vector<1x8x512xf32>
    tpu.vector_store %arg11[%c3, %c0_23, %c0_24], %61 {strides = array<i32>} : memref<8x8x512xf32, #tpu.memory_space<vmem>>, vector<1x8x512xf32>,
    %62 = vector.extract_strided_slice %37 {offsets = [32, 0], sizes = [8, 512], strides = [1, 1]} : vector<64x512xf32> to vector<8x512xf32>
    %63 = vector.extract_strided_slice %37 {offsets = [24, 0], sizes = [8, 512], strides = [1, 1]} : vector<64x512xf32> to vector<8x512xf32>
    %64 = arith.select %28, %62, %63 : vector<8x512xi1>, vector<8x512xf32>
    %c4 = arith.constant 4 : index
    %c0_25 = arith.constant 0 : index
    %c0_26 = arith.constant 0 : index
    %65 = vector.load %arg11[%c4, %c0_25, %c0_26] : memref<8x8x512xf32, #tpu.memory_space<vmem>>, vector<1x8x512xf32>
    %66 = vector.shape_cast %65 : vector<1x8x512xf32> to vector<8x512xf32>
    %67 = vector.shape_cast %64 : vector<8x512xf32> to vector<1x8x512xf32>
    tpu.vector_store %arg11[%c4, %c0_25, %c0_26], %67 {strides = array<i32>} : memref<8x8x512xf32, #tpu.memory_space<vmem>>, vector<1x8x512xf32>,
    %68 = vector.extract_strided_slice %37 {offsets = [40, 0], sizes = [8, 512], strides = [1, 1]} : vector<64x512xf32> to vector<8x512xf32>
    %69 = vector.extract_strided_slice %37 {offsets = [16, 0], sizes = [8, 512], strides = [1, 1]} : vector<64x512xf32> to vector<8x512xf32>
    %70 = arith.select %28, %68, %69 : vector<8x512xi1>, vector<8x512xf32>
    %c5 = arith.constant 5 : index
    %c0_27 = arith.constant 0 : index
    %c0_28 = arith.constant 0 : index
    %71 = vector.load %arg11[%c5, %c0_27, %c0_28] : memref<8x8x512xf32, #tpu.memory_space<vmem>>, vector<1x8x512xf32>
    %72 = vector.shape_cast %71 : vector<1x8x512xf32> to vector<8x512xf32>
    %73 = vector.shape_cast %70 : vector<8x512xf32> to vector<1x8x512xf32>
    tpu.vector_store %arg11[%c5, %c0_27, %c0_28], %73 {strides = array<i32>} : memref<8x8x512xf32, #tpu.memory_space<vmem>>, vector<1x8x512xf32>,
    %74 = vector.extract_strided_slice %37 {offsets = [48, 0], sizes = [8, 512], strides = [1, 1]} : vector<64x512xf32> to vector<8x512xf32>
    %75 = vector.extract_strided_slice %37 {offsets = [8, 0], sizes = [8, 512], strides = [1, 1]} : vector<64x512xf32> to vector<8x512xf32>
    %76 = arith.select %28, %74, %75 : vector<8x512xi1>, vector<8x512xf32>
    %c6 = arith.constant 6 : index
    %c0_29 = arith.constant 0 : index
    %c0_30 = arith.constant 0 : index
    %77 = vector.load %arg11[%c6, %c0_29, %c0_30] : memref<8x8x512xf32, #tpu.memory_space<vmem>>, vector<1x8x512xf32>
    %78 = vector.shape_cast %77 : vector<1x8x512xf32> to vector<8x512xf32>
    %79 = vector.shape_cast %76 : vector<8x512xf32> to vector<1x8x512xf32>
    tpu.vector_store %arg11[%c6, %c0_29, %c0_30], %79 {strides = array<i32>} : memref<8x8x512xf32, #tpu.memory_space<vmem>>, vector<1x8x512xf32>,
    %80 = vector.extract_strided_slice %37 {offsets = [56, 0], sizes = [8, 512], strides = [1, 1]} : vector<64x512xf32> to vector<8x512xf32>
    %81 = vector.extract_strided_slice %37 {offsets = [0, 0], sizes = [8, 512], strides = [1, 1]} : vector<64x512xf32> to vector<8x512xf32>
    %82 = arith.select %28, %80, %81 : vector<8x512xi1>, vector<8x512xf32>
    %c7 = arith.constant 7 : index
    %c0_31 = arith.constant 0 : index
    %c0_32 = arith.constant 0 : index
    %83 = vector.load %arg11[%c7, %c0_31, %c0_32] : memref<8x8x512xf32, #tpu.memory_space<vmem>>, vector<1x8x512xf32>
    %84 = vector.shape_cast %83 : vector<1x8x512xf32> to vector<8x512xf32>
    %85 = vector.shape_cast %82 : vector<8x512xf32> to vector<1x8x512xf32>
    tpu.vector_store %arg11[%c7, %c0_31, %c0_32], %85 {strides = array<i32>} : memref<8x8x512xf32, #tpu.memory_space<vmem>>, vector<1x8x512xf32>,
    %cst_33 = arith.constant 0.000000e+00 : f32
    %86 = vector.broadcast %cst_33 : f32 to vector<8x128xf32>
    %cst_34 = arith.constant 0.000000e+00 : f32
    %87 = vector.broadcast %cst_34 : f32 to vector<8x128xf32>
    %c0_35 = arith.constant 0 : index
    %c0_36 = arith.constant 0 : index
    %c0_37 = arith.constant 0 : index
    %88 = vector.load %arg11[%c0_35, %c0_36, %c0_37] : memref<8x8x512xf32, #tpu.memory_space<vmem>>, vector<1x8x512xf32>
    %89 = vector.shape_cast %88 : vector<1x8x512xf32> to vector<8x512xf32>
    %90 = arith.truncf %86 : vector<8x128xf32> to vector<8x128xbf16>
    %c0_38 = arith.constant 0 : index
    %c0_39 = arith.constant 0 : index
    %91 = vector.load %arg3[%c0_38, %c0_39] : memref<128x512xbf16, #tpu.memory_space<vmem>>, vector<128x512xbf16>
    %cst_40 = arith.constant dense<0.000000e+00> : vector<8x512xf32>
    %92 = tpu.matmul %90, %91, %cst_40 {dimension_numbers = #tpu.dot_dimension_numbers<[1], [0], [0], [1], [0, 0, 1, 1], [], []>} : vector<8x128xbf16>, vector<128x512xbf16>, vector<8x512xf32> -> vector<8x512xf32>
    %93 = arith.addf %89, %92 : vector<8x512xf32>
    %94 = vector.extract_strided_slice %93 {offsets = [0, 0], sizes = [8, 384], strides = [1, 1]} : vector<8x512xf32> to vector<8x384xf32>
    %95 = arith.negf %94 : vector<8x384xf32>
    %96 = math.exp %95 : vector<8x384xf32>
    %cst_41 = arith.constant 1.000000e+00 : f32
    %97 = vector.broadcast %cst_41 : f32 to vector<8x384xf32>
    %98 = arith.addf %97, %96 : vector<8x384xf32>
    %99 = arith.divf %97, %98 : vector<8x384xf32>
    %100 = vector.extract_strided_slice %99 {offsets = [0, 0], sizes = [8, 128], strides = [1, 1]} : vector<8x384xf32> to vector<8x128xf32>
    %101 = vector.extract_strided_slice %99 {offsets = [0, 128], sizes = [8, 128], strides = [1, 1]} : vector<8x384xf32> to vector<8x128xf32>
    %102 = vector.extract_strided_slice %99 {offsets = [0, 256], sizes = [8, 128], strides = [1, 1]} : vector<8x384xf32> to vector<8x128xf32>
    %103 = vector.extract_strided_slice %93 {offsets = [0, 384], sizes = [8, 128], strides = [1, 1]} : vector<8x512xf32> to vector<8x128xf32>
    %104 = math.tanh %103 : vector<8x128xf32>
    %105 = arith.mulf %101, %87 : vector<8x128xf32>
    %106 = arith.mulf %100, %104 : vector<8x128xf32>
    %107 = arith.addf %105, %106 : vector<8x128xf32>
    %108 = math.tanh %107 : vector<8x128xf32>
    %109 = arith.mulf %102, %108 : vector<8x128xf32>
    %c0_42 = arith.constant 0 : index
    %c0_43 = arith.constant 0 : index
    %c0_44 = arith.constant 0 : index
    %110 = vector.load %arg12[%c0_42, %c0_43, %c0_44] : memref<8x8x128xf32, #tpu.memory_space<vmem>>, vector<1x8x128xf32>
    %111 = vector.shape_cast %110 : vector<1x8x128xf32> to vector<8x128xf32>
    %112 = vector.shape_cast %109 : vector<8x128xf32> to vector<1x8x128xf32>
    tpu.vector_store %arg12[%c0_42, %c0_43, %c0_44], %112 {strides = array<i32>} : memref<8x8x128xf32, #tpu.memory_space<vmem>>, vector<1x8x128xf32>,
    %c1_45 = arith.constant 1 : index
    %c0_46 = arith.constant 0 : index
    %c0_47 = arith.constant 0 : index
    %113 = vector.load %arg11[%c1_45, %c0_46, %c0_47] : memref<8x8x512xf32, #tpu.memory_space<vmem>>, vector<1x8x512xf32>
    %114 = vector.shape_cast %113 : vector<1x8x512xf32> to vector<8x512xf32>
    %115 = arith.truncf %109 : vector<8x128xf32> to vector<8x128xbf16>
    %c0_48 = arith.constant 0 : index
    %c0_49 = arith.constant 0 : index
    %116 = vector.load %arg3[%c0_48, %c0_49] : memref<128x512xbf16, #tpu.memory_space<vmem>>, vector<128x512xbf16>
    %cst_50 = arith.constant dense<0.000000e+00> : vector<8x512xf32>
    %117 = tpu.matmul %115, %116, %cst_50 {dimension_numbers = #tpu.dot_dimension_numbers<[1], [0], [0], [1], [0, 0, 1, 1], [], []>} : vector<8x128xbf16>, vector<128x512xbf16>, vector<8x512xf32> -> vector<8x512xf32>
    %118 = arith.addf %114, %117 : vector<8x512xf32>
    %119 = vector.extract_strided_slice %118 {offsets = [0, 0], sizes = [8, 384], strides = [1, 1]} : vector<8x512xf32> to vector<8x384xf32>
    %120 = arith.negf %119 : vector<8x384xf32>
    %121 = math.exp %120 : vector<8x384xf32>
    %cst_51 = arith.constant 1.000000e+00 : f32
    %122 = vector.broadcast %cst_51 : f32 to vector<8x384xf32>
    %123 = arith.addf %122, %121 : vector<8x384xf32>
    %124 = arith.divf %122, %123 : vector<8x384xf32>
    %125 = vector.extract_strided_slice %124 {offsets = [0, 0], sizes = [8, 128], strides = [1, 1]} : vector<8x384xf32> to vector<8x128xf32>
    %126 = vector.extract_strided_slice %124 {offsets = [0, 128], sizes = [8, 128], strides = [1, 1]} : vector<8x384xf32> to vector<8x128xf32>
    %127 = vector.extract_strided_slice %124 {offsets = [0, 256], sizes = [8, 128], strides = [1, 1]} : vector<8x384xf32> to vector<8x128xf32>
    %128 = vector.extract_strided_slice %118 {offsets = [0, 384], sizes = [8, 128], strides = [1, 1]} : vector<8x512xf32> to vector<8x128xf32>
    %129 = math.tanh %128 : vector<8x128xf32>
    %130 = arith.mulf %126, %107 : vector<8x128xf32>
    %131 = arith.mulf %125, %129 : vector<8x128xf32>
    %132 = arith.addf %130, %131 : vector<8x128xf32>
    %133 = math.tanh %132 : vector<8x128xf32>
    %134 = arith.mulf %127, %133 : vector<8x128xf32>
    %c1_52 = arith.constant 1 : index
    %c0_53 = arith.constant 0 : index
    %c0_54 = arith.constant 0 : index
    %135 = vector.load %arg12[%c1_52, %c0_53, %c0_54] : memref<8x8x128xf32, #tpu.memory_space<vmem>>, vector<1x8x128xf32>
    %136 = vector.shape_cast %135 : vector<1x8x128xf32> to vector<8x128xf32>
    %137 = vector.shape_cast %134 : vector<8x128xf32> to vector<1x8x128xf32>
    tpu.vector_store %arg12[%c1_52, %c0_53, %c0_54], %137 {strides = array<i32>} : memref<8x8x128xf32, #tpu.memory_space<vmem>>, vector<1x8x128xf32>,
    %c2_55 = arith.constant 2 : index
    %c0_56 = arith.constant 0 : index
    %c0_57 = arith.constant 0 : index
    %138 = vector.load %arg11[%c2_55, %c0_56, %c0_57] : memref<8x8x512xf32, #tpu.memory_space<vmem>>, vector<1x8x512xf32>
    %139 = vector.shape_cast %138 : vector<1x8x512xf32> to vector<8x512xf32>
    %140 = arith.truncf %134 : vector<8x128xf32> to vector<8x128xbf16>
    %c0_58 = arith.constant 0 : index
    %c0_59 = arith.constant 0 : index
    %141 = vector.load %arg3[%c0_58, %c0_59] : memref<128x512xbf16, #tpu.memory_space<vmem>>, vector<128x512xbf16>
    %cst_60 = arith.constant dense<0.000000e+00> : vector<8x512xf32>
    %142 = tpu.matmul %140, %141, %cst_60 {dimension_numbers = #tpu.dot_dimension_numbers<[1], [0], [0], [1], [0, 0, 1, 1], [], []>} : vector<8x128xbf16>, vector<128x512xbf16>, vector<8x512xf32> -> vector<8x512xf32>
    %143 = arith.addf %139, %142 : vector<8x512xf32>
    %144 = vector.extract_strided_slice %143 {offsets = [0, 0], sizes = [8, 384], strides = [1, 1]} : vector<8x512xf32> to vector<8x384xf32>
    %145 = arith.negf %144 : vector<8x384xf32>
    %146 = math.exp %145 : vector<8x384xf32>
    %cst_61 = arith.constant 1.000000e+00 : f32
    %147 = vector.broadcast %cst_61 : f32 to vector<8x384xf32>
    %148 = arith.addf %147, %146 : vector<8x384xf32>
    %149 = arith.divf %147, %148 : vector<8x384xf32>
    %150 = vector.extract_strided_slice %149 {offsets = [0, 0], sizes = [8, 128], strides = [1, 1]} : vector<8x384xf32> to vector<8x128xf32>
    %151 = vector.extract_strided_slice %149 {offsets = [0, 128], sizes = [8, 128], strides = [1, 1]} : vector<8x384xf32> to vector<8x128xf32>
    %152 = vector.extract_strided_slice %149 {offsets = [0, 256], sizes = [8, 128], strides = [1, 1]} : vector<8x384xf32> to vector<8x128xf32>
    %153 = vector.extract_strided_slice %143 {offsets = [0, 384], sizes = [8, 128], strides = [1, 1]} : vector<8x512xf32> to vector<8x128xf32>
    %154 = math.tanh %153 : vector<8x128xf32>
    %155 = arith.mulf %151, %132 : vector<8x128xf32>
    %156 = arith.mulf %150, %154 : vector<8x128xf32>
    %157 = arith.addf %155, %156 : vector<8x128xf32>
    %158 = math.tanh %157 : vector<8x128xf32>
    %159 = arith.mulf %152, %158 : vector<8x128xf32>
    %c2_62 = arith.constant 2 : index
    %c0_63 = arith.constant 0 : index
    %c0_64 = arith.constant 0 : index
    %160 = vector.load %arg12[%c2_62, %c0_63, %c0_64] : memref<8x8x128xf32, #tpu.memory_space<vmem>>, vector<1x8x128xf32>
    %161 = vector.shape_cast %160 : vector<1x8x128xf32> to vector<8x128xf32>
    %162 = vector.shape_cast %159 : vector<8x128xf32> to vector<1x8x128xf32>
    tpu.vector_store %arg12[%c2_62, %c0_63, %c0_64], %162 {strides = array<i32>} : memref<8x8x128xf32, #tpu.memory_space<vmem>>, vector<1x8x128xf32>,
    %c3_65 = arith.constant 3 : index
    %c0_66 = arith.constant 0 : index
    %c0_67 = arith.constant 0 : index
    %163 = vector.load %arg11[%c3_65, %c0_66, %c0_67] : memref<8x8x512xf32, #tpu.memory_space<vmem>>, vector<1x8x512xf32>
    %164 = vector.shape_cast %163 : vector<1x8x512xf32> to vector<8x512xf32>
    %165 = arith.truncf %159 : vector<8x128xf32> to vector<8x128xbf16>
    %c0_68 = arith.constant 0 : index
    %c0_69 = arith.constant 0 : index
    %166 = vector.load %arg3[%c0_68, %c0_69] : memref<128x512xbf16, #tpu.memory_space<vmem>>, vector<128x512xbf16>
    %cst_70 = arith.constant dense<0.000000e+00> : vector<8x512xf32>
    %167 = tpu.matmul %165, %166, %cst_70 {dimension_numbers = #tpu.dot_dimension_numbers<[1], [0], [0], [1], [0, 0, 1, 1], [], []>} : vector<8x128xbf16>, vector<128x512xbf16>, vector<8x512xf32> -> vector<8x512xf32>
    %168 = arith.addf %164, %167 : vector<8x512xf32>
    %169 = vector.extract_strided_slice %168 {offsets = [0, 0], sizes = [8, 384], strides = [1, 1]} : vector<8x512xf32> to vector<8x384xf32>
    %170 = arith.negf %169 : vector<8x384xf32>
    %171 = math.exp %170 : vector<8x384xf32>
    %cst_71 = arith.constant 1.000000e+00 : f32
    %172 = vector.broadcast %cst_71 : f32 to vector<8x384xf32>
    %173 = arith.addf %172, %171 : vector<8x384xf32>
    %174 = arith.divf %172, %173 : vector<8x384xf32>
    %175 = vector.extract_strided_slice %174 {offsets = [0, 0], sizes = [8, 128], strides = [1, 1]} : vector<8x384xf32> to vector<8x128xf32>
    %176 = vector.extract_strided_slice %174 {offsets = [0, 128], sizes = [8, 128], strides = [1, 1]} : vector<8x384xf32> to vector<8x128xf32>
    %177 = vector.extract_strided_slice %174 {offsets = [0, 256], sizes = [8, 128], strides = [1, 1]} : vector<8x384xf32> to vector<8x128xf32>
    %178 = vector.extract_strided_slice %168 {offsets = [0, 384], sizes = [8, 128], strides = [1, 1]} : vector<8x512xf32> to vector<8x128xf32>
    %179 = math.tanh %178 : vector<8x128xf32>
    %180 = arith.mulf %176, %157 : vector<8x128xf32>
    %181 = arith.mulf %175, %179 : vector<8x128xf32>
    %182 = arith.addf %180, %181 : vector<8x128xf32>
    %183 = math.tanh %182 : vector<8x128xf32>
    %184 = arith.mulf %177, %183 : vector<8x128xf32>
    %c3_72 = arith.constant 3 : index
    %c0_73 = arith.constant 0 : index
    %c0_74 = arith.constant 0 : index
    %185 = vector.load %arg12[%c3_72, %c0_73, %c0_74] : memref<8x8x128xf32, #tpu.memory_space<vmem>>, vector<1x8x128xf32>
    %186 = vector.shape_cast %185 : vector<1x8x128xf32> to vector<8x128xf32>
    %187 = vector.shape_cast %184 : vector<8x128xf32> to vector<1x8x128xf32>
    tpu.vector_store %arg12[%c3_72, %c0_73, %c0_74], %187 {strides = array<i32>} : memref<8x8x128xf32, #tpu.memory_space<vmem>>, vector<1x8x128xf32>,
    %c4_75 = arith.constant 4 : index
    %c0_76 = arith.constant 0 : index
    %c0_77 = arith.constant 0 : index
    %188 = vector.load %arg11[%c4_75, %c0_76, %c0_77] : memref<8x8x512xf32, #tpu.memory_space<vmem>>, vector<1x8x512xf32>
    %189 = vector.shape_cast %188 : vector<1x8x512xf32> to vector<8x512xf32>
    %190 = arith.truncf %184 : vector<8x128xf32> to vector<8x128xbf16>
    %c0_78 = arith.constant 0 : index
    %c0_79 = arith.constant 0 : index
    %191 = vector.load %arg3[%c0_78, %c0_79] : memref<128x512xbf16, #tpu.memory_space<vmem>>, vector<128x512xbf16>
    %cst_80 = arith.constant dense<0.000000e+00> : vector<8x512xf32>
    %192 = tpu.matmul %190, %191, %cst_80 {dimension_numbers = #tpu.dot_dimension_numbers<[1], [0], [0], [1], [0, 0, 1, 1], [], []>} : vector<8x128xbf16>, vector<128x512xbf16>, vector<8x512xf32> -> vector<8x512xf32>
    %193 = arith.addf %189, %192 : vector<8x512xf32>
    %194 = vector.extract_strided_slice %193 {offsets = [0, 0], sizes = [8, 384], strides = [1, 1]} : vector<8x512xf32> to vector<8x384xf32>
    %195 = arith.negf %194 : vector<8x384xf32>
    %196 = math.exp %195 : vector<8x384xf32>
    %cst_81 = arith.constant 1.000000e+00 : f32
    %197 = vector.broadcast %cst_81 : f32 to vector<8x384xf32>
    %198 = arith.addf %197, %196 : vector<8x384xf32>
    %199 = arith.divf %197, %198 : vector<8x384xf32>
    %200 = vector.extract_strided_slice %199 {offsets = [0, 0], sizes = [8, 128], strides = [1, 1]} : vector<8x384xf32> to vector<8x128xf32>
    %201 = vector.extract_strided_slice %199 {offsets = [0, 128], sizes = [8, 128], strides = [1, 1]} : vector<8x384xf32> to vector<8x128xf32>
    %202 = vector.extract_strided_slice %199 {offsets = [0, 256], sizes = [8, 128], strides = [1, 1]} : vector<8x384xf32> to vector<8x128xf32>
    %203 = vector.extract_strided_slice %193 {offsets = [0, 384], sizes = [8, 128], strides = [1, 1]} : vector<8x512xf32> to vector<8x128xf32>
    %204 = math.tanh %203 : vector<8x128xf32>
    %205 = arith.mulf %201, %182 : vector<8x128xf32>
    %206 = arith.mulf %200, %204 : vector<8x128xf32>
    %207 = arith.addf %205, %206 : vector<8x128xf32>
    %208 = math.tanh %207 : vector<8x128xf32>
    %209 = arith.mulf %202, %208 : vector<8x128xf32>
    %c4_82 = arith.constant 4 : index
    %c0_83 = arith.constant 0 : index
    %c0_84 = arith.constant 0 : index
    %210 = vector.load %arg12[%c4_82, %c0_83, %c0_84] : memref<8x8x128xf32, #tpu.memory_space<vmem>>, vector<1x8x128xf32>
    %211 = vector.shape_cast %210 : vector<1x8x128xf32> to vector<8x128xf32>
    %212 = vector.shape_cast %209 : vector<8x128xf32> to vector<1x8x128xf32>
    tpu.vector_store %arg12[%c4_82, %c0_83, %c0_84], %212 {strides = array<i32>} : memref<8x8x128xf32, #tpu.memory_space<vmem>>, vector<1x8x128xf32>,
    %c5_85 = arith.constant 5 : index
    %c0_86 = arith.constant 0 : index
    %c0_87 = arith.constant 0 : index
    %213 = vector.load %arg11[%c5_85, %c0_86, %c0_87] : memref<8x8x512xf32, #tpu.memory_space<vmem>>, vector<1x8x512xf32>
    %214 = vector.shape_cast %213 : vector<1x8x512xf32> to vector<8x512xf32>
    %215 = arith.truncf %209 : vector<8x128xf32> to vector<8x128xbf16>
    %c0_88 = arith.constant 0 : index
    %c0_89 = arith.constant 0 : index
    %216 = vector.load %arg3[%c0_88, %c0_89] : memref<128x512xbf16, #tpu.memory_space<vmem>>, vector<128x512xbf16>
    %cst_90 = arith.constant dense<0.000000e+00> : vector<8x512xf32>
    %217 = tpu.matmul %215, %216, %cst_90 {dimension_numbers = #tpu.dot_dimension_numbers<[1], [0], [0], [1], [0, 0, 1, 1], [], []>} : vector<8x128xbf16>, vector<128x512xbf16>, vector<8x512xf32> -> vector<8x512xf32>
    %218 = arith.addf %214, %217 : vector<8x512xf32>
    %219 = vector.extract_strided_slice %218 {offsets = [0, 0], sizes = [8, 384], strides = [1, 1]} : vector<8x512xf32> to vector<8x384xf32>
    %220 = arith.negf %219 : vector<8x384xf32>
    %221 = math.exp %220 : vector<8x384xf32>
    %cst_91 = arith.constant 1.000000e+00 : f32
    %222 = vector.broadcast %cst_91 : f32 to vector<8x384xf32>
    %223 = arith.addf %222, %221 : vector<8x384xf32>
    %224 = arith.divf %222, %223 : vector<8x384xf32>
    %225 = vector.extract_strided_slice %224 {offsets = [0, 0], sizes = [8, 128], strides = [1, 1]} : vector<8x384xf32> to vector<8x128xf32>
    %226 = vector.extract_strided_slice %224 {offsets = [0, 128], sizes = [8, 128], strides = [1, 1]} : vector<8x384xf32> to vector<8x128xf32>
    %227 = vector.extract_strided_slice %224 {offsets = [0, 256], sizes = [8, 128], strides = [1, 1]} : vector<8x384xf32> to vector<8x128xf32>
    %228 = vector.extract_strided_slice %218 {offsets = [0, 384], sizes = [8, 128], strides = [1, 1]} : vector<8x512xf32> to vector<8x128xf32>
    %229 = math.tanh %228 : vector<8x128xf32>
    %230 = arith.mulf %226, %207 : vector<8x128xf32>
    %231 = arith.mulf %225, %229 : vector<8x128xf32>
    %232 = arith.addf %230, %231 : vector<8x128xf32>
    %233 = math.tanh %232 : vector<8x128xf32>
    %234 = arith.mulf %227, %233 : vector<8x128xf32>
    %c5_92 = arith.constant 5 : index
    %c0_93 = arith.constant 0 : index
    %c0_94 = arith.constant 0 : index
    %235 = vector.load %arg12[%c5_92, %c0_93, %c0_94] : memref<8x8x128xf32, #tpu.memory_space<vmem>>, vector<1x8x128xf32>
    %236 = vector.shape_cast %235 : vector<1x8x128xf32> to vector<8x128xf32>
    %237 = vector.shape_cast %234 : vector<8x128xf32> to vector<1x8x128xf32>
    tpu.vector_store %arg12[%c5_92, %c0_93, %c0_94], %237 {strides = array<i32>} : memref<8x8x128xf32, #tpu.memory_space<vmem>>, vector<1x8x128xf32>,
    %c6_95 = arith.constant 6 : index
    %c0_96 = arith.constant 0 : index
    %c0_97 = arith.constant 0 : index
    %238 = vector.load %arg11[%c6_95, %c0_96, %c0_97] : memref<8x8x512xf32, #tpu.memory_space<vmem>>, vector<1x8x512xf32>
    %239 = vector.shape_cast %238 : vector<1x8x512xf32> to vector<8x512xf32>
    %240 = arith.truncf %234 : vector<8x128xf32> to vector<8x128xbf16>
    %c0_98 = arith.constant 0 : index
    %c0_99 = arith.constant 0 : index
    %241 = vector.load %arg3[%c0_98, %c0_99] : memref<128x512xbf16, #tpu.memory_space<vmem>>, vector<128x512xbf16>
    %cst_100 = arith.constant dense<0.000000e+00> : vector<8x512xf32>
    %242 = tpu.matmul %240, %241, %cst_100 {dimension_numbers = #tpu.dot_dimension_numbers<[1], [0], [0], [1], [0, 0, 1, 1], [], []>} : vector<8x128xbf16>, vector<128x512xbf16>, vector<8x512xf32> -> vector<8x512xf32>
    %243 = arith.addf %239, %242 : vector<8x512xf32>
    %244 = vector.extract_strided_slice %243 {offsets = [0, 0], sizes = [8, 384], strides = [1, 1]} : vector<8x512xf32> to vector<8x384xf32>
    %245 = arith.negf %244 : vector<8x384xf32>
    %246 = math.exp %245 : vector<8x384xf32>
    %cst_101 = arith.constant 1.000000e+00 : f32
    %247 = vector.broadcast %cst_101 : f32 to vector<8x384xf32>
    %248 = arith.addf %247, %246 : vector<8x384xf32>
    %249 = arith.divf %247, %248 : vector<8x384xf32>
    %250 = vector.extract_strided_slice %249 {offsets = [0, 0], sizes = [8, 128], strides = [1, 1]} : vector<8x384xf32> to vector<8x128xf32>
    %251 = vector.extract_strided_slice %249 {offsets = [0, 128], sizes = [8, 128], strides = [1, 1]} : vector<8x384xf32> to vector<8x128xf32>
    %252 = vector.extract_strided_slice %249 {offsets = [0, 256], sizes = [8, 128], strides = [1, 1]} : vector<8x384xf32> to vector<8x128xf32>
    %253 = vector.extract_strided_slice %243 {offsets = [0, 384], sizes = [8, 128], strides = [1, 1]} : vector<8x512xf32> to vector<8x128xf32>
    %254 = math.tanh %253 : vector<8x128xf32>
    %255 = arith.mulf %251, %232 : vector<8x128xf32>
    %256 = arith.mulf %250, %254 : vector<8x128xf32>
    %257 = arith.addf %255, %256 : vector<8x128xf32>
    %258 = math.tanh %257 : vector<8x128xf32>
    %259 = arith.mulf %252, %258 : vector<8x128xf32>
    %c6_102 = arith.constant 6 : index
    %c0_103 = arith.constant 0 : index
    %c0_104 = arith.constant 0 : index
    %260 = vector.load %arg12[%c6_102, %c0_103, %c0_104] : memref<8x8x128xf32, #tpu.memory_space<vmem>>, vector<1x8x128xf32>
    %261 = vector.shape_cast %260 : vector<1x8x128xf32> to vector<8x128xf32>
    %262 = vector.shape_cast %259 : vector<8x128xf32> to vector<1x8x128xf32>
    tpu.vector_store %arg12[%c6_102, %c0_103, %c0_104], %262 {strides = array<i32>} : memref<8x8x128xf32, #tpu.memory_space<vmem>>, vector<1x8x128xf32>,
    %c7_105 = arith.constant 7 : index
    %c0_106 = arith.constant 0 : index
    %c0_107 = arith.constant 0 : index
    %263 = vector.load %arg11[%c7_105, %c0_106, %c0_107] : memref<8x8x512xf32, #tpu.memory_space<vmem>>, vector<1x8x512xf32>
    %264 = vector.shape_cast %263 : vector<1x8x512xf32> to vector<8x512xf32>
    %265 = arith.truncf %259 : vector<8x128xf32> to vector<8x128xbf16>
    %c0_108 = arith.constant 0 : index
    %c0_109 = arith.constant 0 : index
    %266 = vector.load %arg3[%c0_108, %c0_109] : memref<128x512xbf16, #tpu.memory_space<vmem>>, vector<128x512xbf16>
    %cst_110 = arith.constant dense<0.000000e+00> : vector<8x512xf32>
    %267 = tpu.matmul %265, %266, %cst_110 {dimension_numbers = #tpu.dot_dimension_numbers<[1], [0], [0], [1], [0, 0, 1, 1], [], []>} : vector<8x128xbf16>, vector<128x512xbf16>, vector<8x512xf32> -> vector<8x512xf32>
    %268 = arith.addf %264, %267 : vector<8x512xf32>
    %269 = vector.extract_strided_slice %268 {offsets = [0, 0], sizes = [8, 384], strides = [1, 1]} : vector<8x512xf32> to vector<8x384xf32>
    %270 = arith.negf %269 : vector<8x384xf32>
    %271 = math.exp %270 : vector<8x384xf32>
    %cst_111 = arith.constant 1.000000e+00 : f32
    %272 = vector.broadcast %cst_111 : f32 to vector<8x384xf32>
    %273 = arith.addf %272, %271 : vector<8x384xf32>
    %274 = arith.divf %272, %273 : vector<8x384xf32>
    %275 = vector.extract_strided_slice %274 {offsets = [0, 0], sizes = [8, 128], strides = [1, 1]} : vector<8x384xf32> to vector<8x128xf32>
    %276 = vector.extract_strided_slice %274 {offsets = [0, 128], sizes = [8, 128], strides = [1, 1]} : vector<8x384xf32> to vector<8x128xf32>
    %277 = vector.extract_strided_slice %274 {offsets = [0, 256], sizes = [8, 128], strides = [1, 1]} : vector<8x384xf32> to vector<8x128xf32>
    %278 = vector.extract_strided_slice %268 {offsets = [0, 384], sizes = [8, 128], strides = [1, 1]} : vector<8x512xf32> to vector<8x128xf32>
    %279 = math.tanh %278 : vector<8x128xf32>
    %280 = arith.mulf %276, %257 : vector<8x128xf32>
    %281 = arith.mulf %275, %279 : vector<8x128xf32>
    %282 = arith.addf %280, %281 : vector<8x128xf32>
    %283 = math.tanh %282 : vector<8x128xf32>
    %284 = arith.mulf %277, %283 : vector<8x128xf32>
    %c7_112 = arith.constant 7 : index
    %c0_113 = arith.constant 0 : index
    %c0_114 = arith.constant 0 : index
    %285 = vector.load %arg12[%c7_112, %c0_113, %c0_114] : memref<8x8x128xf32, #tpu.memory_space<vmem>>, vector<1x8x128xf32>
    %286 = vector.shape_cast %285 : vector<1x8x128xf32> to vector<8x128xf32>
    %287 = vector.shape_cast %284 : vector<8x128xf32> to vector<1x8x128xf32>
    tpu.vector_store %arg12[%c7_112, %c0_113, %c0_114], %287 {strides = array<i32>} : memref<8x8x128xf32, #tpu.memory_space<vmem>>, vector<1x8x128xf32>,
    %c0_115 = arith.constant 0 : index
    %c0_116 = arith.constant 0 : index
    %c0_117 = arith.constant 0 : index
    %288 = vector.load %arg12[%c0_115, %c0_116, %c0_117] : memref<8x8x128xf32, #tpu.memory_space<vmem>>, vector<1x8x128xf32>
    %289 = vector.shape_cast %288 : vector<1x8x128xf32> to vector<8x128xf32>
    %c7_118 = arith.constant 7 : index
    %c0_119 = arith.constant 0 : index
    %c0_120 = arith.constant 0 : index
    %290 = vector.load %arg12[%c7_118, %c0_119, %c0_120] : memref<8x8x128xf32, #tpu.memory_space<vmem>>, vector<1x8x128xf32>
    %291 = vector.shape_cast %290 : vector<1x8x128xf32> to vector<8x128xf32>
    %292 = arith.select %31, %289, %291 : vector<8x128xi1>, vector<8x128xf32>
    %c1_121 = arith.constant 1 : index
    %c0_122 = arith.constant 0 : index
    %c0_123 = arith.constant 0 : index
    %293 = vector.load %arg12[%c1_121, %c0_122, %c0_123] : memref<8x8x128xf32, #tpu.memory_space<vmem>>, vector<1x8x128xf32>
    %294 = vector.shape_cast %293 : vector<1x8x128xf32> to vector<8x128xf32>
    %c6_124 = arith.constant 6 : index
    %c0_125 = arith.constant 0 : index
    %c0_126 = arith.constant 0 : index
    %295 = vector.load %arg12[%c6_124, %c0_125, %c0_126] : memref<8x8x128xf32, #tpu.memory_space<vmem>>, vector<1x8x128xf32>
    %296 = vector.shape_cast %295 : vector<1x8x128xf32> to vector<8x128xf32>
    %297 = arith.select %31, %294, %296 : vector<8x128xi1>, vector<8x128xf32>
    %c2_127 = arith.constant 2 : index
    %c0_128 = arith.constant 0 : index
    %c0_129 = arith.constant 0 : index
    %298 = vector.load %arg12[%c2_127, %c0_128, %c0_129] : memref<8x8x128xf32, #tpu.memory_space<vmem>>, vector<1x8x128xf32>
    %299 = vector.shape_cast %298 : vector<1x8x128xf32> to vector<8x128xf32>
    %c5_130 = arith.constant 5 : index
    %c0_131 = arith.constant 0 : index
    %c0_132 = arith.constant 0 : index
    %300 = vector.load %arg12[%c5_130, %c0_131, %c0_132] : memref<8x8x128xf32, #tpu.memory_space<vmem>>, vector<1x8x128xf32>
    %301 = vector.shape_cast %300 : vector<1x8x128xf32> to vector<8x128xf32>
    %302 = arith.select %31, %299, %301 : vector<8x128xi1>, vector<8x128xf32>
    %c3_133 = arith.constant 3 : index
    %c0_134 = arith.constant 0 : index
    %c0_135 = arith.constant 0 : index
    %303 = vector.load %arg12[%c3_133, %c0_134, %c0_135] : memref<8x8x128xf32, #tpu.memory_space<vmem>>, vector<1x8x128xf32>
    %304 = vector.shape_cast %303 : vector<1x8x128xf32> to vector<8x128xf32>
    %c4_136 = arith.constant 4 : index
    %c0_137 = arith.constant 0 : index
    %c0_138 = arith.constant 0 : index
    %305 = vector.load %arg12[%c4_136, %c0_137, %c0_138] : memref<8x8x128xf32, #tpu.memory_space<vmem>>, vector<1x8x128xf32>
    %306 = vector.shape_cast %305 : vector<1x8x128xf32> to vector<8x128xf32>
    %307 = arith.select %31, %304, %306 : vector<8x128xi1>, vector<8x128xf32>
    %c4_139 = arith.constant 4 : index
    %c0_140 = arith.constant 0 : index
    %c0_141 = arith.constant 0 : index
    %308 = vector.load %arg12[%c4_139, %c0_140, %c0_141] : memref<8x8x128xf32, #tpu.memory_space<vmem>>, vector<1x8x128xf32>
    %309 = vector.shape_cast %308 : vector<1x8x128xf32> to vector<8x128xf32>
    %c3_142 = arith.constant 3 : index
    %c0_143 = arith.constant 0 : index
    %c0_144 = arith.constant 0 : index
    %310 = vector.load %arg12[%c3_142, %c0_143, %c0_144] : memref<8x8x128xf32, #tpu.memory_space<vmem>>, vector<1x8x128xf32>
    %311 = vector.shape_cast %310 : vector<1x8x128xf32> to vector<8x128xf32>
    %312 = arith.select %31, %309, %311 : vector<8x128xi1>, vector<8x128xf32>
    %c5_145 = arith.constant 5 : index
    %c0_146 = arith.constant 0 : index
    %c0_147 = arith.constant 0 : index
    %313 = vector.load %arg12[%c5_145, %c0_146, %c0_147] : memref<8x8x128xf32, #tpu.memory_space<vmem>>, vector<1x8x128xf32>
    %314 = vector.shape_cast %313 : vector<1x8x128xf32> to vector<8x128xf32>
    %c2_148 = arith.constant 2 : index
    %c0_149 = arith.constant 0 : index
    %c0_150 = arith.constant 0 : index
    %315 = vector.load %arg12[%c2_148, %c0_149, %c0_150] : memref<8x8x128xf32, #tpu.memory_space<vmem>>, vector<1x8x128xf32>
    %316 = vector.shape_cast %315 : vector<1x8x128xf32> to vector<8x128xf32>
    %317 = arith.select %31, %314, %316 : vector<8x128xi1>, vector<8x128xf32>
    %c6_151 = arith.constant 6 : index
    %c0_152 = arith.constant 0 : index
    %c0_153 = arith.constant 0 : index
    %318 = vector.load %arg12[%c6_151, %c0_152, %c0_153] : memref<8x8x128xf32, #tpu.memory_space<vmem>>, vector<1x8x128xf32>
    %319 = vector.shape_cast %318 : vector<1x8x128xf32> to vector<8x128xf32>
    %c1_154 = arith.constant 1 : index
    %c0_155 = arith.constant 0 : index
    %c0_156 = arith.constant 0 : index
    %320 = vector.load %arg12[%c1_154, %c0_155, %c0_156] : memref<8x8x128xf32, #tpu.memory_space<vmem>>, vector<1x8x128xf32>
    %321 = vector.shape_cast %320 : vector<1x8x128xf32> to vector<8x128xf32>
    %322 = arith.select %31, %319, %321 : vector<8x128xi1>, vector<8x128xf32>
    %c7_157 = arith.constant 7 : index
    %c0_158 = arith.constant 0 : index
    %c0_159 = arith.constant 0 : index
    %323 = vector.load %arg12[%c7_157, %c0_158, %c0_159] : memref<8x8x128xf32, #tpu.memory_space<vmem>>, vector<1x8x128xf32>
    %324 = vector.shape_cast %323 : vector<1x8x128xf32> to vector<8x128xf32>
    %c0_160 = arith.constant 0 : index
    %c0_161 = arith.constant 0 : index
    %c0_162 = arith.constant 0 : index
    %325 = vector.load %arg12[%c0_160, %c0_161, %c0_162] : memref<8x8x128xf32, #tpu.memory_space<vmem>>, vector<1x8x128xf32>
    %326 = vector.shape_cast %325 : vector<1x8x128xf32> to vector<8x128xf32>
    %327 = arith.select %31, %324, %326 : vector<8x128xi1>, vector<8x128xf32>
    %328 = tpu.concatenate %292, %297, %302, %307, %312, %317, %322, %327 in 0 : vector<8x128xf32>, vector<8x128xf32>, vector<8x128xf32>, vector<8x128xf32>, vector<8x128xf32>, vector<8x128xf32>, vector<8x128xf32>, vector<8x128xf32> -> vector<64x128xf32>
    %c0_163 = arith.constant 0 : index
    %c0_164 = arith.constant 0 : index
    %329 = vector.load %arg13[%c0_163, %c0_164] : memref<64x128xf32, #tpu.memory_space<vmem>>, vector<64x128xf32>
    %330 = arith.addf %329, %328 : vector<64x128xf32>
    %c0_165 = arith.constant 0 : index
    %c0_166 = arith.constant 0 : index
    %331 = vector.load %arg13[%c0_165, %c0_166] : memref<64x128xf32, #tpu.memory_space<vmem>>, vector<64x128xf32>
    tpu.vector_store %arg13[%c0_165, %c0_166], %330 {strides = array<i32>} : memref<64x128xf32, #tpu.memory_space<vmem>>, vector<64x128xf32>,
    %332 = arith.truncf %328 : vector<64x128xf32> to vector<64x128xbf16>
    %c0_167 = arith.constant 0 : index
    %c0_168 = arith.constant 0 : index
    %333 = vector.load %arg5[%c0_167, %c0_168] : memref<128x512xbf16, #tpu.memory_space<vmem>>, vector<128x512xbf16>
    %cst_169 = arith.constant dense<0.000000e+00> : vector<64x512xf32>
    %334 = tpu.matmul %332, %333, %cst_169 {dimension_numbers = #tpu.dot_dimension_numbers<[1], [0], [0], [1], [0, 0, 1, 1], [], []>} : vector<64x128xbf16>, vector<128x512xbf16>, vector<64x512xf32> -> vector<64x512xf32>
    %c0_170 = arith.constant 0 : index
    %c0_171 = arith.constant 0 : index
    %335 = vector.load %arg7[%c0_170, %c0_171] : memref<1x512xf32, #tpu.memory_space<vmem>>, vector<1x512xf32>
    %336 = vector.broadcast %335 : vector<1x512xf32> to vector<64x512xf32>
    %337 = arith.addf %334, %336 : vector<64x512xf32>
    %338 = vector.extract_strided_slice %337 {offsets = [0, 0], sizes = [8, 512], strides = [1, 1]} : vector<64x512xf32> to vector<8x512xf32>
    %339 = vector.extract_strided_slice %337 {offsets = [56, 0], sizes = [8, 512], strides = [1, 1]} : vector<64x512xf32> to vector<8x512xf32>
    %340 = arith.select %28, %338, %339 : vector<8x512xi1>, vector<8x512xf32>
    %c0_172 = arith.constant 0 : index
    %c0_173 = arith.constant 0 : index
    %c0_174 = arith.constant 0 : index
    %341 = vector.load %arg11[%c0_172, %c0_173, %c0_174] : memref<8x8x512xf32, #tpu.memory_space<vmem>>, vector<1x8x512xf32>
    %342 = vector.shape_cast %341 : vector<1x8x512xf32> to vector<8x512xf32>
    %343 = vector.shape_cast %340 : vector<8x512xf32> to vector<1x8x512xf32>
    tpu.vector_store %arg11[%c0_172, %c0_173, %c0_174], %343 {strides = array<i32>} : memref<8x8x512xf32, #tpu.memory_space<vmem>>, vector<1x8x512xf32>,
    %344 = vector.extract_strided_slice %337 {offsets = [8, 0], sizes = [8, 512], strides = [1, 1]} : vector<64x512xf32> to vector<8x512xf32>
    %345 = vector.extract_strided_slice %337 {offsets = [48, 0], sizes = [8, 512], strides = [1, 1]} : vector<64x512xf32> to vector<8x512xf32>
    %346 = arith.select %28, %344, %345 : vector<8x512xi1>, vector<8x512xf32>
    %c1_175 = arith.constant 1 : index
    %c0_176 = arith.constant 0 : index
    %c0_177 = arith.constant 0 : index
    %347 = vector.load %arg11[%c1_175, %c0_176, %c0_177] : memref<8x8x512xf32, #tpu.memory_space<vmem>>, vector<1x8x512xf32>
    %348 = vector.shape_cast %347 : vector<1x8x512xf32> to vector<8x512xf32>
    %349 = vector.shape_cast %346 : vector<8x512xf32> to vector<1x8x512xf32>
    tpu.vector_store %arg11[%c1_175, %c0_176, %c0_177], %349 {strides = array<i32>} : memref<8x8x512xf32, #tpu.memory_space<vmem>>, vector<1x8x512xf32>,
    %350 = vector.extract_strided_slice %337 {offsets = [16, 0], sizes = [8, 512], strides = [1, 1]} : vector<64x512xf32> to vector<8x512xf32>
    %351 = vector.extract_strided_slice %337 {offsets = [40, 0], sizes = [8, 512], strides = [1, 1]} : vector<64x512xf32> to vector<8x512xf32>
    %352 = arith.select %28, %350, %351 : vector<8x512xi1>, vector<8x512xf32>
    %c2_178 = arith.constant 2 : index
    %c0_179 = arith.constant 0 : index
    %c0_180 = arith.constant 0 : index
    %353 = vector.load %arg11[%c2_178, %c0_179, %c0_180] : memref<8x8x512xf32, #tpu.memory_space<vmem>>, vector<1x8x512xf32>
    %354 = vector.shape_cast %353 : vector<1x8x512xf32> to vector<8x512xf32>
    %355 = vector.shape_cast %352 : vector<8x512xf32> to vector<1x8x512xf32>
    tpu.vector_store %arg11[%c2_178, %c0_179, %c0_180], %355 {strides = array<i32>} : memref<8x8x512xf32, #tpu.memory_space<vmem>>, vector<1x8x512xf32>,
    %356 = vector.extract_strided_slice %337 {offsets = [24, 0], sizes = [8, 512], strides = [1, 1]} : vector<64x512xf32> to vector<8x512xf32>
    %357 = vector.extract_strided_slice %337 {offsets = [32, 0], sizes = [8, 512], strides = [1, 1]} : vector<64x512xf32> to vector<8x512xf32>
    %358 = arith.select %28, %356, %357 : vector<8x512xi1>, vector<8x512xf32>
    %c3_181 = arith.constant 3 : index
    %c0_182 = arith.constant 0 : index
    %c0_183 = arith.constant 0 : index
    %359 = vector.load %arg11[%c3_181, %c0_182, %c0_183] : memref<8x8x512xf32, #tpu.memory_space<vmem>>, vector<1x8x512xf32>
    %360 = vector.shape_cast %359 : vector<1x8x512xf32> to vector<8x512xf32>
    %361 = vector.shape_cast %358 : vector<8x512xf32> to vector<1x8x512xf32>
    tpu.vector_store %arg11[%c3_181, %c0_182, %c0_183], %361 {strides = array<i32>} : memref<8x8x512xf32, #tpu.memory_space<vmem>>, vector<1x8x512xf32>,
    %362 = vector.extract_strided_slice %337 {offsets = [32, 0], sizes = [8, 512], strides = [1, 1]} : vector<64x512xf32> to vector<8x512xf32>
    %363 = vector.extract_strided_slice %337 {offsets = [24, 0], sizes = [8, 512], strides = [1, 1]} : vector<64x512xf32> to vector<8x512xf32>
    %364 = arith.select %28, %362, %363 : vector<8x512xi1>, vector<8x512xf32>
    %c4_184 = arith.constant 4 : index
    %c0_185 = arith.constant 0 : index
    %c0_186 = arith.constant 0 : index
    %365 = vector.load %arg11[%c4_184, %c0_185, %c0_186] : memref<8x8x512xf32, #tpu.memory_space<vmem>>, vector<1x8x512xf32>
    %366 = vector.shape_cast %365 : vector<1x8x512xf32> to vector<8x512xf32>
    %367 = vector.shape_cast %364 : vector<8x512xf32> to vector<1x8x512xf32>
    tpu.vector_store %arg11[%c4_184, %c0_185, %c0_186], %367 {strides = array<i32>} : memref<8x8x512xf32, #tpu.memory_space<vmem>>, vector<1x8x512xf32>,
    %368 = vector.extract_strided_slice %337 {offsets = [40, 0], sizes = [8, 512], strides = [1, 1]} : vector<64x512xf32> to vector<8x512xf32>
    %369 = vector.extract_strided_slice %337 {offsets = [16, 0], sizes = [8, 512], strides = [1, 1]} : vector<64x512xf32> to vector<8x512xf32>
    %370 = arith.select %28, %368, %369 : vector<8x512xi1>, vector<8x512xf32>
    %c5_187 = arith.constant 5 : index
    %c0_188 = arith.constant 0 : index
    %c0_189 = arith.constant 0 : index
    %371 = vector.load %arg11[%c5_187, %c0_188, %c0_189] : memref<8x8x512xf32, #tpu.memory_space<vmem>>, vector<1x8x512xf32>
    %372 = vector.shape_cast %371 : vector<1x8x512xf32> to vector<8x512xf32>
    %373 = vector.shape_cast %370 : vector<8x512xf32> to vector<1x8x512xf32>
    tpu.vector_store %arg11[%c5_187, %c0_188, %c0_189], %373 {strides = array<i32>} : memref<8x8x512xf32, #tpu.memory_space<vmem>>, vector<1x8x512xf32>,
    %374 = vector.extract_strided_slice %337 {offsets = [48, 0], sizes = [8, 512], strides = [1, 1]} : vector<64x512xf32> to vector<8x512xf32>
    %375 = vector.extract_strided_slice %337 {offsets = [8, 0], sizes = [8, 512], strides = [1, 1]} : vector<64x512xf32> to vector<8x512xf32>
    %376 = arith.select %28, %374, %375 : vector<8x512xi1>, vector<8x512xf32>
    %c6_190 = arith.constant 6 : index
    %c0_191 = arith.constant 0 : index
    %c0_192 = arith.constant 0 : index
    %377 = vector.load %arg11[%c6_190, %c0_191, %c0_192] : memref<8x8x512xf32, #tpu.memory_space<vmem>>, vector<1x8x512xf32>
    %378 = vector.shape_cast %377 : vector<1x8x512xf32> to vector<8x512xf32>
    %379 = vector.shape_cast %376 : vector<8x512xf32> to vector<1x8x512xf32>
    tpu.vector_store %arg11[%c6_190, %c0_191, %c0_192], %379 {strides = array<i32>} : memref<8x8x512xf32, #tpu.memory_space<vmem>>, vector<1x8x512xf32>,
    %380 = vector.extract_strided_slice %337 {offsets = [56, 0], sizes = [8, 512], strides = [1, 1]} : vector<64x512xf32> to vector<8x512xf32>
    %381 = vector.extract_strided_slice %337 {offsets = [0, 0], sizes = [8, 512], strides = [1, 1]} : vector<64x512xf32> to vector<8x512xf32>
    %382 = arith.select %28, %380, %381 : vector<8x512xi1>, vector<8x512xf32>
    %c7_193 = arith.constant 7 : index
    %c0_194 = arith.constant 0 : index
    %c0_195 = arith.constant 0 : index
    %383 = vector.load %arg11[%c7_193, %c0_194, %c0_195] : memref<8x8x512xf32, #tpu.memory_space<vmem>>, vector<1x8x512xf32>
    %384 = vector.shape_cast %383 : vector<1x8x512xf32> to vector<8x512xf32>
    %385 = vector.shape_cast %382 : vector<8x512xf32> to vector<1x8x512xf32>
    tpu.vector_store %arg11[%c7_193, %c0_194, %c0_195], %385 {strides = array<i32>} : memref<8x8x512xf32, #tpu.memory_space<vmem>>, vector<1x8x512xf32>,
    %cst_196 = arith.constant 0.000000e+00 : f32
    %386 = vector.broadcast %cst_196 : f32 to vector<8x128xf32>
    %cst_197 = arith.constant 0.000000e+00 : f32
    %387 = vector.broadcast %cst_197 : f32 to vector<8x128xf32>
    %c0_198 = arith.constant 0 : index
    %c0_199 = arith.constant 0 : index
    %c0_200 = arith.constant 0 : index
    %388 = vector.load %arg11[%c0_198, %c0_199, %c0_200] : memref<8x8x512xf32, #tpu.memory_space<vmem>>, vector<1x8x512xf32>
    %389 = vector.shape_cast %388 : vector<1x8x512xf32> to vector<8x512xf32>
    %390 = arith.truncf %386 : vector<8x128xf32> to vector<8x128xbf16>
    %c0_201 = arith.constant 0 : index
    %c0_202 = arith.constant 0 : index
    %391 = vector.load %arg6[%c0_201, %c0_202] : memref<128x512xbf16, #tpu.memory_space<vmem>>, vector<128x512xbf16>
    %cst_203 = arith.constant dense<0.000000e+00> : vector<8x512xf32>
    %392 = tpu.matmul %390, %391, %cst_203 {dimension_numbers = #tpu.dot_dimension_numbers<[1], [0], [0], [1], [0, 0, 1, 1], [], []>} : vector<8x128xbf16>, vector<128x512xbf16>, vector<8x512xf32> -> vector<8x512xf32>
    %393 = arith.addf %389, %392 : vector<8x512xf32>
    %394 = vector.extract_strided_slice %393 {offsets = [0, 0], sizes = [8, 384], strides = [1, 1]} : vector<8x512xf32> to vector<8x384xf32>
    %395 = arith.negf %394 : vector<8x384xf32>
    %396 = math.exp %395 : vector<8x384xf32>
    %cst_204 = arith.constant 1.000000e+00 : f32
    %397 = vector.broadcast %cst_204 : f32 to vector<8x384xf32>
    %398 = arith.addf %397, %396 : vector<8x384xf32>
    %399 = arith.divf %397, %398 : vector<8x384xf32>
    %400 = vector.extract_strided_slice %399 {offsets = [0, 0], sizes = [8, 128], strides = [1, 1]} : vector<8x384xf32> to vector<8x128xf32>
    %401 = vector.extract_strided_slice %399 {offsets = [0, 128], sizes = [8, 128], strides = [1, 1]} : vector<8x384xf32> to vector<8x128xf32>
    %402 = vector.extract_strided_slice %399 {offsets = [0, 256], sizes = [8, 128], strides = [1, 1]} : vector<8x384xf32> to vector<8x128xf32>
    %403 = vector.extract_strided_slice %393 {offsets = [0, 384], sizes = [8, 128], strides = [1, 1]} : vector<8x512xf32> to vector<8x128xf32>
    %404 = math.tanh %403 : vector<8x128xf32>
    %405 = arith.mulf %401, %387 : vector<8x128xf32>
    %406 = arith.mulf %400, %404 : vector<8x128xf32>
    %407 = arith.addf %405, %406 : vector<8x128xf32>
    %408 = math.tanh %407 : vector<8x128xf32>
    %409 = arith.mulf %402, %408 : vector<8x128xf32>
    %c0_205 = arith.constant 0 : index
    %c0_206 = arith.constant 0 : index
    %c0_207 = arith.constant 0 : index
    %410 = vector.load %arg12[%c0_205, %c0_206, %c0_207] : memref<8x8x128xf32, #tpu.memory_space<vmem>>, vector<1x8x128xf32>
    %411 = vector.shape_cast %410 : vector<1x8x128xf32> to vector<8x128xf32>
    %412 = vector.shape_cast %409 : vector<8x128xf32> to vector<1x8x128xf32>
    tpu.vector_store %arg12[%c0_205, %c0_206, %c0_207], %412 {strides = array<i32>} : memref<8x8x128xf32, #tpu.memory_space<vmem>>, vector<1x8x128xf32>,
    %c1_208 = arith.constant 1 : index
    %c0_209 = arith.constant 0 : index
    %c0_210 = arith.constant 0 : index
    %413 = vector.load %arg11[%c1_208, %c0_209, %c0_210] : memref<8x8x512xf32, #tpu.memory_space<vmem>>, vector<1x8x512xf32>
    %414 = vector.shape_cast %413 : vector<1x8x512xf32> to vector<8x512xf32>
    %415 = arith.truncf %409 : vector<8x128xf32> to vector<8x128xbf16>
    %c0_211 = arith.constant 0 : index
    %c0_212 = arith.constant 0 : index
    %416 = vector.load %arg6[%c0_211, %c0_212] : memref<128x512xbf16, #tpu.memory_space<vmem>>, vector<128x512xbf16>
    %cst_213 = arith.constant dense<0.000000e+00> : vector<8x512xf32>
    %417 = tpu.matmul %415, %416, %cst_213 {dimension_numbers = #tpu.dot_dimension_numbers<[1], [0], [0], [1], [0, 0, 1, 1], [], []>} : vector<8x128xbf16>, vector<128x512xbf16>, vector<8x512xf32> -> vector<8x512xf32>
    %418 = arith.addf %414, %417 : vector<8x512xf32>
    %419 = vector.extract_strided_slice %418 {offsets = [0, 0], sizes = [8, 384], strides = [1, 1]} : vector<8x512xf32> to vector<8x384xf32>
    %420 = arith.negf %419 : vector<8x384xf32>
    %421 = math.exp %420 : vector<8x384xf32>
    %cst_214 = arith.constant 1.000000e+00 : f32
    %422 = vector.broadcast %cst_214 : f32 to vector<8x384xf32>
    %423 = arith.addf %422, %421 : vector<8x384xf32>
    %424 = arith.divf %422, %423 : vector<8x384xf32>
    %425 = vector.extract_strided_slice %424 {offsets = [0, 0], sizes = [8, 128], strides = [1, 1]} : vector<8x384xf32> to vector<8x128xf32>
    %426 = vector.extract_strided_slice %424 {offsets = [0, 128], sizes = [8, 128], strides = [1, 1]} : vector<8x384xf32> to vector<8x128xf32>
    %427 = vector.extract_strided_slice %424 {offsets = [0, 256], sizes = [8, 128], strides = [1, 1]} : vector<8x384xf32> to vector<8x128xf32>
    %428 = vector.extract_strided_slice %418 {offsets = [0, 384], sizes = [8, 128], strides = [1, 1]} : vector<8x512xf32> to vector<8x128xf32>
    %429 = math.tanh %428 : vector<8x128xf32>
    %430 = arith.mulf %426, %407 : vector<8x128xf32>
    %431 = arith.mulf %425, %429 : vector<8x128xf32>
    %432 = arith.addf %430, %431 : vector<8x128xf32>
    %433 = math.tanh %432 : vector<8x128xf32>
    %434 = arith.mulf %427, %433 : vector<8x128xf32>
    %c1_215 = arith.constant 1 : index
    %c0_216 = arith.constant 0 : index
    %c0_217 = arith.constant 0 : index
    %435 = vector.load %arg12[%c1_215, %c0_216, %c0_217] : memref<8x8x128xf32, #tpu.memory_space<vmem>>, vector<1x8x128xf32>
    %436 = vector.shape_cast %435 : vector<1x8x128xf32> to vector<8x128xf32>
    %437 = vector.shape_cast %434 : vector<8x128xf32> to vector<1x8x128xf32>
    tpu.vector_store %arg12[%c1_215, %c0_216, %c0_217], %437 {strides = array<i32>} : memref<8x8x128xf32, #tpu.memory_space<vmem>>, vector<1x8x128xf32>,
    %c2_218 = arith.constant 2 : index
    %c0_219 = arith.constant 0 : index
    %c0_220 = arith.constant 0 : index
    %438 = vector.load %arg11[%c2_218, %c0_219, %c0_220] : memref<8x8x512xf32, #tpu.memory_space<vmem>>, vector<1x8x512xf32>
    %439 = vector.shape_cast %438 : vector<1x8x512xf32> to vector<8x512xf32>
    %440 = arith.truncf %434 : vector<8x128xf32> to vector<8x128xbf16>
    %c0_221 = arith.constant 0 : index
    %c0_222 = arith.constant 0 : index
    %441 = vector.load %arg6[%c0_221, %c0_222] : memref<128x512xbf16, #tpu.memory_space<vmem>>, vector<128x512xbf16>
    %cst_223 = arith.constant dense<0.000000e+00> : vector<8x512xf32>
    %442 = tpu.matmul %440, %441, %cst_223 {dimension_numbers = #tpu.dot_dimension_numbers<[1], [0], [0], [1], [0, 0, 1, 1], [], []>} : vector<8x128xbf16>, vector<128x512xbf16>, vector<8x512xf32> -> vector<8x512xf32>
    %443 = arith.addf %439, %442 : vector<8x512xf32>
    %444 = vector.extract_strided_slice %443 {offsets = [0, 0], sizes = [8, 384], strides = [1, 1]} : vector<8x512xf32> to vector<8x384xf32>
    %445 = arith.negf %444 : vector<8x384xf32>
    %446 = math.exp %445 : vector<8x384xf32>
    %cst_224 = arith.constant 1.000000e+00 : f32
    %447 = vector.broadcast %cst_224 : f32 to vector<8x384xf32>
    %448 = arith.addf %447, %446 : vector<8x384xf32>
    %449 = arith.divf %447, %448 : vector<8x384xf32>
    %450 = vector.extract_strided_slice %449 {offsets = [0, 0], sizes = [8, 128], strides = [1, 1]} : vector<8x384xf32> to vector<8x128xf32>
    %451 = vector.extract_strided_slice %449 {offsets = [0, 128], sizes = [8, 128], strides = [1, 1]} : vector<8x384xf32> to vector<8x128xf32>
    %452 = vector.extract_strided_slice %449 {offsets = [0, 256], sizes = [8, 128], strides = [1, 1]} : vector<8x384xf32> to vector<8x128xf32>
    %453 = vector.extract_strided_slice %443 {offsets = [0, 384], sizes = [8, 128], strides = [1, 1]} : vector<8x512xf32> to vector<8x128xf32>
    %454 = math.tanh %453 : vector<8x128xf32>
    %455 = arith.mulf %451, %432 : vector<8x128xf32>
    %456 = arith.mulf %450, %454 : vector<8x128xf32>
    %457 = arith.addf %455, %456 : vector<8x128xf32>
    %458 = math.tanh %457 : vector<8x128xf32>
    %459 = arith.mulf %452, %458 : vector<8x128xf32>
    %c2_225 = arith.constant 2 : index
    %c0_226 = arith.constant 0 : index
    %c0_227 = arith.constant 0 : index
    %460 = vector.load %arg12[%c2_225, %c0_226, %c0_227] : memref<8x8x128xf32, #tpu.memory_space<vmem>>, vector<1x8x128xf32>
    %461 = vector.shape_cast %460 : vector<1x8x128xf32> to vector<8x128xf32>
    %462 = vector.shape_cast %459 : vector<8x128xf32> to vector<1x8x128xf32>
    tpu.vector_store %arg12[%c2_225, %c0_226, %c0_227], %462 {strides = array<i32>} : memref<8x8x128xf32, #tpu.memory_space<vmem>>, vector<1x8x128xf32>,
    %c3_228 = arith.constant 3 : index
    %c0_229 = arith.constant 0 : index
    %c0_230 = arith.constant 0 : index
    %463 = vector.load %arg11[%c3_228, %c0_229, %c0_230] : memref<8x8x512xf32, #tpu.memory_space<vmem>>, vector<1x8x512xf32>
    %464 = vector.shape_cast %463 : vector<1x8x512xf32> to vector<8x512xf32>
    %465 = arith.truncf %459 : vector<8x128xf32> to vector<8x128xbf16>
    %c0_231 = arith.constant 0 : index
    %c0_232 = arith.constant 0 : index
    %466 = vector.load %arg6[%c0_231, %c0_232] : memref<128x512xbf16, #tpu.memory_space<vmem>>, vector<128x512xbf16>
    %cst_233 = arith.constant dense<0.000000e+00> : vector<8x512xf32>
    %467 = tpu.matmul %465, %466, %cst_233 {dimension_numbers = #tpu.dot_dimension_numbers<[1], [0], [0], [1], [0, 0, 1, 1], [], []>} : vector<8x128xbf16>, vector<128x512xbf16>, vector<8x512xf32> -> vector<8x512xf32>
    %468 = arith.addf %464, %467 : vector<8x512xf32>
    %469 = vector.extract_strided_slice %468 {offsets = [0, 0], sizes = [8, 384], strides = [1, 1]} : vector<8x512xf32> to vector<8x384xf32>
    %470 = arith.negf %469 : vector<8x384xf32>
    %471 = math.exp %470 : vector<8x384xf32>
    %cst_234 = arith.constant 1.000000e+00 : f32
    %472 = vector.broadcast %cst_234 : f32 to vector<8x384xf32>
    %473 = arith.addf %472, %471 : vector<8x384xf32>
    %474 = arith.divf %472, %473 : vector<8x384xf32>
    %475 = vector.extract_strided_slice %474 {offsets = [0, 0], sizes = [8, 128], strides = [1, 1]} : vector<8x384xf32> to vector<8x128xf32>
    %476 = vector.extract_strided_slice %474 {offsets = [0, 128], sizes = [8, 128], strides = [1, 1]} : vector<8x384xf32> to vector<8x128xf32>
    %477 = vector.extract_strided_slice %474 {offsets = [0, 256], sizes = [8, 128], strides = [1, 1]} : vector<8x384xf32> to vector<8x128xf32>
    %478 = vector.extract_strided_slice %468 {offsets = [0, 384], sizes = [8, 128], strides = [1, 1]} : vector<8x512xf32> to vector<8x128xf32>
    %479 = math.tanh %478 : vector<8x128xf32>
    %480 = arith.mulf %476, %457 : vector<8x128xf32>
    %481 = arith.mulf %475, %479 : vector<8x128xf32>
    %482 = arith.addf %480, %481 : vector<8x128xf32>
    %483 = math.tanh %482 : vector<8x128xf32>
    %484 = arith.mulf %477, %483 : vector<8x128xf32>
    %c3_235 = arith.constant 3 : index
    %c0_236 = arith.constant 0 : index
    %c0_237 = arith.constant 0 : index
    %485 = vector.load %arg12[%c3_235, %c0_236, %c0_237] : memref<8x8x128xf32, #tpu.memory_space<vmem>>, vector<1x8x128xf32>
    %486 = vector.shape_cast %485 : vector<1x8x128xf32> to vector<8x128xf32>
    %487 = vector.shape_cast %484 : vector<8x128xf32> to vector<1x8x128xf32>
    tpu.vector_store %arg12[%c3_235, %c0_236, %c0_237], %487 {strides = array<i32>} : memref<8x8x128xf32, #tpu.memory_space<vmem>>, vector<1x8x128xf32>,
    %c4_238 = arith.constant 4 : index
    %c0_239 = arith.constant 0 : index
    %c0_240 = arith.constant 0 : index
    %488 = vector.load %arg11[%c4_238, %c0_239, %c0_240] : memref<8x8x512xf32, #tpu.memory_space<vmem>>, vector<1x8x512xf32>
    %489 = vector.shape_cast %488 : vector<1x8x512xf32> to vector<8x512xf32>
    %490 = arith.truncf %484 : vector<8x128xf32> to vector<8x128xbf16>
    %c0_241 = arith.constant 0 : index
    %c0_242 = arith.constant 0 : index
    %491 = vector.load %arg6[%c0_241, %c0_242] : memref<128x512xbf16, #tpu.memory_space<vmem>>, vector<128x512xbf16>
    %cst_243 = arith.constant dense<0.000000e+00> : vector<8x512xf32>
    %492 = tpu.matmul %490, %491, %cst_243 {dimension_numbers = #tpu.dot_dimension_numbers<[1], [0], [0], [1], [0, 0, 1, 1], [], []>} : vector<8x128xbf16>, vector<128x512xbf16>, vector<8x512xf32> -> vector<8x512xf32>
    %493 = arith.addf %489, %492 : vector<8x512xf32>
    %494 = vector.extract_strided_slice %493 {offsets = [0, 0], sizes = [8, 384], strides = [1, 1]} : vector<8x512xf32> to vector<8x384xf32>
    %495 = arith.negf %494 : vector<8x384xf32>
    %496 = math.exp %495 : vector<8x384xf32>
    %cst_244 = arith.constant 1.000000e+00 : f32
    %497 = vector.broadcast %cst_244 : f32 to vector<8x384xf32>
    %498 = arith.addf %497, %496 : vector<8x384xf32>
    %499 = arith.divf %497, %498 : vector<8x384xf32>
    %500 = vector.extract_strided_slice %499 {offsets = [0, 0], sizes = [8, 128], strides = [1, 1]} : vector<8x384xf32> to vector<8x128xf32>
    %501 = vector.extract_strided_slice %499 {offsets = [0, 128], sizes = [8, 128], strides = [1, 1]} : vector<8x384xf32> to vector<8x128xf32>
    %502 = vector.extract_strided_slice %499 {offsets = [0, 256], sizes = [8, 128], strides = [1, 1]} : vector<8x384xf32> to vector<8x128xf32>
    %503 = vector.extract_strided_slice %493 {offsets = [0, 384], sizes = [8, 128], strides = [1, 1]} : vector<8x512xf32> to vector<8x128xf32>
    %504 = math.tanh %503 : vector<8x128xf32>
    %505 = arith.mulf %501, %482 : vector<8x128xf32>
    %506 = arith.mulf %500, %504 : vector<8x128xf32>
    %507 = arith.addf %505, %506 : vector<8x128xf32>
    %508 = math.tanh %507 : vector<8x128xf32>
    %509 = arith.mulf %502, %508 : vector<8x128xf32>
    %c4_245 = arith.constant 4 : index
    %c0_246 = arith.constant 0 : index
    %c0_247 = arith.constant 0 : index
    %510 = vector.load %arg12[%c4_245, %c0_246, %c0_247] : memref<8x8x128xf32, #tpu.memory_space<vmem>>, vector<1x8x128xf32>
    %511 = vector.shape_cast %510 : vector<1x8x128xf32> to vector<8x128xf32>
    %512 = vector.shape_cast %509 : vector<8x128xf32> to vector<1x8x128xf32>
    tpu.vector_store %arg12[%c4_245, %c0_246, %c0_247], %512 {strides = array<i32>} : memref<8x8x128xf32, #tpu.memory_space<vmem>>, vector<1x8x128xf32>,
    %c5_248 = arith.constant 5 : index
    %c0_249 = arith.constant 0 : index
    %c0_250 = arith.constant 0 : index
    %513 = vector.load %arg11[%c5_248, %c0_249, %c0_250] : memref<8x8x512xf32, #tpu.memory_space<vmem>>, vector<1x8x512xf32>
    %514 = vector.shape_cast %513 : vector<1x8x512xf32> to vector<8x512xf32>
    %515 = arith.truncf %509 : vector<8x128xf32> to vector<8x128xbf16>
    %c0_251 = arith.constant 0 : index
    %c0_252 = arith.constant 0 : index
    %516 = vector.load %arg6[%c0_251, %c0_252] : memref<128x512xbf16, #tpu.memory_space<vmem>>, vector<128x512xbf16>
    %cst_253 = arith.constant dense<0.000000e+00> : vector<8x512xf32>
    %517 = tpu.matmul %515, %516, %cst_253 {dimension_numbers = #tpu.dot_dimension_numbers<[1], [0], [0], [1], [0, 0, 1, 1], [], []>} : vector<8x128xbf16>, vector<128x512xbf16>, vector<8x512xf32> -> vector<8x512xf32>
    %518 = arith.addf %514, %517 : vector<8x512xf32>
    %519 = vector.extract_strided_slice %518 {offsets = [0, 0], sizes = [8, 384], strides = [1, 1]} : vector<8x512xf32> to vector<8x384xf32>
    %520 = arith.negf %519 : vector<8x384xf32>
    %521 = math.exp %520 : vector<8x384xf32>
    %cst_254 = arith.constant 1.000000e+00 : f32
    %522 = vector.broadcast %cst_254 : f32 to vector<8x384xf32>
    %523 = arith.addf %522, %521 : vector<8x384xf32>
    %524 = arith.divf %522, %523 : vector<8x384xf32>
    %525 = vector.extract_strided_slice %524 {offsets = [0, 0], sizes = [8, 128], strides = [1, 1]} : vector<8x384xf32> to vector<8x128xf32>
    %526 = vector.extract_strided_slice %524 {offsets = [0, 128], sizes = [8, 128], strides = [1, 1]} : vector<8x384xf32> to vector<8x128xf32>
    %527 = vector.extract_strided_slice %524 {offsets = [0, 256], sizes = [8, 128], strides = [1, 1]} : vector<8x384xf32> to vector<8x128xf32>
    %528 = vector.extract_strided_slice %518 {offsets = [0, 384], sizes = [8, 128], strides = [1, 1]} : vector<8x512xf32> to vector<8x128xf32>
    %529 = math.tanh %528 : vector<8x128xf32>
    %530 = arith.mulf %526, %507 : vector<8x128xf32>
    %531 = arith.mulf %525, %529 : vector<8x128xf32>
    %532 = arith.addf %530, %531 : vector<8x128xf32>
    %533 = math.tanh %532 : vector<8x128xf32>
    %534 = arith.mulf %527, %533 : vector<8x128xf32>
    %c5_255 = arith.constant 5 : index
    %c0_256 = arith.constant 0 : index
    %c0_257 = arith.constant 0 : index
    %535 = vector.load %arg12[%c5_255, %c0_256, %c0_257] : memref<8x8x128xf32, #tpu.memory_space<vmem>>, vector<1x8x128xf32>
    %536 = vector.shape_cast %535 : vector<1x8x128xf32> to vector<8x128xf32>
    %537 = vector.shape_cast %534 : vector<8x128xf32> to vector<1x8x128xf32>
    tpu.vector_store %arg12[%c5_255, %c0_256, %c0_257], %537 {strides = array<i32>} : memref<8x8x128xf32, #tpu.memory_space<vmem>>, vector<1x8x128xf32>,
    %c6_258 = arith.constant 6 : index
    %c0_259 = arith.constant 0 : index
    %c0_260 = arith.constant 0 : index
    %538 = vector.load %arg11[%c6_258, %c0_259, %c0_260] : memref<8x8x512xf32, #tpu.memory_space<vmem>>, vector<1x8x512xf32>
    %539 = vector.shape_cast %538 : vector<1x8x512xf32> to vector<8x512xf32>
    %540 = arith.truncf %534 : vector<8x128xf32> to vector<8x128xbf16>
    %c0_261 = arith.constant 0 : index
    %c0_262 = arith.constant 0 : index
    %541 = vector.load %arg6[%c0_261, %c0_262] : memref<128x512xbf16, #tpu.memory_space<vmem>>, vector<128x512xbf16>
    %cst_263 = arith.constant dense<0.000000e+00> : vector<8x512xf32>
    %542 = tpu.matmul %540, %541, %cst_263 {dimension_numbers = #tpu.dot_dimension_numbers<[1], [0], [0], [1], [0, 0, 1, 1], [], []>} : vector<8x128xbf16>, vector<128x512xbf16>, vector<8x512xf32> -> vector<8x512xf32>
    %543 = arith.addf %539, %542 : vector<8x512xf32>
    %544 = vector.extract_strided_slice %543 {offsets = [0, 0], sizes = [8, 384], strides = [1, 1]} : vector<8x512xf32> to vector<8x384xf32>
    %545 = arith.negf %544 : vector<8x384xf32>
    %546 = math.exp %545 : vector<8x384xf32>
    %cst_264 = arith.constant 1.000000e+00 : f32
    %547 = vector.broadcast %cst_264 : f32 to vector<8x384xf32>
    %548 = arith.addf %547, %546 : vector<8x384xf32>
    %549 = arith.divf %547, %548 : vector<8x384xf32>
    %550 = vector.extract_strided_slice %549 {offsets = [0, 0], sizes = [8, 128], strides = [1, 1]} : vector<8x384xf32> to vector<8x128xf32>
    %551 = vector.extract_strided_slice %549 {offsets = [0, 128], sizes = [8, 128], strides = [1, 1]} : vector<8x384xf32> to vector<8x128xf32>
    %552 = vector.extract_strided_slice %549 {offsets = [0, 256], sizes = [8, 128], strides = [1, 1]} : vector<8x384xf32> to vector<8x128xf32>
    %553 = vector.extract_strided_slice %543 {offsets = [0, 384], sizes = [8, 128], strides = [1, 1]} : vector<8x512xf32> to vector<8x128xf32>
    %554 = math.tanh %553 : vector<8x128xf32>
    %555 = arith.mulf %551, %532 : vector<8x128xf32>
    %556 = arith.mulf %550, %554 : vector<8x128xf32>
    %557 = arith.addf %555, %556 : vector<8x128xf32>
    %558 = math.tanh %557 : vector<8x128xf32>
    %559 = arith.mulf %552, %558 : vector<8x128xf32>
    %c6_265 = arith.constant 6 : index
    %c0_266 = arith.constant 0 : index
    %c0_267 = arith.constant 0 : index
    %560 = vector.load %arg12[%c6_265, %c0_266, %c0_267] : memref<8x8x128xf32, #tpu.memory_space<vmem>>, vector<1x8x128xf32>
    %561 = vector.shape_cast %560 : vector<1x8x128xf32> to vector<8x128xf32>
    %562 = vector.shape_cast %559 : vector<8x128xf32> to vector<1x8x128xf32>
    tpu.vector_store %arg12[%c6_265, %c0_266, %c0_267], %562 {strides = array<i32>} : memref<8x8x128xf32, #tpu.memory_space<vmem>>, vector<1x8x128xf32>,
    %c7_268 = arith.constant 7 : index
    %c0_269 = arith.constant 0 : index
    %c0_270 = arith.constant 0 : index
    %563 = vector.load %arg11[%c7_268, %c0_269, %c0_270] : memref<8x8x512xf32, #tpu.memory_space<vmem>>, vector<1x8x512xf32>
    %564 = vector.shape_cast %563 : vector<1x8x512xf32> to vector<8x512xf32>
    %565 = arith.truncf %559 : vector<8x128xf32> to vector<8x128xbf16>
    %c0_271 = arith.constant 0 : index
    %c0_272 = arith.constant 0 : index
    %566 = vector.load %arg6[%c0_271, %c0_272] : memref<128x512xbf16, #tpu.memory_space<vmem>>, vector<128x512xbf16>
    %cst_273 = arith.constant dense<0.000000e+00> : vector<8x512xf32>
    %567 = tpu.matmul %565, %566, %cst_273 {dimension_numbers = #tpu.dot_dimension_numbers<[1], [0], [0], [1], [0, 0, 1, 1], [], []>} : vector<8x128xbf16>, vector<128x512xbf16>, vector<8x512xf32> -> vector<8x512xf32>
    %568 = arith.addf %564, %567 : vector<8x512xf32>
    %569 = vector.extract_strided_slice %568 {offsets = [0, 0], sizes = [8, 384], strides = [1, 1]} : vector<8x512xf32> to vector<8x384xf32>
    %570 = arith.negf %569 : vector<8x384xf32>
    %571 = math.exp %570 : vector<8x384xf32>
    %cst_274 = arith.constant 1.000000e+00 : f32
    %572 = vector.broadcast %cst_274 : f32 to vector<8x384xf32>
    %573 = arith.addf %572, %571 : vector<8x384xf32>
    %574 = arith.divf %572, %573 : vector<8x384xf32>
    %575 = vector.extract_strided_slice %574 {offsets = [0, 0], sizes = [8, 128], strides = [1, 1]} : vector<8x384xf32> to vector<8x128xf32>
    %576 = vector.extract_strided_slice %574 {offsets = [0, 128], sizes = [8, 128], strides = [1, 1]} : vector<8x384xf32> to vector<8x128xf32>
    %577 = vector.extract_strided_slice %574 {offsets = [0, 256], sizes = [8, 128], strides = [1, 1]} : vector<8x384xf32> to vector<8x128xf32>
    %578 = vector.extract_strided_slice %568 {offsets = [0, 384], sizes = [8, 128], strides = [1, 1]} : vector<8x512xf32> to vector<8x128xf32>
    %579 = math.tanh %578 : vector<8x128xf32>
    %580 = arith.mulf %576, %557 : vector<8x128xf32>
    %581 = arith.mulf %575, %579 : vector<8x128xf32>
    %582 = arith.addf %580, %581 : vector<8x128xf32>
    %583 = math.tanh %582 : vector<8x128xf32>
    %584 = arith.mulf %577, %583 : vector<8x128xf32>
    %c7_275 = arith.constant 7 : index
    %c0_276 = arith.constant 0 : index
    %c0_277 = arith.constant 0 : index
    %585 = vector.load %arg12[%c7_275, %c0_276, %c0_277] : memref<8x8x128xf32, #tpu.memory_space<vmem>>, vector<1x8x128xf32>
    %586 = vector.shape_cast %585 : vector<1x8x128xf32> to vector<8x128xf32>
    %587 = vector.shape_cast %584 : vector<8x128xf32> to vector<1x8x128xf32>
    tpu.vector_store %arg12[%c7_275, %c0_276, %c0_277], %587 {strides = array<i32>} : memref<8x8x128xf32, #tpu.memory_space<vmem>>, vector<1x8x128xf32>,
    %c0_278 = arith.constant 0 : index
    %c0_279 = arith.constant 0 : index
    %c0_280 = arith.constant 0 : index
    %588 = vector.load %arg12[%c0_278, %c0_279, %c0_280] : memref<8x8x128xf32, #tpu.memory_space<vmem>>, vector<1x8x128xf32>
    %589 = vector.shape_cast %588 : vector<1x8x128xf32> to vector<8x128xf32>
    %c7_281 = arith.constant 7 : index
    %c0_282 = arith.constant 0 : index
    %c0_283 = arith.constant 0 : index
    %590 = vector.load %arg12[%c7_281, %c0_282, %c0_283] : memref<8x8x128xf32, #tpu.memory_space<vmem>>, vector<1x8x128xf32>
    %591 = vector.shape_cast %590 : vector<1x8x128xf32> to vector<8x128xf32>
    %592 = arith.select %31, %589, %591 : vector<8x128xi1>, vector<8x128xf32>
    %c1_284 = arith.constant 1 : index
    %c0_285 = arith.constant 0 : index
    %c0_286 = arith.constant 0 : index
    %593 = vector.load %arg12[%c1_284, %c0_285, %c0_286] : memref<8x8x128xf32, #tpu.memory_space<vmem>>, vector<1x8x128xf32>
    %594 = vector.shape_cast %593 : vector<1x8x128xf32> to vector<8x128xf32>
    %c6_287 = arith.constant 6 : index
    %c0_288 = arith.constant 0 : index
    %c0_289 = arith.constant 0 : index
    %595 = vector.load %arg12[%c6_287, %c0_288, %c0_289] : memref<8x8x128xf32, #tpu.memory_space<vmem>>, vector<1x8x128xf32>
    %596 = vector.shape_cast %595 : vector<1x8x128xf32> to vector<8x128xf32>
    %597 = arith.select %31, %594, %596 : vector<8x128xi1>, vector<8x128xf32>
    %c2_290 = arith.constant 2 : index
    %c0_291 = arith.constant 0 : index
    %c0_292 = arith.constant 0 : index
    %598 = vector.load %arg12[%c2_290, %c0_291, %c0_292] : memref<8x8x128xf32, #tpu.memory_space<vmem>>, vector<1x8x128xf32>
    %599 = vector.shape_cast %598 : vector<1x8x128xf32> to vector<8x128xf32>
    %c5_293 = arith.constant 5 : index
    %c0_294 = arith.constant 0 : index
    %c0_295 = arith.constant 0 : index
    %600 = vector.load %arg12[%c5_293, %c0_294, %c0_295] : memref<8x8x128xf32, #tpu.memory_space<vmem>>, vector<1x8x128xf32>
    %601 = vector.shape_cast %600 : vector<1x8x128xf32> to vector<8x128xf32>
    %602 = arith.select %31, %599, %601 : vector<8x128xi1>, vector<8x128xf32>
    %c3_296 = arith.constant 3 : index
    %c0_297 = arith.constant 0 : index
    %c0_298 = arith.constant 0 : index
    %603 = vector.load %arg12[%c3_296, %c0_297, %c0_298] : memref<8x8x128xf32, #tpu.memory_space<vmem>>, vector<1x8x128xf32>
    %604 = vector.shape_cast %603 : vector<1x8x128xf32> to vector<8x128xf32>
    %c4_299 = arith.constant 4 : index
    %c0_300 = arith.constant 0 : index
    %c0_301 = arith.constant 0 : index
    %605 = vector.load %arg12[%c4_299, %c0_300, %c0_301] : memref<8x8x128xf32, #tpu.memory_space<vmem>>, vector<1x8x128xf32>
    %606 = vector.shape_cast %605 : vector<1x8x128xf32> to vector<8x128xf32>
    %607 = arith.select %31, %604, %606 : vector<8x128xi1>, vector<8x128xf32>
    %c4_302 = arith.constant 4 : index
    %c0_303 = arith.constant 0 : index
    %c0_304 = arith.constant 0 : index
    %608 = vector.load %arg12[%c4_302, %c0_303, %c0_304] : memref<8x8x128xf32, #tpu.memory_space<vmem>>, vector<1x8x128xf32>
    %609 = vector.shape_cast %608 : vector<1x8x128xf32> to vector<8x128xf32>
    %c3_305 = arith.constant 3 : index
    %c0_306 = arith.constant 0 : index
    %c0_307 = arith.constant 0 : index
    %610 = vector.load %arg12[%c3_305, %c0_306, %c0_307] : memref<8x8x128xf32, #tpu.memory_space<vmem>>, vector<1x8x128xf32>
    %611 = vector.shape_cast %610 : vector<1x8x128xf32> to vector<8x128xf32>
    %612 = arith.select %31, %609, %611 : vector<8x128xi1>, vector<8x128xf32>
    %c5_308 = arith.constant 5 : index
    %c0_309 = arith.constant 0 : index
    %c0_310 = arith.constant 0 : index
    %613 = vector.load %arg12[%c5_308, %c0_309, %c0_310] : memref<8x8x128xf32, #tpu.memory_space<vmem>>, vector<1x8x128xf32>
    %614 = vector.shape_cast %613 : vector<1x8x128xf32> to vector<8x128xf32>
    %c2_311 = arith.constant 2 : index
    %c0_312 = arith.constant 0 : index
    %c0_313 = arith.constant 0 : index
    %615 = vector.load %arg12[%c2_311, %c0_312, %c0_313] : memref<8x8x128xf32, #tpu.memory_space<vmem>>, vector<1x8x128xf32>
    %616 = vector.shape_cast %615 : vector<1x8x128xf32> to vector<8x128xf32>
    %617 = arith.select %31, %614, %616 : vector<8x128xi1>, vector<8x128xf32>
    %c6_314 = arith.constant 6 : index
    %c0_315 = arith.constant 0 : index
    %c0_316 = arith.constant 0 : index
    %618 = vector.load %arg12[%c6_314, %c0_315, %c0_316] : memref<8x8x128xf32, #tpu.memory_space<vmem>>, vector<1x8x128xf32>
    %619 = vector.shape_cast %618 : vector<1x8x128xf32> to vector<8x128xf32>
    %c1_317 = arith.constant 1 : index
    %c0_318 = arith.constant 0 : index
    %c0_319 = arith.constant 0 : index
    %620 = vector.load %arg12[%c1_317, %c0_318, %c0_319] : memref<8x8x128xf32, #tpu.memory_space<vmem>>, vector<1x8x128xf32>
    %621 = vector.shape_cast %620 : vector<1x8x128xf32> to vector<8x128xf32>
    %622 = arith.select %31, %619, %621 : vector<8x128xi1>, vector<8x128xf32>
    %c7_320 = arith.constant 7 : index
    %c0_321 = arith.constant 0 : index
    %c0_322 = arith.constant 0 : index
    %623 = vector.load %arg12[%c7_320, %c0_321, %c0_322] : memref<8x8x128xf32, #tpu.memory_space<vmem>>, vector<1x8x128xf32>
    %624 = vector.shape_cast %623 : vector<1x8x128xf32> to vector<8x128xf32>
    %c0_323 = arith.constant 0 : index
    %c0_324 = arith.constant 0 : index
    %c0_325 = arith.constant 0 : index
    %625 = vector.load %arg12[%c0_323, %c0_324, %c0_325] : memref<8x8x128xf32, #tpu.memory_space<vmem>>, vector<1x8x128xf32>
    %626 = vector.shape_cast %625 : vector<1x8x128xf32> to vector<8x128xf32>
    %627 = arith.select %31, %624, %626 : vector<8x128xi1>, vector<8x128xf32>
    %628 = tpu.concatenate %592, %597, %602, %607, %612, %617, %622, %627 in 0 : vector<8x128xf32>, vector<8x128xf32>, vector<8x128xf32>, vector<8x128xf32>, vector<8x128xf32>, vector<8x128xf32>, vector<8x128xf32>, vector<8x128xf32> -> vector<64x128xf32>
    %c0_326 = arith.constant 0 : index
    %c0_327 = arith.constant 0 : index
    %629 = vector.load %arg13[%c0_326, %c0_327] : memref<64x128xf32, #tpu.memory_space<vmem>>, vector<64x128xf32>
    %630 = arith.addf %629, %628 : vector<64x128xf32>
    %631 = arith.truncf %630 : vector<64x128xf32> to vector<64x128xbf16>
    %c0_328 = arith.constant 0 : index
    %c0_329 = arith.constant 0 : index
    %632 = vector.load %arg8[%c0_328, %c0_329] : memref<128x128xbf16, #tpu.memory_space<vmem>>, vector<128x128xbf16>
    %cst_330 = arith.constant dense<0.000000e+00> : vector<64x128xf32>
    %633 = tpu.matmul %631, %632, %cst_330 {dimension_numbers = #tpu.dot_dimension_numbers<[1], [0], [0], [1], [0, 0, 1, 1], [], []>} : vector<64x128xbf16>, vector<128x128xbf16>, vector<64x128xf32> -> vector<64x128xf32>
    %c0_331 = arith.constant 0 : index
    %c0_332 = arith.constant 0 : index
    %634 = vector.load %arg9[%c0_331, %c0_332] : memref<1x128xf32, #tpu.memory_space<vmem>>, vector<1x128xf32>
    %635 = vector.broadcast %634 : vector<1x128xf32> to vector<64x128xf32>
    %636 = arith.addf %633, %635 : vector<64x128xf32>
    %c0_333 = arith.constant 0 : index
    %c0_334 = arith.constant 0 : index
    %637 = vector.load %arg10[%c0_333, %c0_334] : memref<64x128xf32, #tpu.memory_space<vmem>>, vector<64x128xf32>
    tpu.vector_store %arg10[%c0_333, %c0_334], %636 {strides = array<i32>} : memref<64x128xf32, #tpu.memory_space<vmem>>, vector<64x128xf32>,
    return
  }
}

</mosaic_0001>

<bundles_post_ra>
// kernel: elmo_forward.1
= control target key start
LH: loop header
LB: loop body
LE: loop exit
PB: predicated region body
PF: predicated region fallthrough
CT: control target
= control target key end

     0   :  { %15 = vsyncpa [#allocation6], 0  ;;  %s9760_s0 = inlined_call_operand.vmem [shape: s32[64,1], index: 0, kind: input, shape index: {}]   ;;  %s9761_s1 = inlined_call_operand.hbm [shape: f32[128,128], index: 1, kind: input, shape index: {}]   ;;  %s9762_s2 = inlined_call_operand.hbm [shape: bf16[128,512], index: 2, kind: input, shape index: {}]   ;;  %s9763_s3 = inlined_call_operand.hbm [shape: bf16[128,512], index: 3, kind: input, shape index: {}]   ;;  %s9764_s4 = inlined_call_operand.vmem [shape: f32[1,512], index: 4, kind: input, shape index: {}]   ;;  %s9765_s5 = inlined_call_operand.hbm [shape: bf16[128,512], index: 5, kind: input, shape index: {}]   ;;  %s9766_s6 = inlined_call_operand.hbm [shape: bf16[128,512], index: 6, kind: input, shape index: {}]   ;;  %s9767_s7 = inlined_call_operand.vmem [shape: f32[1,512], index: 7, kind: input, shape index: {}]   ;;  %s9768_s8 = inlined_call_operand.vmem [shape: bf16[128,128], index: 8, kind: input, shape index: {}]   ;;  %s9769_s9 = inlined_call_operand.vmem [shape: f32[1,128], index: 9, kind: input, shape index: {}]   ;;  %s9770_s10 = inlined_call_operand.vmem [shape: f32[64,128], index: 10, kind: output, shape index: {}]  }
   0x1   :  { %16 = vsyncpa [#allocation8], 0 }
   0x2   :  { %17 = vsyncpa [#allocation11], 0  ;;  %s7778_s13 = smov [#allocation7]  }
   0x3   :  { %s37_s14 = sshll.u32 %s7778_s13, 4  ;;  %s38_s14 = int_to_ptr.vmem [resolvable:$true] %s37_s14 }
   0x4   :  { %s7680_s15 = scalar_lea.vmem %s38_s14, 4096  ;;  %p7685_p1 = scmp.lt.s32.totalorder %s38_s14, %s38_s14 }
   0x5   :  { %p7681_p0 = scmp.ne.s32.totalorder %s38_s14, %s7680_s15  ;;  %p7686_p2 = scmp.lt.s32.totalorder %s7680_s15, %s7680_s15 }
   0x7   :  { %p7687_p3 = por %p7686_p2, %p7685_p1 }
   0x9   :  { %p7688_p4 = pnand %p7687_p3, %p7681_p0 }
   0xb   :  { %7691 = shalt.err (!%p7688_p4)
}
   0xc   :  { %s7779_s16 = smov 256   ;;  %s7780_s17 = smov 16  }
   0xd   :  { %43 = dma.hbm_to_vmem [thread:$0]  %s9762_s2, 4096, %s38_s14, [#allocation8], %s7779_s16, %s7779_s16, %s7780_s17  }
   0xe   :  { %s7781_s20 = smov [#allocation10]   ;;  %s7782_s22 = smov [#allocation5]  }
   0xf   :  { %s63_s21 = sshll.u32 %s7781_s20, 4  ;;  %s25_s23 = sshll.u32 %s7782_s22, 4  ;;  %s64_s21 = int_to_ptr.vmem [resolvable:$true] %s63_s21  ;;  %s26_s23 = int_to_ptr.vmem [resolvable:$true] %s25_s23 }
  0x10   :  { %s7700_s24 = scalar_lea.vmem %s64_s21, 4096  ;;  %p7705_p6 = scmp.lt.s32.totalorder %s64_s21, %s64_s21 }
  0x11   :  { %p7701_p5 = scmp.ne.s32.totalorder %s64_s21, %s7700_s24  ;;  %p7706_p7 = scmp.lt.s32.totalorder %s7700_s24, %s7700_s24 }
  0x13   :  { %p7707_p8 = por %p7706_p7, %p7705_p6 }
  0x15   :  { %p7708_p9 = pnand %p7707_p8, %p7701_p5 }
  0x17   :  { %7711 = shalt.err (!%p7708_p9)
}
  0x18   :  { %69 = dma.hbm_to_vmem [thread:$0]  %s9765_s5, 4096, %s64_s21, [#allocation11], %s7779_s16, %s7779_s16, %s7780_s17  }
  0x19   :  { %s7720_s2 = scalar_lea.vmem %s26_s23, 2048  ;;  %p7725_p11 = scmp.lt.s32.totalorder %s26_s23, %s26_s23 }
  0x1a   :  { %p7721_p10 = scmp.ne.s32.totalorder %s26_s23, %s7720_s2  ;;  %p7726_p12 = scmp.lt.s32.totalorder %s7720_s2, %s7720_s2 }
  0x1c   :  { %p7727_p13 = por %p7726_p12, %p7725_p11 }
  0x1e   :  { %p7728_p0 = pnand %p7727_p13, %p7721_p10 }
  0x20   :  { %7731 = shalt.err (!%p7728_p0)
}
  0x21   :  { %s7783_s27 = smov 128   ;;  %s7784_s28 = smov 8  }
  0x22   :  { %31 = dma.hbm_to_vmem [thread:$0]  %s9761_s1, 2048, %s26_s23, [#allocation6], %s7783_s27, %s7783_s27, %s7784_s28  }
  0x23   :  { %s7785_s11 = smov [#allocation9]   ;;  %s7786_s13 = smov [#allocation12]  }
  0x24   :  { %s49_s12 = sshll.u32 %s7785_s11, 4  ;;  %s75_s14 = sshll.u32 %s7786_s13, 4  ;;  %s50_s12 = int_to_ptr.vmem [resolvable:$true] %s49_s12  ;;  %s76_s14 = int_to_ptr.vmem [resolvable:$true] %s75_s14 }
  0x25   :  { %s7740_s5 = scalar_lea.vmem %s50_s12, 4096  ;;  %p7745_p2 = scmp.lt.s32.totalorder %s50_s12, %s50_s12 }
  0x26   :  { %p7741_p1 = scmp.ne.s32.totalorder %s50_s12, %s7740_s5  ;;  %p7746_p3 = scmp.lt.s32.totalorder %s7740_s5, %s7740_s5 }
  0x28   :  { %p7747_p4 = por %p7746_p3, %p7745_p2 }
  0x2a   :  { %p7748_p5 = pnand %p7747_p4, %p7741_p1 }
  0x2c   :  { %7751 = shalt.err (!%p7748_p5)
}
  0x2d   :  { %55 = dma.hbm_to_vmem [thread:$0]  %s9763_s3, 4096, %s50_s12, [#allocation8], %s7779_s16, %s7779_s16, %s7780_s17  }
  0x2e   :  { %s7760_s1 = scalar_lea.vmem %s76_s14, 4096  ;;  %p7765_p7 = scmp.lt.s32.totalorder %s76_s14, %s76_s14 }
  0x2f   :  { %p7761_p6 = scmp.ne.s32.totalorder %s76_s14, %s7760_s1  ;;  %p7766_p8 = scmp.lt.s32.totalorder %s7760_s1, %s7760_s1 }
  0x31   :  { %p7767_p9 = por %p7766_p8, %p7765_p7 }
  0x33   :  { %p7768_p10 = pnand %p7767_p9, %p7761_p6 }
  0x35   :  { %7771 = shalt.err (!%p7768_p10)
}
  0x36   :  { %81 = dma.hbm_to_vmem [thread:$0]  %s9766_s6, 4096, %s76_s14, [#allocation11], %s7779_s16, %s7779_s16, %s7780_s17  }
  0x37   :  { %7772 = dma.done.wait [#allocation6], 2048  }
  0x38   :  { %7773 = vsyncadd [#allocation6], 4294965248 }
  0x39   :  { %7774 = dma.done.wait [#allocation8], 8192  }
  0x3a   :  { %7775 = vsyncadd [#allocation8], 4294959104 }
  0x3b   :  { %7776 = dma.done.wait [#allocation11], 8192  }
  0x3c   :  { %7777 = vsyncadd [#allocation11], 4294959104  ;;  %v9775_v0 = vmov 0   ;;  %v106_v1 = vld [vmem:[%s9760_s0 + $0x10] sm:$0xff]  ;;  %v104_v2 = vld [vmem:[%s9760_s0] sm:$0xff]  ;;  %v112_v40 = vlaneseq  ;;  %v7788_v44 = vmov 1.0  }
  0x3d   :  { %7119 = vset.pattern.permute.xlu1 %v9775_v0  ;;  %7118 = vset.pattern.permute.xlu0 %v9775_v0  ;;  %v107_v3 = vld [vmem:[%s9760_s0 + $0x18] sm:$0xff]  ;;  %v105_v4 = vld [vmem:[%s9760_s0 + $0x8] sm:$0xff]  ;;  %v168_v6 = vld [vmem:[#allocation5 + $0x70] sm:$0xff] }
  0x3e   :  { %589 = vmatprep.mubr.bf16.mxu1 %v9775_v0  ;;  %121 = vperm.xlu1 %7119, %v106_v1   ;;  %v169_v5 = vld [vmem:[#allocation5 + $0x78] sm:$0xff]  ;;  %v167_v7 = vld [vmem:[#allocation5 + $0x68] sm:$0xff]  ;;  %v108_v9 = vld [vmem:[%s9760_s0 + $0x20] sm:$0xff]  ;;  %v7899_v41 = vand.u32 127, %v112_v40 }
  0x3f   :  { %115 = vperm.xlu0 %7118, %v104_v2   ;;  %7039 = vmatprep.subr.mxu0 %v169_v5  ;;  %v109_v8 = vld [vmem:[%s9760_s0 + $0x28] sm:$0xff]  ;;  %v166_v10 = vld [vmem:[#allocation5 + $0x60] sm:$0xff]  ;;  %v111_v11 = vld [vmem:[%s9760_s0 + $0x38] sm:$0xff] }
  0x40   :  { %7040 = vmatpush3.msra.mxu0 %v169_v5  ;;  %v110_v12 = vld [vmem:[%s9760_s0 + $0x30] sm:$0xff]  ;;  %v165_v13 = vld [vmem:[#allocation5 + $0x58] sm:$0xff]  ;;  %v163_v17 = vld [vmem:[#allocation5 + $0x48] sm:$0xff]  ;;  %9880 = vst [vmem:[#allocation16_spill] sm:$0xff] %v7899_v41  ;;  %vm334_vm8 = vcmp.lt.s32.totalorder %v7899_v41, 64 }
  0x41   :  { %7041 = vmatprep.subr.mxu0 %v168_v6  ;;  %v164_v14 = vld [vmem:[#allocation5 + $0x50] sm:$0xff]  ;;  %v162_v19 = vld [vmem:[#allocation5 + $0x40] sm:$0xff]  ;;  %v161_v22 = vld [vmem:[#allocation5 + $0x38] sm:$0xff] }
  0x42   :  { %124 = vperm.xlu1 %7119, %v107_v3   ;;  %7042 = vmatpush3.msra.mxu0 %v168_v6  ;;  %v7120_v15 = vld [vmem:[#allocation7 + $0xe4] ss:$16 sps:$4 sm:$0xff]   ;;  %v7122_v16 = vld [vmem:[#allocation7 + $0xe0] ss:$16 sps:$4 sm:$0xff]   ;;  %v159_v26 = vld [vmem:[#allocation5 + $0x28] sm:$0xff] }
  0x43   :  { %118 = vperm.xlu0 %7118, %v105_v4   ;;  %7043 = vmatprep.subr.mxu0 %v167_v7  ;;  %v7126_v18 = vld [vmem:[#allocation7 + $0xc4] ss:$16 sps:$4 sm:$0xff]   ;;  %v7128_v20 = vld [vmem:[#allocation7 + $0xc0] ss:$16 sps:$4 sm:$0xff]   ;;  %v157_v29 = vld [vmem:[#allocation5 + $0x18] sm:$0xff] }
  0x44   :  { %7044 = vmatpush3.msra.mxu0 %v167_v7  ;;  %557 = vmatprep.subr.bf16.mxu1 %v7120_v15  ;;  %v7132_v21 = vld [vmem:[#allocation7 + $0xa4] ss:$16 sps:$4 sm:$0xff]   ;;  %v7134_v24 = vld [vmem:[#allocation7 + $0xa0] ss:$16 sps:$4 sm:$0xff]   ;;  %v155_v34 = vld [vmem:[#allocation5 + $0x8] sm:$0xff] }
  0x45   :  { %7045 = vmatprep.subr.mxu0 %v166_v10  ;;  %558 = vmatpush1.bf16.msra.mxu1 %v7122_v16  ;;  %v160_v23 = vld [vmem:[#allocation5 + $0x30] sm:$0xff]  ;;  %v158_v27 = vld [vmem:[#allocation5 + $0x20] sm:$0xff]  ;;  %v7125_v37 = vld [vmem:[#allocation7 + $0xec] ss:$16 sps:$4 sm:$0xff]  }
  0x46   :  { %130 = vperm.xlu1 %7119, %v109_v8   ;;  %7046 = vmatpush3.msra.mxu0 %v166_v10  ;;  %v7138_v25 = vld [vmem:[#allocation7 + $0x84] ss:$16 sps:$4 sm:$0xff]   ;;  %v7140_v28 = vld [vmem:[#allocation7 + $0x80] ss:$16 sps:$4 sm:$0xff]   ;;  %v7123_v45 = vld [vmem:[#allocation7 + $0xe8] ss:$16 sps:$4 sm:$0xff]  }
  0x47   :  { %127 = vperm.xlu0 %7118, %v108_v9   ;;  %7047 = vmatprep.subr.mxu0 %v165_v13  ;;  %v7144_v30 = vld [vmem:[#allocation7 + $0x64] ss:$16 sps:$4 sm:$0xff]   ;;  %v7146_v32 = vld [vmem:[#allocation7 + $0x60] ss:$16 sps:$4 sm:$0xff]   ;;  %v7131_v48 = vld [vmem:[#allocation7 + $0xcc] ss:$16 sps:$4 sm:$0xff]  }
  0x48   :  { %7048 = vmatpush3.msra.mxu0 %v165_v13  ;;  %559 = vmatprep.subr.bf16.mxu1 %v7126_v18  ;;  %v156_v31 = vld [vmem:[#allocation5 + $0x10] sm:$0xff]  ;;  %v154_v35 = vld [vmem:[#allocation5] sm:$0xff]  ;;  %v7129_v49 = vld [vmem:[#allocation7 + $0xc8] ss:$16 sps:$4 sm:$0xff]  }
  0x49   :  { %7049 = vmatprep.subr.mxu0 %v164_v14  ;;  %560 = vmatpush1.bf16.msra.mxu1 %v7128_v20  ;;  %v7150_v33 = vld [vmem:[#allocation7 + $0x44] ss:$16 sps:$4 sm:$0xff]   ;;  %v7152_v36 = vld [vmem:[#allocation7 + $0x40] ss:$16 sps:$4 sm:$0xff]   ;;  %v7137_v52 = vld [vmem:[#allocation7 + $0xac] ss:$16 sps:$4 sm:$0xff]  }
  0x4a   :  { %136 = vperm.xlu1 %7119, %v111_v11   ;;  %7050 = vmatpush3.msra.mxu0 %v164_v14  ;;  %v7156_v38 = vld [vmem:[#allocation7 + $0x24] ss:$16 sps:$4 sm:$0xff]   ;;  %v7158_v39 = vld [vmem:[#allocation7 + $0x20] ss:$16 sps:$4 sm:$0xff]   ;;  %v7135_v53 = vld [vmem:[#allocation7 + $0xa8] ss:$16 sps:$4 sm:$0xff]  }
  0x4b   :  { %133 = vperm.xlu0 %7118, %v110_v12   ;;  %7051 = vmatprep.subr.mxu0 %v163_v17  ;;  %v7143_v55 = vld [vmem:[#allocation7 + $0x8c] ss:$16 sps:$4 sm:$0xff]   ;;  %v7141_v57 = vld [vmem:[#allocation7 + $0x88] ss:$16 sps:$4 sm:$0xff]   ;;  %v7162_v1 = vld [vmem:[#allocation7 + $0x4] ss:$16 sps:$4 sm:$0xff]  }
  0x4c   :  { %7052 = vmatpush3.msra.mxu0 %v163_v17  ;;  %561 = vmatprep.subr.bf16.mxu1 %v7132_v21  ;;  %v7149_v58 = vld [vmem:[#allocation7 + $0x6c] ss:$16 sps:$4 sm:$0xff]   ;;  %v7147_v59 = vld [vmem:[#allocation7 + $0x68] ss:$16 sps:$4 sm:$0xff]   ;;  %v7164_v3 = vld [vmem:[#allocation7] ss:$16 sps:$4 sm:$0xff]  }
  0x4d   :  { %7053 = vmatprep.subr.mxu0 %v162_v19  ;;  %562 = vmatpush1.bf16.msra.mxu1 %v7134_v24  ;;  %v7155_v60 = vld [vmem:[#allocation7 + $0x4c] ss:$16 sps:$4 sm:$0xff]   ;;  %v7153_v61 = vld [vmem:[#allocation7 + $0x48] ss:$16 sps:$4 sm:$0xff]   ;;  %v7910_v5 = vld [vmem:[#allocation9 + $0xe4] ss:$16 sps:$4 sm:$0xff]  }
  0x4e   :  { %7054 = vmatpush3.msra.mxu0 %v162_v19  ;;  %563 = vmatprep.subr.bf16.mxu1 %v7138_v25  ;;  %v7161_v62 = vld [vmem:[#allocation7 + $0x2c] ss:$16 sps:$4 sm:$0xff]   ;;  %v7159_v63 = vld [vmem:[#allocation7 + $0x28] ss:$16 sps:$4 sm:$0xff]   ;;  %9881 = vst [vmem:[#allocation17_spill] sm:$0xff] %v7910_v5 }
  0x4f   :  { %7055 = vmatprep.subr.mxu0 %v161_v22  ;;  %v7167_v2 = vld [vmem:[#allocation7 + $0xc] ss:$16 sps:$4 sm:$0xff]   ;;  %v7165_v4 = vld [vmem:[#allocation7 + $0x8] ss:$16 sps:$4 sm:$0xff]   ;;  %v7920_v9 = vld [vmem:[#allocation9 + $0xe0] ss:$16 sps:$4 sm:$0xff]  }
  0x50   :  { %7056 = vmatpush3.msra.mxu0 %v161_v22  ;;  %v7912_v6 = vld [vmem:[#allocation9 + $0xec] ss:$16 sps:$4 sm:$0xff]   ;;  %v7922_v10 = vld [vmem:[#allocation9 + $0xe8] ss:$16 sps:$4 sm:$0xff]   ;;  %v7926_v12 = vld [vmem:[#allocation9 + $0xc4] ss:$16 sps:$4 sm:$0xff]  }
  0x51   :  { %7057 = vmatprep.subr.mxu0 %v160_v23  ;;  %564 = vmatpush1.bf16.msra.mxu1 %v7140_v28  ;;  %9882 = vst [vmem:[#allocation18_spill] sm:$0xff] %v7912_v6  ;;  %v7928_v13 = vld [vmem:[#allocation9 + $0xcc] ss:$16 sps:$4 sm:$0xff]   ;;  %v7934_v15 = vld [vmem:[#allocation9 + $0xc0] ss:$16 sps:$4 sm:$0xff]  }
  0x52   :  { %7058 = vmatpush3.msra.mxu0 %v160_v23  ;;  %565 = vmatprep.subr.bf16.mxu1 %v7144_v30  ;;  %v7936_v16 = vld [vmem:[#allocation9 + $0xc8] ss:$16 sps:$4 sm:$0xff]   ;;  %v7940_v17 = vld [vmem:[#allocation9 + $0xa4] ss:$16 sps:$4 sm:$0xff]   ;;  %v7942_v18 = vld [vmem:[#allocation9 + $0xac] ss:$16 sps:$4 sm:$0xff]  }
  0x53   :  { %7059 = vmatprep.subr.mxu0 %v159_v26  ;;  %v7950_v20 = vld [vmem:[#allocation9 + $0xa0] ss:$16 sps:$4 sm:$0xff]   ;;  %v7952_v21 = vld [vmem:[#allocation9 + $0xa8] ss:$16 sps:$4 sm:$0xff]   ;;  %v7958_v23 = vld [vmem:[#allocation9 + $0x84] ss:$16 sps:$4 sm:$0xff]  }
  0x54   :  { %7060 = vmatpush3.msra.mxu0 %v159_v26  ;;  %v7960_v24 = vld [vmem:[#allocation9 + $0x8c] ss:$16 sps:$4 sm:$0xff]   ;;  %v7966_v26 = vld [vmem:[#allocation9 + $0x80] ss:$16 sps:$4 sm:$0xff]   ;;  %v7972_v28 = vld [vmem:[#allocation9 + $0x64] ss:$16 sps:$4 sm:$0xff]  }
  0x55   :  { %7061 = vmatprep.subr.mxu0 %v158_v27  ;;  %566 = vmatpush1.bf16.msra.mxu1 %v7146_v32  ;;  %v7984_v32 = vld [vmem:[#allocation9 + $0x68] ss:$16 sps:$4 sm:$0xff]  }
  0x56   :  { %7062 = vmatpush3.msra.mxu0 %v158_v27  ;;  %567 = vmatprep.subr.bf16.mxu1 %v7150_v33  ;;  %v7968_v27 = vld [vmem:[#allocation9 + $0x88] ss:$16 sps:$4 sm:$0xff]  }
  0x57   :  { %7063 = vmatprep.subr.mxu0 %v157_v29 }
  0x58   :  { %7064 = vmatpush3.msra.mxu0 %v157_v29  ;;  %v7974_v29 = vld [vmem:[#allocation9 + $0x6c] ss:$16 sps:$4 sm:$0xff]  }
  0x59   :  { %7065 = vmatprep.subr.mxu0 %v156_v31  ;;  %568 = vmatpush1.bf16.msra.mxu1 %v7152_v36 }
  0x5a   :  { %7066 = vmatpush3.msra.mxu0 %v156_v31  ;;  %569 = vmatprep.subr.bf16.mxu1 %v7156_v38  ;;  %v7982_v31 = vld [vmem:[#allocation9 + $0x60] ss:$16 sps:$4 sm:$0xff]   ;;  %v8000_v38 = vld [vmem:[#allocation9 + $0x48] ss:$16 sps:$4 sm:$0xff]  }
  0x5b   :  { %7067 = vmatprep.subr.mxu0 %v155_v34 }
  0x5c   :  { %7068 = vmatpush3.msra.mxu0 %v155_v34  ;;  %v7990_v34 = vld [vmem:[#allocation9 + $0x44] ss:$16 sps:$4 sm:$0xff]  }
  0x5d   :  { %7069 = vmatprep.subr.mxu0 %v154_v35  ;;  %570 = vmatpush1.bf16.msra.mxu1 %v7158_v39  ;;  %v8004_v39 = vld [vmem:[#allocation9 + $0x24] ss:$16 sps:$4 sm:$0xff]  }
  0x5e   :  { %7070 = vmatpush3.msra.mxu0 %v154_v35  ;;  %571 = vmatprep.subr.bf16.mxu1 %v7162_v1  ;;  %v7992_v35 = vld [vmem:[#allocation9 + $0x4c] ss:$16 sps:$4 sm:$0xff]  }
  0x5f   :  { %630 = vmatprep.subr.bf16.mxu0 %v7125_v37  ;;  %v7998_v37 = vld [vmem:[#allocation9 + $0x40] ss:$16 sps:$4 sm:$0xff]  }
  0x61   :  { %572 = vmatpush1.bf16.msra.mxu1 %v7164_v3 }
  0x62   :  { %970 = vmatprep.subr.bf16.mxu1 %v7910_v5 }
  0xb9   :  { %v122_v42 = vpop.permute.xlu1 %121 }
  0xba   :  { %v116_v43 = vpop.permute.xlu0 %115  ;;  %vm140_vm1 = vcmp.eq.s32.totalorder %v7899_v41, %v122_v42  ;;  %v8006_v42 = vld [vmem:[#allocation9 + $0x2c] ss:$16 sps:$4 sm:$0xff]  }
  0xbb   :  { %vm138_vm0 = vcmp.eq.s32.totalorder %v7899_v41, %v116_v43 }
  0xbc   :  { %7071 = vmatprep.mubr.msk.f32.mxu0 %vm138_vm0, %v7788_v44 }
  0xbd   :  { %v125_v46 = vpop.permute.xlu1 %124 }
  0xbe   :  { %v119_v47 = vpop.permute.xlu0 %118  ;;  %vm141_vm3 = vcmp.eq.s32.totalorder %v7899_v41, %v125_v46 }
  0xbf   :  { %vm139_vm2 = vcmp.eq.s32.totalorder %v7899_v41, %v119_v47  ;;  %v8022_v47 = vld [vmem:[#allocation9 + $0x4] ss:$16 sps:$4 sm:$0xff]  }
  0xc0   :  { %7072 = vmatmul.mubr.msk.f32.vlgmr.msra.gmra.mxu0 %vm139_vm2, %v7788_v44 }
  0xc1   :  { %7074 = vmatprep.mubr.msk.f32.mxu0 %vm140_vm1, %v7788_v44  ;;  %631 = vmatpush1.bf16.msra.mxu0 %v7123_v45  ;;  %v131_v50 = vpop.permute.xlu1 %130  ;;  %v8016_v45 = vld [vmem:[#allocation9 + $0x28] ss:$16 sps:$4 sm:$0xff]  }
  0xc2   :  { %v128_v51 = vpop.permute.xlu0 %127  ;;  %632 = vmatprep.subr.bf16.mxu0 %v7131_v48  ;;  %vm143_vm5 = vcmp.eq.s32.totalorder %v7899_v41, %v131_v50  ;;  %v8024_v48 = vld [vmem:[#allocation9 + $0xc] ss:$16 sps:$4 sm:$0xff]   ;;  %v8030_v50 = vld [vmem:[#allocation9 + $0x8] ss:$16 sps:$4 sm:$0xff]  }
  0xc3   :  { %vm142_vm4 = vcmp.eq.s32.totalorder %v7899_v41, %v128_v51  ;;  %9891 = vst [vmem:[#allocation27_spill] sm:$0xff] %v8030_v50  ;;  %v8077_v51 = vshrl.u32 %v112_v40, 7 }
  0xc4   :  { %7075 = vmatmul.mubr.msk.f32.gmra.mxu0 %vm141_vm3, %v7788_v44 }
  0xc5   :  { %7077 = vmatprep.mubr.msk.f32.mxu0 %vm142_vm4, %v7788_v44  ;;  %633 = vmatpush1.bf16.msra.mxu0 %v7129_v49  ;;  %v137_v56 = vpop.permute.xlu1 %136  ;;  %v8028_v49 = vld [vmem:[#allocation9] ss:$16 sps:$4 sm:$0xff]   ;;  %9892 = vst [vmem:[#allocation28_spill] sm:$0xff] %v8077_v51 }
  0xc6   :  { %v134_v54 = vpop.permute.xlu0 %133  ;;  %634 = vmatprep.subr.bf16.mxu0 %v7137_v52  ;;  %vm145_vm7 = vcmp.eq.s32.totalorder %v7899_v41, %v137_v56  ;;  %v9773_v52 = vsub.s32 0, %v8077_v51 }
  0xc7   :  { %vm144_vm6 = vcmp.eq.s32.totalorder %v7899_v41, %v134_v54  ;;  %v375_v54 = vld [vmem:[%s9764_s4] sm:$0xf] }
  0xc8   :  { %7078 = vmatmul.mubr.msk.f32.gmra.mxu0 %vm143_vm5, %v7788_v44 }
  0xc9   :  { %7080 = vmatprep.mubr.msk.f32.mxu0 %vm144_vm6, %v7788_v44  ;;  %635 = vmatpush1.bf16.msra.mxu0 %v7135_v53  ;;  %v9772_v53 = vsub.s32 2, %v8077_v51 }
  0xca   :  { %636 = vmatprep.subr.bf16.mxu0 %v7143_v55 }
  0xcc   :  { %7081 = vmatmul.mubr.msk.f32.gmra.mxu0 %vm145_vm7, %v7788_v44  ;;  %v8014_v44 = vld [vmem:[#allocation9 + $0x20] ss:$16 sps:$4 sm:$0xff]  }
  0xcd   :  { %637 = vmatpush1.bf16.msra.mxu0 %v7141_v57  ;;  %662 = vmatprep.mubr.bf16.mxu0 %v9775_v0  ;;  %v9771_v57 = vsub.s32 1, %v8077_v51 }
  0xce   :  { %638 = vmatprep.subr.bf16.mxu0 %v7149_v58  ;;  %v9774_v58 = vsub.s32 3, %v8077_v51 }
  0xcf   :  { %v8104_v1 = vrot.slane %v375_v54, %v9771_v57 }
  0xd1   :  { %639 = vmatpush1.bf16.msra.mxu0 %v7147_v59 }
  0xd2   :  { %640 = vmatprep.subr.bf16.mxu0 %v7155_v60  ;;  %v8096_v60 = vrot.slane %v375_v54, %v9773_v52  ;;  %v284_v52 = vadd.s32 256, %v7899_v41 }
  0xd5   :  { %641 = vmatpush1.bf16.msra.mxu0 %v7153_v61  ;;  %v8100_v61 = vrot.slane %v375_v54, %v9772_v53 }
  0xd6   :  { %642 = vmatprep.subr.bf16.mxu0 %v7161_v62 }
  0xd9   :  { %643 = vmatpush1.bf16.msra.mxu0 %v7159_v63 }
  0xda   :  { %644 = vmatprep.subr.bf16.mxu0 %v7167_v2  ;;  %v8108_v2 = vrot.slane %v375_v54, %v9774_v58 }
  0xdd   :  { %645 = vmatpush1.bf16.msra.mxu0 %v7165_v4 }
  0xde   :  { %1011 = vmatprep.subr.bf16.mxu0 %v7912_v6 }
 0x180   :  { %v7916_v7 = vpop.f32.mrf.mxu0 }
 0x181   :  { %9883 = vst [vmem:[#allocation19_spill] sm:$0xff] %v7916_v7 }
 0x182   :  { %v7918_v8 = vpop.f32.mrf.mxu0 }
 0x183   :  { %9884 = vst [vmem:[#allocation20_spill] sm:$0xff] %v7918_v8  ;;  %v339_v11 = vpack.c.bf16 %v7916_v7, %v7918_v8  ;;  %v285_v7 = vadd.s32 384, %v7899_v41 }
 0x184   :  { %v7930_v14 = vpop.f32.mrf.mxu0 }
 0x185   :  { %9885 = vst [vmem:[#allocation21_spill] sm:$0xff] %v7930_v14  ;;  %590 = vmatmul.mubr.bf16.vlgmr.msra.gmra.mxu1 %v339_v11  ;;  %663 = vmatmul.mubr.bf16.vlgmr.msra.gmra.mxu0 %v339_v11 }
 0x186   :  { %971 = vmatpush1.bf16.msra.mxu1 %v7920_v9  ;;  %1012 = vmatpush1.bf16.msra.mxu0 %v7922_v10  ;;  %v7944_v19 = vpop.f32.mrf.mxu0 }
 0x187   :  { %972 = vmatprep.subr.bf16.mxu1 %v7926_v12  ;;  %1013 = vmatprep.subr.bf16.mxu0 %v7928_v13  ;;  %9886 = vst [vmem:[#allocation22_spill] sm:$0xff] %v7944_v19  ;;  %v340_v22 = vpack.c.bf16 %v7930_v14, %v7944_v19  ;;  %v311_v19 = vand.u32 127, %v285_v7 }
 0x188   :  { %599 = vmatprep.mubr.bf16.mxu1 %v9775_v0  ;;  %672 = vmatprep.mubr.bf16.mxu0 %v9775_v0  ;;  %v7962_v25 = vpop.f32.mrf.mxu0 }
 0x189   :  { %9887 = vst [vmem:[#allocation23_spill] sm:$0xff] %v7962_v25  ;;  %vm8158_vm11 = vcmp.lt.s32.totalorder %v311_v19, 64 }
 0x18a   :  { %973 = vmatpush1.bf16.msra.mxu1 %v7934_v15  ;;  %1014 = vmatpush1.bf16.msra.mxu0 %v7936_v16  ;;  %v7976_v30 = vpop.f32.mrf.mxu0 }
 0x18b   :  { %974 = vmatprep.subr.bf16.mxu1 %v7940_v17  ;;  %1015 = vmatprep.subr.bf16.mxu0 %v7942_v18  ;;  %9888 = vst [vmem:[#allocation24_spill] sm:$0xff] %v7976_v30  ;;  %v341_v33 = vpack.c.bf16 %v7962_v25, %v7976_v30 }
 0x18c   :  { %v7994_v36 = vpop.f32.mrf.mxu0 }
 0x18d   :  { %600 = vmatmul.mubr.bf16.gmra.mxu1 %v340_v22  ;;  %673 = vmatmul.mubr.bf16.gmra.mxu0 %v340_v22  ;;  %9889 = vst [vmem:[#allocation25_spill] sm:$0xff] %v7994_v36 }
 0x18e   :  { %975 = vmatpush1.bf16.msra.mxu1 %v7950_v20  ;;  %1016 = vmatpush1.bf16.msra.mxu0 %v7952_v21  ;;  %v8008_v43 = vpop.f32.mrf.mxu0 }
 0x18f   :  { %976 = vmatprep.subr.bf16.mxu1 %v7958_v23  ;;  %1017 = vmatprep.subr.bf16.mxu0 %v7960_v24  ;;  %9890 = vst [vmem:[#allocation26_spill] sm:$0xff] %v8008_v43  ;;  %v342_v46 = vpack.c.bf16 %v7994_v36, %v8008_v43  ;;  %v304_v43 = vand.u32 127, %v284_v52 }
 0x190   :  { %609 = vmatprep.mubr.bf16.mxu1 %v9775_v0  ;;  %682 = vmatprep.mubr.bf16.mxu0 %v9775_v0 }
 0x191   :  { %vm8146_vm9 = vcmp.lt.s32.totalorder %v304_v43, 64 }
 0x192   :  { %977 = vmatpush1.bf16.msra.mxu1 %v7966_v26  ;;  %1018 = vmatpush1.bf16.msra.mxu0 %v7968_v27 }
 0x193   :  { %978 = vmatprep.subr.bf16.mxu1 %v7972_v28  ;;  %1019 = vmatprep.subr.bf16.mxu0 %v7974_v29 }
 0x195   :  { %610 = vmatmul.mubr.bf16.gmra.mxu1 %v341_v33  ;;  %683 = vmatmul.mubr.bf16.gmra.mxu0 %v341_v33 }
 0x196   :  { %979 = vmatpush1.bf16.msra.mxu1 %v7982_v31  ;;  %1020 = vmatpush1.bf16.msra.mxu0 %v7984_v32 }
 0x197   :  { %980 = vmatprep.subr.bf16.mxu1 %v7990_v34  ;;  %1021 = vmatprep.subr.bf16.mxu0 %v7992_v35 }
 0x198   :  { %619 = vmatprep.mubr.bf16.mxu1 %v9775_v0  ;;  %692 = vmatprep.mubr.bf16.mxu0 %v9775_v0 }
 0x19a   :  { %981 = vmatpush1.bf16.msra.mxu1 %v7998_v37  ;;  %1022 = vmatpush1.bf16.msra.mxu0 %v8000_v38 }
 0x19b   :  { %982 = vmatprep.subr.bf16.mxu1 %v8004_v39  ;;  %1023 = vmatprep.subr.bf16.mxu0 %v8006_v42 }
 0x19d   :  { %620 = vmatmul.mubr.bf16.gmra.mxu1 %v342_v46  ;;  %693 = vmatmul.mubr.bf16.gmra.mxu0 %v342_v46 }
 0x19e   :  { %983 = vmatpush1.bf16.msra.mxu1 %v8014_v44  ;;  %1024 = vmatpush1.bf16.msra.mxu0 %v8016_v45 }
 0x19f   :  { %984 = vmatprep.subr.bf16.mxu1 %v8022_v47  ;;  %1025 = vmatprep.subr.bf16.mxu0 %v8024_v48 }
 0x1a0   :  { %1002 = vmatprep.mubr.bf16.mxu1 %v9775_v0  ;;  %1043 = vmatprep.mubr.bf16.mxu0 %v9775_v0 }
 0x1a2   :  { %985 = vmatpush1.bf16.msra.mxu1 %v8028_v49  ;;  %1026 = vmatpush1.bf16.msra.mxu0 %v8030_v50 }
 0x1a3   :  { %1278 = vmatprep.subr.bf16.mxu1 %v7910_v5  ;;  %1319 = vmatprep.subr.bf16.mxu0 %v7912_v6 }
 0x1a5   :  { %1003 = vmatmul.mubr.bf16.vlgmr.msra.gmra.mxu1 %v9775_v0  ;;  %1044 = vmatmul.mubr.bf16.vlgmr.msra.gmra.mxu0 %v9775_v0 }
 0x1a6   :  { %1279 = vmatpush1.bf16.msra.mxu1 %v7920_v9  ;;  %1320 = vmatpush1.bf16.msra.mxu0 %v7922_v10 }
 0x1a7   :  { %1280 = vmatprep.subr.bf16.mxu1 %v7926_v12  ;;  %1321 = vmatprep.subr.bf16.mxu0 %v7928_v13 }
 0x1a8   :  { %1310 = vmatprep.mubr.bf16.mxu1 %v9775_v0  ;;  %1351 = vmatprep.mubr.bf16.mxu0 %v9775_v0  ;;  %v283_v0 = vadd.s32 128, %v7899_v41 }
 0x1aa   :  { %1281 = vmatpush1.bf16.msra.mxu1 %v7934_v15  ;;  %1322 = vmatpush1.bf16.msra.mxu0 %v7936_v16  ;;  %v297_v14 = vand.u32 127, %v283_v0 }
 0x1ab   :  { %1282 = vmatprep.subr.bf16.mxu1 %v7940_v17  ;;  %1323 = vmatprep.subr.bf16.mxu0 %v7942_v18 }
 0x1ac   :  { %vm8154_vm10 = vcmp.lt.s32.totalorder %v297_v14, 64 }
 0x1ae   :  { %1283 = vmatpush1.bf16.msra.mxu1 %v7950_v20  ;;  %1324 = vmatpush1.bf16.msra.mxu0 %v7952_v21 }
 0x1af   :  { %1284 = vmatprep.subr.bf16.mxu1 %v7958_v23  ;;  %1325 = vmatprep.subr.bf16.mxu0 %v7960_v24 }
 0x1b2   :  { %1285 = vmatpush1.bf16.msra.mxu1 %v7966_v26  ;;  %1326 = vmatpush1.bf16.msra.mxu0 %v7968_v27 }
 0x1b3   :  { %1286 = vmatprep.subr.bf16.mxu1 %v7972_v28  ;;  %1327 = vmatprep.subr.bf16.mxu0 %v7974_v29 }
 0x1b6   :  { %1287 = vmatpush1.bf16.msra.mxu1 %v7982_v31  ;;  %1328 = vmatpush1.bf16.msra.mxu0 %v7984_v32 }
 0x1b7   :  { %1288 = vmatprep.subr.bf16.mxu1 %v7990_v34  ;;  %1329 = vmatprep.subr.bf16.mxu0 %v7992_v35 }
 0x1ba   :  { %1289 = vmatpush1.bf16.msra.mxu1 %v7998_v37  ;;  %1330 = vmatpush1.bf16.msra.mxu0 %v8000_v38 }
 0x1bb   :  { %1290 = vmatprep.subr.bf16.mxu1 %v8004_v39  ;;  %1331 = vmatprep.subr.bf16.mxu0 %v8006_v42 }
 0x1be   :  { %1291 = vmatpush1.bf16.msra.mxu1 %v8014_v44  ;;  %1332 = vmatpush1.bf16.msra.mxu0 %v8016_v45 }
 0x1bf   :  { %1292 = vmatprep.subr.bf16.mxu1 %v8022_v47  ;;  %1333 = vmatprep.subr.bf16.mxu0 %v8024_v48 }
 0x1c2   :  { %1293 = vmatpush1.bf16.msra.mxu1 %v8028_v49  ;;  %1334 = vmatpush1.bf16.msra.mxu0 %v8030_v50 }
 0x1c3   :  { %1587 = vmatprep.subr.bf16.mxu1 %v7910_v5  ;;  %1628 = vmatprep.subr.bf16.mxu0 %v7912_v6 }
 0x245   :  { %v8084_v55 = vpop.f32.mrf.mxu1  ;;  %v8086_v56 = vpop.f32.mrf.mxu0 }
 0x247   :  { %v8090_v59 = vpop.f32.mrf.mxu1  ;;  %v8092_v40 = vpop.f32.mrf.mxu0 }
 0x249   :  { %v595_v62 = vpop.f32.mrf.mxu1  ;;  %v668_v63 = vpop.f32.mrf.mxu0 }
 0x24a   :  { %v8111_v3 = vadd.f32 %v595_v62, %v8096_v60  ;;  %v8114_v4 = vadd.f32 %v668_v63, %v8100_v61 }
 0x24b   :  { %v597_v11 = vpop.f32.mrf.mxu1  ;;  %v670_v22 = vpop.f32.mrf.mxu0 }
 0x24c   :  { %9893 = vst [vmem:[#allocation29_spill] sm:$0xff] %v8114_v4  ;;  %v8117_v33 = vadd.f32 %v597_v11, %v8104_v1  ;;  %v8120_v46 = vadd.f32 %v670_v22, %v8108_v2 }
 0x24d   :  { %v601_v57 = vpop.f32.mrf.mxu1  ;;  %v674_v53 = vpop.f32.mrf.mxu0 }
 0x24e   :  { %9894 = vst [vmem:[#allocation30_spill] sm:$0xff] %v8117_v33  ;;  %9895 = vst [vmem:[#allocation31_spill] sm:$0xff] %v8120_v46  ;;  %v602_v54 = vadd.f32 %v601_v57, %v8096_v60  ;;  %v8125_v62 = vadd.f32 %v674_v53, %v8100_v61 }
 0x24f   :  { %v603_v58 = vpop.f32.mrf.mxu1  ;;  %v676_v63 = vpop.f32.mrf.mxu0 }
 0x250   :  { %v8130_v11 = vadd.f32 %v603_v58, %v8104_v1  ;;  %v8133_v22 = vadd.f32 %v676_v63, %v8108_v2 }
 0x251   :  { %v605_v8 = vpop.f32.mrf.mxu1  ;;  %v678_v36 = vpop.f32.mrf.mxu0 }
 0x252   :  { %9896 = vst [vmem:[#allocation32_spill] sm:$0xff] %v8133_v22  ;;  %v606_v57 = vadd.f32 %v605_v8, %v8096_v60  ;;  %v8137_v53 = vadd.f32 %v678_v36, %v8100_v61 }
 0x253   :  { %v607_v25 = vpop.f32.mrf.mxu1  ;;  %v680_v30 = vpop.f32.mrf.mxu0 }
 0x254   :  { %9897 = vst [vmem:[#allocation33_spill] sm:$0xff] %v8137_v53  ;;  %v8140_v51 = vadd.f32 %v607_v25, %v8104_v1  ;;  %v8143_v58 = vadd.f32 %v680_v30, %v8108_v2 }
 0x255   :  { %v611_v63 = vpop.f32.mrf.mxu1  ;;  %v684_v6 = vpop.f32.mrf.mxu0 }
 0x256   :  { %9898 = vst [vmem:[#allocation34_spill] sm:$0xff] %v8140_v51  ;;  %9899 = vst [vmem:[#allocation35_spill] sm:$0xff] %v8143_v58  ;;  %v612_v8 = vadd.f32 %v611_v63, %v8096_v60  ;;  %v8152_v36 = vadd.f32 %v684_v6, %v8100_v61  ;;  %v592_v58 = vadd.f32 %v8084_v55, %v8096_v60 }
 0x257   :  { %v613_v0 = vpop.f32.mrf.mxu1  ;;  %v686_v7 = vpop.f32.mrf.mxu0 }
 0x258   :  { %9902 = vst [vmem:[#allocation36_spill] sm:$0xff] %v8152_v36  ;;  %v8163_v43 = vadd.f32 %v613_v0, %v8104_v1  ;;  %v8166_v5 = vadd.f32 %v686_v7, %v8108_v2  ;;  %v8170_v6 = vsel %vm334_vm8, %v606_v57, %v612_v8  ;;  %v8178_v50 = vsel %vm334_vm8, %v612_v8, %v606_v57 }
 0x259   :  { %9909 = vst [vmem:[#allocation39_spill] sm:$0xff] %v8170_v6  ;;  %v615_v63 = vpop.f32.mrf.mxu1  ;;  %v688_v19 = vpop.f32.mrf.mxu0  ;;  %9910 = vst [vmem:[#allocation40_spill] sm:$0xff] %v8178_v50 }
 0x25a   :  { %9907 = vst [vmem:[#allocation37_spill] sm:$0xff] %v8163_v43  ;;  %9908 = vst [vmem:[#allocation38_spill] sm:$0xff] %v8166_v5  ;;  %v616_v7 = vadd.f32 %v615_v63, %v8096_v60  ;;  %v8186_v6 = vadd.f32 %v688_v19, %v8100_v61 }
 0x25b   :  { %v617_v8 = vpop.f32.mrf.mxu1  ;;  %v690_v50 = vpop.f32.mrf.mxu0 }
 0x25c   :  { %9911 = vst [vmem:[#allocation41_spill] sm:$0xff] %v8186_v6  ;;  %v8205_v0 = vadd.f32 %v617_v8, %v8104_v1  ;;  %v8208_v14 = vadd.f32 %v690_v50, %v8108_v2  ;;  %v8212_v57 = vsel %vm334_vm8, %v602_v54, %v616_v7  ;;  %v8220_v19 = vsel %vm334_vm8, %v616_v7, %v602_v54 }
 0x25d   :  { %v621_v36 = vpop.f32.mrf.mxu1  ;;  %v694_v53 = vpop.f32.mrf.mxu0  ;;  %9913 = vst [vmem:[#allocation43_spill] sm:$0xff] %v8220_v19 }
 0x25e   :  { %9912 = vst [vmem:[#allocation42_spill] sm:$0xff] %v8208_v14  ;;  %v622_v8 = vadd.f32 %v621_v36, %v8096_v60  ;;  %v8228_v5 = vadd.f32 %v694_v53, %v8100_v61 }
 0x25f   :  { %v623_v7 = vpop.f32.mrf.mxu1  ;;  %v696_v19 = vpop.f32.mrf.mxu0 }
 0x260   :  { %9914 = vst [vmem:[#allocation44_spill] sm:$0xff] %v8228_v5  ;;  %v8247_v50 = vadd.f32 %v623_v7, %v8104_v1  ;;  %v8250_v63 = vadd.f32 %v696_v19, %v8108_v2  ;;  %v8255_v54 = vsel %vm334_vm8, %v8111_v3, %v622_v8  ;;  %v8266_v19 = vsel %vm334_vm8, %v622_v8, %v8111_v3 }
 0x261   :  { %v625_v53 = vpop.f32.mrf.mxu1  ;;  %v698_v43 = vpop.f32.mrf.mxu0  ;;  %9917 = vst [vmem:[#allocation47_spill] sm:$0xff] %v8266_v19  ;;  %v8286_v8 = vadd.f32 %v8086_v56, %v8100_v61 }
 0x262   :  { %9915 = vst [vmem:[#allocation45_spill] sm:$0xff] %v8247_v50  ;;  %9916 = vst [vmem:[#allocation46_spill] sm:$0xff] %v8250_v63  ;;  %v626_v51 = vadd.f32 %v625_v53, %v8096_v60  ;;  %v8274_v14 = vadd.f32 %v698_v43, %v8100_v61  ;;  %v8298_v53 = vadd.f32 %v8090_v59, %v8104_v1 }
 0x263   :  { %9919 = vst [vmem:[#allocation49_spill] sm:$0xff] %v8286_v8  ;;  %v627_v7 = vpop.f32.mrf.mxu1  ;;  %v700_v36 = vpop.f32.mrf.mxu0  ;;  %v8310_v60 = vadd.f32 %v8092_v40, %v8108_v2 }
 0x264   :  { %9918 = vst [vmem:[#allocation48_spill] sm:$0xff] %v8274_v14  ;;  %9920 = vst [vmem:[#allocation50_spill] sm:$0xff] %v8298_v53  ;;  %v8301_v3 = vadd.f32 %v627_v7, %v8104_v1  ;;  %v8304_v56 = vadd.f32 %v700_v36, %v8108_v2  ;;  %v703_v61 = vsel %vm334_vm8, %v592_v58, %v626_v51 }
 0x265   :  { %9923 = vst [vmem:[#allocation53_spill] sm:$0xff] %v8310_v60  ;;  %v1004_v55 = vpop.f32.mrf.mxu1  ;;  %v1045_v19 = vpop.f32.mrf.mxu0  ;;  %v8314_v43 = vsel %vm334_vm8, %v626_v51, %v592_v58  ;;  %v705_v6 = vsel %vm8146_vm9, %v8286_v8, %v8274_v14 }
 0x266   :  { %9921 = vst [vmem:[#allocation51_spill] sm:$0xff] %v8301_v3  ;;  %9922 = vst [vmem:[#allocation52_spill] sm:$0xff] %v8304_v56  ;;  %v1052_v1 = vadd.f32 %v1004_v55, %v703_v61  ;;  %v704_v36 = vsel %vm8154_vm10, %v8298_v53, %v8301_v3  ;;  %v1054_v2 = vadd.f32 %v1045_v19, %v705_v6 }
 0x267   :  { %9924 = vst [vmem:[#allocation54_spill] sm:$0xff] %v8314_v43  ;;  %v1006_v7 = vpop.f32.mrf.mxu1  ;;  %v1047_v40 = vpop.f32.mrf.mxu0  ;;  %v706_v51 = vsel %vm8158_vm11, %v8310_v60, %v8304_v56 }
 0x268   :  { %v6434_v58 = vmul.f32 -1.442695, %v1052_v1  ;;  %v1053_v59 = vadd.f32 %v1006_v7, %v704_v36  ;;  %v6436_v1 = vmul.f32 -1.442695, %v1054_v2  ;;  %v1055_v7 = vadd.f32 %v1047_v40, %v706_v51 }
 0x269   :  { %v1008_v55 = vpop.f32.mrf.mxu1  ;;  %v1049_v61 = vpop.f32.mrf.mxu0 }
 0x26a   :  { %7416 = vpow2.f32 %v6434_v58  ;;  %v6435_v41 = vmul.f32 -1.442695, %v1053_v59 }
 0x26b   :  { %v1009_v43 = vpop.f32.mrf.mxu1  ;;  %v1050_v22 = vpop.f32.mrf.mxu0 }
 0x26c   :  { %7418 = vpow2.f32 %v6435_v41 }
 0x26d   :  { %7420 = vpow2.f32 %v6436_v1 }
 0x277   :  { %v7417_v36 = vpop.eup %7416 }
 0x278   :  { %v1065_v55 = vadd.f32 1.0, %v7417_v36  ;;  %v9927_v36 = vld [vmem:[#allocation27_spill] sm:$0xff] }
 0x279   :  { %v7419_v58 = vpop.eup %7418 }
 0x27a   :  { %7422 = vrcp.f32 %v1065_v55  ;;  %v1066_v22 = vadd.f32 1.0, %v7419_v58  ;;  %v7421_v41 = vpop.eup %7420  ;;  %v9929_v55 = vld [vmem:[#allocation18_spill] sm:$0xff] }
 0x27b   :  { %7424 = vtanh.f32 %v1055_v7  ;;  %v1067_v6 = vadd.f32 1.0, %v7421_v41  ;;  %v9928_v7 = vld [vmem:[#allocation17_spill] sm:$0xff] }
 0x27c   :  { %7426 = vrcp.f32 %v1066_v22 }
 0x27d   :  { %7428 = vrcp.f32 %v1067_v6  ;;  %v9930_v6 = vsel %vm8154_vm10, %v8117_v33, %v8247_v50  ;;  %v9949_v33 = vld [vmem:[#allocation38_spill] sm:$0xff] }
 0x287   :  { %v7423_v43 = vpop.eup %7422 }
 0x288   :  { %v7425_v59 = vpop.eup %7424 }
 0x289   :  { %v7427_v61 = vpop.eup %7426  ;;  %v1076_v8 = vmul.f32 %v7425_v59, %v7423_v43 }
 0x28a   :  { %v1075_v19 = vmul.f32 0.0, %v7427_v61  ;;  %v7429_v40 = vpop.eup %7428 }
 0x28c   :  { %v8340_v14 = vadd.f32 %v1076_v8, %v1075_v19  ;;  %v9926_v8 = vmov 0  }
 0x28e   :  { %7430 = vtanh.f32 %v8340_v14 }
 0x29b   :  { %v7431_v2 = vpop.eup %7430 }
 0x29c   :  { %v8343_v51 = vmul.f32 %v7431_v2, %v7429_v40 }
 0x29e   :  { %9925 = vst [vmem:[#allocation55_spill] sm:$0xff] %v8343_v51  ;;  %v1085_v1 = vpack.c.bf16 %v8343_v51, %v8343_v51 }
 0x2a0   :  { %1311 = vmatmul.mubr.bf16.vlgmr.msra.gmra.mxu1 %v1085_v1  ;;  %1352 = vmatmul.mubr.bf16.vlgmr.msra.gmra.mxu0 %v1085_v1 }
 0x2a1   :  { %1588 = vmatpush1.bf16.msra.mxu1 %v7920_v9  ;;  %1629 = vmatpush1.bf16.msra.mxu0 %v7922_v10 }
 0x2a2   :  { %1589 = vmatprep.subr.bf16.mxu1 %v7926_v12  ;;  %1630 = vmatprep.subr.bf16.mxu0 %v7928_v13 }
 0x2a3   :  { %1619 = vmatprep.mubr.bf16.mxu1 %v9926_v8  ;;  %1660 = vmatprep.mubr.bf16.mxu0 %v9926_v8 }
 0x2a5   :  { %1590 = vmatpush1.bf16.msra.mxu1 %v7934_v15  ;;  %1631 = vmatpush1.bf16.msra.mxu0 %v7936_v16 }
 0x2a6   :  { %1591 = vmatprep.subr.bf16.mxu1 %v7940_v17  ;;  %1632 = vmatprep.subr.bf16.mxu0 %v7942_v18 }
 0x2a9   :  { %1592 = vmatpush1.bf16.msra.mxu1 %v7950_v20  ;;  %1633 = vmatpush1.bf16.msra.mxu0 %v7952_v21 }
 0x2aa   :  { %1593 = vmatprep.subr.bf16.mxu1 %v7958_v23  ;;  %1634 = vmatprep.subr.bf16.mxu0 %v7960_v24 }
 0x2ad   :  { %1594 = vmatpush1.bf16.msra.mxu1 %v7966_v26  ;;  %1635 = vmatpush1.bf16.msra.mxu0 %v7968_v27 }
 0x2ae   :  { %1595 = vmatprep.subr.bf16.mxu1 %v7972_v28  ;;  %1636 = vmatprep.subr.bf16.mxu0 %v7974_v29 }
 0x2b1   :  { %1596 = vmatpush1.bf16.msra.mxu1 %v7982_v31  ;;  %1637 = vmatpush1.bf16.msra.mxu0 %v7984_v32 }
 0x2b2   :  { %1597 = vmatprep.subr.bf16.mxu1 %v7990_v34  ;;  %1638 = vmatprep.subr.bf16.mxu0 %v7992_v35 }
 0x2b5   :  { %1598 = vmatpush1.bf16.msra.mxu1 %v7998_v37  ;;  %1639 = vmatpush1.bf16.msra.mxu0 %v8000_v38 }
 0x2b6   :  { %1599 = vmatprep.subr.bf16.mxu1 %v8004_v39  ;;  %1640 = vmatprep.subr.bf16.mxu0 %v8006_v42 }
 0x2b9   :  { %1600 = vmatpush1.bf16.msra.mxu1 %v8014_v44  ;;  %1641 = vmatpush1.bf16.msra.mxu0 %v8016_v45 }
 0x2ba   :  { %1601 = vmatprep.subr.bf16.mxu1 %v8022_v47  ;;  %1642 = vmatprep.subr.bf16.mxu0 %v8024_v48 }
 0x2bd   :  { %1602 = vmatpush1.bf16.msra.mxu1 %v8028_v49  ;;  %1643 = vmatpush1.bf16.msra.mxu0 %v9927_v36 }
 0x2be   :  { %1896 = vmatprep.subr.bf16.mxu1 %v9928_v7  ;;  %1937 = vmatprep.subr.bf16.mxu0 %v9929_v55 }
 0x360   :  { %v1312_v58 = vpop.f32.mrf.mxu1  ;;  %v1353_v22 = vpop.f32.mrf.mxu0 }
 0x361   :  { %v1360_v41 = vadd.f32 %v1312_v58, %v8255_v54  ;;  %v9931_v54 = vsel %vm8146_vm9, %v8114_v4, %v8228_v5  ;;  %v9948_v5 = vld [vmem:[#allocation35_spill] sm:$0xff] }
 0x362   :  { %v1314_v43 = vpop.f32.mrf.mxu1  ;;  %v1355_v59 = vpop.f32.mrf.mxu0  ;;  %v1362_v55 = vadd.f32 %v1353_v22, %v9931_v54  ;;  %v9950_v50 = vsel %vm8158_vm11, %v9948_v5, %v9949_v33 }
 0x363   :  { %v6469_v61 = vmul.f32 -1.442695, %v1360_v41  ;;  %v1361_v19 = vadd.f32 %v1314_v43, %v9930_v6  ;;  %v9932_v41 = vsel %vm8158_vm11, %v8120_v46, %v8250_v63  ;;  %v9945_v63 = vld [vmem:[#allocation33_spill] sm:$0xff] }
 0x364   :  { %v1316_v40 = vpop.f32.mrf.mxu1  ;;  %v1357_v2 = vpop.f32.mrf.mxu0  ;;  %v6471_v58 = vmul.f32 -1.442695, %v1362_v55  ;;  %v1363_v43 = vadd.f32 %v1355_v59, %v9932_v41 }
 0x365   :  { %7432 = vpow2.f32 %v6469_v61  ;;  %v6470_v1 = vmul.f32 -1.442695, %v1361_v19 }
 0x366   :  { %v1317_v7 = vpop.f32.mrf.mxu1  ;;  %v1358_v51 = vpop.f32.mrf.mxu0 }
 0x367   :  { %7434 = vpow2.f32 %v6470_v1 }
 0x368   :  { %7436 = vpow2.f32 %v6471_v58 }
 0x369   :  { %7438 = vtanh.f32 %v1363_v43 }
 0x372   :  { %v7433_v6 = vpop.eup %7432 }
 0x373   :  { %v1373_v40 = vadd.f32 1.0, %v7433_v6 }
 0x374   :  { %v7435_v61 = vpop.eup %7434 }
 0x375   :  { %7440 = vrcp.f32 %v1373_v40  ;;  %v1374_v51 = vadd.f32 1.0, %v7435_v61  ;;  %v7437_v19 = vpop.eup %7436 }
 0x376   :  { %v7439_v2 = vpop.eup %7438  ;;  %v1375_v54 = vadd.f32 1.0, %v7437_v19 }
 0x377   :  { %7442 = vrcp.f32 %v1374_v51 }
 0x378   :  { %7444 = vrcp.f32 %v1375_v54  ;;  %v8477_v54 = vld [vmem:[#allocation9 + $0xcc] ss:$16 sps:$4 sm:$0xff]  }
 0x382   :  { %v7441_v1 = vpop.eup %7440 }
 0x383   :  { %v1384_v7 = vmul.f32 %v7441_v1, %v7439_v2  ;;  %v8463_v2 = vld [vmem:[#allocation9 + $0xe4] ss:$16 sps:$4 sm:$0xff]   ;;  %v8467_v1 = vld [vmem:[#allocation9 + $0xe0] ss:$16 sps:$4 sm:$0xff]  }
 0x384   :  { %v7443_v22 = vpop.eup %7442 }
 0x385   :  { %v1383_v55 = vmul.f32 %v7443_v22, %v8340_v14  ;;  %v7445_v59 = vpop.eup %7444  ;;  %v8475_v22 = vld [vmem:[#allocation9 + $0xc4] ss:$16 sps:$4 sm:$0xff]  }
 0x387   :  { %v8398_v60 = vadd.f32 %v1384_v7, %v1383_v55  ;;  %v8469_v7 = vld [vmem:[#allocation9 + $0xe8] ss:$16 sps:$4 sm:$0xff]   ;;  %v8479_v55 = vld [vmem:[#allocation9 + $0xc0] ss:$16 sps:$4 sm:$0xff]  }
 0x389   :  { %7446 = vtanh.f32 %v8398_v60 }
 0x396   :  { %v7447_v58 = vpop.eup %7446 }
 0x397   :  { %v8401_v41 = vmul.f32 %v7447_v58, %v7445_v59  ;;  %v8481_v59 = vld [vmem:[#allocation9 + $0xc8] ss:$16 sps:$4 sm:$0xff]   ;;  %v8487_v58 = vld [vmem:[#allocation9 + $0xa4] ss:$16 sps:$4 sm:$0xff]  }
 0x399   :  { %9933 = vst [vmem:[#allocation27_spill] sm:$0xff] %v8401_v41  ;;  %v1394_v43 = vpack.c.bf16 %v8401_v41, %v8401_v41 }
 0x39b   :  { %1620 = vmatmul.mubr.bf16.vlgmr.msra.gmra.mxu1 %v1394_v43  ;;  %1661 = vmatmul.mubr.bf16.vlgmr.msra.gmra.mxu0 %v1394_v43  ;;  %v8489_v43 = vld [vmem:[#allocation9 + $0xac] ss:$16 sps:$4 sm:$0xff]  }
 0x39c   :  { %1897 = vmatpush1.bf16.msra.mxu1 %v7920_v9  ;;  %1938 = vmatpush1.bf16.msra.mxu0 %v7922_v10 }
 0x39d   :  { %1898 = vmatprep.subr.bf16.mxu1 %v7926_v12  ;;  %1939 = vmatprep.subr.bf16.mxu0 %v7928_v13 }
 0x39e   :  { %1928 = vmatprep.mubr.bf16.mxu1 %v9926_v8  ;;  %1969 = vmatprep.mubr.bf16.mxu0 %v9926_v8 }
 0x3a0   :  { %1899 = vmatpush1.bf16.msra.mxu1 %v7934_v15  ;;  %1940 = vmatpush1.bf16.msra.mxu0 %v7936_v16 }
 0x3a1   :  { %1900 = vmatprep.subr.bf16.mxu1 %v7940_v17  ;;  %1941 = vmatprep.subr.bf16.mxu0 %v7942_v18  ;;  %v9934_v17 = vsel %vm8154_vm10, %v8130_v11, %v8205_v0 }
 0x3a4   :  { %1901 = vmatpush1.bf16.msra.mxu1 %v7950_v20  ;;  %1942 = vmatpush1.bf16.msra.mxu0 %v7952_v21 }
 0x3a5   :  { %1902 = vmatprep.subr.bf16.mxu1 %v7958_v23  ;;  %1943 = vmatprep.subr.bf16.mxu0 %v7960_v24 }
 0x3a8   :  { %1903 = vmatpush1.bf16.msra.mxu1 %v7966_v26  ;;  %1944 = vmatpush1.bf16.msra.mxu0 %v7968_v27  ;;  %v9935_v27 = vld [vmem:[#allocation41_spill] sm:$0xff] }
 0x3a9   :  { %1904 = vmatprep.subr.bf16.mxu1 %v7972_v28  ;;  %1945 = vmatprep.subr.bf16.mxu0 %v7974_v29  ;;  %v9936_v28 = vsel %vm8146_vm9, %v8125_v62, %v9935_v27 }
 0x3ac   :  { %1905 = vmatpush1.bf16.msra.mxu1 %v7982_v31  ;;  %1946 = vmatpush1.bf16.msra.mxu0 %v7984_v32  ;;  %v9937_v32 = vld [vmem:[#allocation32_spill] sm:$0xff] }
 0x3ad   :  { %1906 = vmatprep.subr.bf16.mxu1 %v7990_v34  ;;  %1947 = vmatprep.subr.bf16.mxu0 %v7992_v35  ;;  %v9938_v34 = vld [vmem:[#allocation42_spill] sm:$0xff] }
 0x3ae   :  { %v9939_v35 = vsel %vm8158_vm11, %v9937_v32, %v9938_v34 }
 0x3b0   :  { %1907 = vmatpush1.bf16.msra.mxu1 %v7998_v37  ;;  %1948 = vmatpush1.bf16.msra.mxu0 %v8000_v38 }
 0x3b1   :  { %1908 = vmatprep.subr.bf16.mxu1 %v8004_v39  ;;  %1949 = vmatprep.subr.bf16.mxu0 %v8006_v42 }
 0x3b4   :  { %1909 = vmatpush1.bf16.msra.mxu1 %v8014_v44  ;;  %1950 = vmatpush1.bf16.msra.mxu0 %v8016_v45 }
 0x3b5   :  { %1910 = vmatprep.subr.bf16.mxu1 %v8022_v47  ;;  %1951 = vmatprep.subr.bf16.mxu0 %v8024_v48 }
 0x3b8   :  { %1911 = vmatpush1.bf16.msra.mxu1 %v8028_v49  ;;  %1952 = vmatpush1.bf16.msra.mxu0 %v9927_v36 }
 0x3b9   :  { %2205 = vmatprep.subr.bf16.mxu1 %v8463_v2 }
 0x45b   :  { %v1621_v9 = vpop.f32.mrf.mxu1  ;;  %v1662_v10 = vpop.f32.mrf.mxu0 }
 0x45c   :  { %v1669_v12 = vadd.f32 %v1621_v9, %v8212_v57  ;;  %v1671_v29 = vadd.f32 %v1662_v10, %v9936_v28  ;;  %v8491_v9 = vld [vmem:[#allocation9 + $0xa0] ss:$16 sps:$4 sm:$0xff]   ;;  %v8493_v10 = vld [vmem:[#allocation9 + $0xa8] ss:$16 sps:$4 sm:$0xff]  }
 0x45d   :  { %v1623_v13 = vpop.f32.mrf.mxu1  ;;  %v1664_v15 = vpop.f32.mrf.mxu0  ;;  %v8529_v28 = vld [vmem:[#allocation9 + $0x48] ss:$16 sps:$4 sm:$0xff]  }
 0x45e   :  { %v6504_v16 = vmul.f32 -1.442695, %v1669_v12  ;;  %v1670_v18 = vadd.f32 %v1623_v13, %v9934_v17  ;;  %v6506_v31 = vmul.f32 -1.442695, %v1671_v29  ;;  %v1672_v37 = vadd.f32 %v1664_v15, %v9939_v35  ;;  %v8499_v12 = vld [vmem:[#allocation9 + $0x84] ss:$16 sps:$4 sm:$0xff]  }
 0x45f   :  { %v1625_v20 = vpop.f32.mrf.mxu1  ;;  %v1666_v21 = vpop.f32.mrf.mxu0  ;;  %v8501_v13 = vld [vmem:[#allocation9 + $0x8c] ss:$16 sps:$4 sm:$0xff]   ;;  %v8503_v15 = vld [vmem:[#allocation9 + $0x80] ss:$16 sps:$4 sm:$0xff]   ;;  %v8509_v17 = vld [vmem:[#allocation9 + $0x64] ss:$16 sps:$4 sm:$0xff]  }
 0x460   :  { %7448 = vpow2.f32 %v6504_v16  ;;  %v6505_v23 = vmul.f32 -1.442695, %v1670_v18  ;;  %v8505_v16 = vld [vmem:[#allocation9 + $0x88] ss:$16 sps:$4 sm:$0xff]   ;;  %v8511_v18 = vld [vmem:[#allocation9 + $0x6c] ss:$16 sps:$4 sm:$0xff]  }
 0x461   :  { %v1626_v24 = vpop.f32.mrf.mxu1  ;;  %v1667_v26 = vpop.f32.mrf.mxu0  ;;  %v8515_v20 = vld [vmem:[#allocation9 + $0x60] ss:$16 sps:$4 sm:$0xff]   ;;  %v8517_v21 = vld [vmem:[#allocation9 + $0x68] ss:$16 sps:$4 sm:$0xff]   ;;  %v8533_v29 = vld [vmem:[#allocation9 + $0x24] ss:$16 sps:$4 sm:$0xff]  }
 0x462   :  { %7450 = vpow2.f32 %v6505_v23  ;;  %v8521_v23 = vld [vmem:[#allocation9 + $0x44] ss:$16 sps:$4 sm:$0xff]   ;;  %v8523_v24 = vld [vmem:[#allocation9 + $0x4c] ss:$16 sps:$4 sm:$0xff]   ;;  %v8527_v26 = vld [vmem:[#allocation9 + $0x40] ss:$16 sps:$4 sm:$0xff]  }
 0x463   :  { %7452 = vpow2.f32 %v6506_v31  ;;  %v8535_v31 = vld [vmem:[#allocation9 + $0x2c] ss:$16 sps:$4 sm:$0xff]   ;;  %v8539_v35 = vld [vmem:[#allocation9 + $0x20] ss:$16 sps:$4 sm:$0xff]  }
 0x464   :  { %7454 = vtanh.f32 %v1672_v37  ;;  %v8541_v37 = vld [vmem:[#allocation9 + $0x28] ss:$16 sps:$4 sm:$0xff]  }
 0x46d   :  { %v7449_v38 = vpop.eup %7448 }
 0x46e   :  { %v1682_v39 = vadd.f32 1.0, %v7449_v38  ;;  %v8545_v38 = vld [vmem:[#allocation9 + $0x4] ss:$16 sps:$4 sm:$0xff]  }
 0x46f   :  { %v7451_v42 = vpop.eup %7450 }
 0x470   :  { %7456 = vrcp.f32 %v1682_v39  ;;  %v1683_v44 = vadd.f32 1.0, %v7451_v42  ;;  %v7453_v45 = vpop.eup %7452  ;;  %v8547_v39 = vld [vmem:[#allocation9 + $0xc] ss:$16 sps:$4 sm:$0xff]   ;;  %v8551_v42 = vld [vmem:[#allocation9] ss:$16 sps:$4 sm:$0xff]  }
 0x471   :  { %v7455_v47 = vpop.eup %7454  ;;  %v1684_v57 = vadd.f32 1.0, %v7453_v45 }
 0x472   :  { %7458 = vrcp.f32 %v1683_v44  ;;  %v8553_v44 = vld [vmem:[#allocation9 + $0x8] ss:$16 sps:$4 sm:$0xff]  }
 0x473   :  { %7460 = vrcp.f32 %v1684_v57 }
 0x47d   :  { %v7457_v48 = vpop.eup %7456 }
 0x47e   :  { %v1693_v49 = vmul.f32 %v7457_v48, %v7455_v47  ;;  %v9941_v48 = vld [vmem:[#allocation39_spill] sm:$0xff] }
 0x47f   :  { %v7459_v14 = vpop.eup %7458 }
 0x480   :  { %v1692_v36 = vmul.f32 %v7459_v14, %v8398_v60  ;;  %v7461_v40 = vpop.eup %7460  ;;  %v8465_v60 = vld [vmem:[#allocation9 + $0xec] ss:$16 sps:$4 sm:$0xff]  }
 0x481   :  { %2246 = vmatprep.subr.bf16.mxu0 %v8465_v60 }
 0x482   :  { %v8454_v6 = vadd.f32 %v1693_v49, %v1692_v36 }
 0x484   :  { %7462 = vtanh.f32 %v8454_v6 }
 0x491   :  { %v7463_v61 = vpop.eup %7462 }
 0x492   :  { %v8457_v51 = vmul.f32 %v7463_v61, %v7461_v40  ;;  %v9942_v40 = vld [vmem:[#allocation34_spill] sm:$0xff]  ;;  %v9943_v61 = vld [vmem:[#allocation37_spill] sm:$0xff] }
 0x494   :  { %9940 = vst [vmem:[#allocation17_spill] sm:$0xff] %v8457_v51  ;;  %v1703_v19 = vpack.c.bf16 %v8457_v51, %v8457_v51 }
 0x496   :  { %1929 = vmatmul.mubr.bf16.vlgmr.msra.gmra.mxu1 %v1703_v19  ;;  %1970 = vmatmul.mubr.bf16.vlgmr.msra.gmra.mxu0 %v1703_v19  ;;  %v9944_v19 = vsel %vm8154_vm10, %v9942_v40, %v9943_v61 }
 0x497   :  { %2237 = vmatprep.mubr.bf16.mxu1 %v9926_v8  ;;  %2278 = vmatprep.mubr.bf16.mxu0 %v9926_v8 }
 0x498   :  { %2206 = vmatpush1.bf16.msra.mxu1 %v8467_v1  ;;  %2247 = vmatpush1.bf16.msra.mxu0 %v8469_v7 }
 0x499   :  { %2207 = vmatprep.subr.bf16.mxu1 %v8475_v22  ;;  %2248 = vmatprep.subr.bf16.mxu0 %v8477_v54 }
 0x49c   :  { %2208 = vmatpush1.bf16.msra.mxu1 %v8479_v55  ;;  %2249 = vmatpush1.bf16.msra.mxu0 %v8481_v59 }
 0x49d   :  { %2209 = vmatprep.subr.bf16.mxu1 %v8487_v58  ;;  %2250 = vmatprep.subr.bf16.mxu0 %v8489_v43 }
 0x4a0   :  { %2210 = vmatpush1.bf16.msra.mxu1 %v8491_v9  ;;  %2251 = vmatpush1.bf16.msra.mxu0 %v8493_v10 }
 0x4a1   :  { %2211 = vmatprep.subr.bf16.mxu1 %v8499_v12  ;;  %2252 = vmatprep.subr.bf16.mxu0 %v8501_v13 }
 0x4a4   :  { %2212 = vmatpush1.bf16.msra.mxu1 %v8503_v15  ;;  %2253 = vmatpush1.bf16.msra.mxu0 %v8505_v16 }
 0x4a5   :  { %2213 = vmatprep.subr.bf16.mxu1 %v8509_v17  ;;  %2254 = vmatprep.subr.bf16.mxu0 %v8511_v18 }
 0x4a8   :  { %2214 = vmatpush1.bf16.msra.mxu1 %v8515_v20  ;;  %2255 = vmatpush1.bf16.msra.mxu0 %v8517_v21 }
 0x4a9   :  { %2215 = vmatprep.subr.bf16.mxu1 %v8521_v23  ;;  %2256 = vmatprep.subr.bf16.mxu0 %v8523_v24 }
 0x4ac   :  { %2216 = vmatpush1.bf16.msra.mxu1 %v8527_v26  ;;  %2257 = vmatpush1.bf16.msra.mxu0 %v8529_v28 }
 0x4ad   :  { %2217 = vmatprep.subr.bf16.mxu1 %v8533_v29  ;;  %2258 = vmatprep.subr.bf16.mxu0 %v8535_v31 }
 0x4b0   :  { %2218 = vmatpush1.bf16.msra.mxu1 %v8539_v35  ;;  %2259 = vmatpush1.bf16.msra.mxu0 %v8541_v37 }
 0x4b1   :  { %2219 = vmatprep.subr.bf16.mxu1 %v8545_v38  ;;  %2260 = vmatprep.subr.bf16.mxu0 %v8547_v39 }
 0x4b4   :  { %2220 = vmatpush1.bf16.msra.mxu1 %v8551_v42  ;;  %2261 = vmatpush1.bf16.msra.mxu0 %v8553_v44 }
 0x4b5   :  { %2514 = vmatprep.subr.bf16.mxu1 %v8463_v2  ;;  %2555 = vmatprep.subr.bf16.mxu0 %v8465_v60 }
 0x556   :  { %v1930_v45 = vpop.f32.mrf.mxu1  ;;  %v1971_v47 = vpop.f32.mrf.mxu0 }
 0x557   :  { %v1978_v49 = vadd.f32 %v1930_v45, %v9941_v48  ;;  %v9946_v45 = vld [vmem:[#allocation36_spill] sm:$0xff] }
 0x558   :  { %v1932_v14 = vpop.f32.mrf.mxu1  ;;  %v1973_v57 = vpop.f32.mrf.mxu0  ;;  %v9947_v48 = vsel %vm8146_vm9, %v9945_v63, %v9946_v45 }
 0x559   :  { %v6539_v36 = vmul.f32 -1.442695, %v1978_v49  ;;  %v1979_v51 = vadd.f32 %v1932_v14, %v9944_v19  ;;  %v1980_v4 = vadd.f32 %v1971_v47, %v9947_v48  ;;  %v1981_v14 = vadd.f32 %v1973_v57, %v9950_v50 }
 0x55a   :  { %v1934_v41 = vpop.f32.mrf.mxu1  ;;  %v1975_v56 = vpop.f32.mrf.mxu0 }
 0x55b   :  { %7464 = vpow2.f32 %v6539_v36  ;;  %v6540_v53 = vmul.f32 -1.442695, %v1979_v51  ;;  %v6541_v49 = vmul.f32 -1.442695, %v1980_v4 }
 0x55c   :  { %v1935_v3 = vpop.f32.mrf.mxu1  ;;  %v1976_v46 = vpop.f32.mrf.mxu0 }
 0x55d   :  { %7466 = vpow2.f32 %v6540_v53 }
 0x55e   :  { %7468 = vpow2.f32 %v6541_v49 }
 0x55f   :  { %7470 = vtanh.f32 %v1981_v14 }
 0x568   :  { %v7465_v41 = vpop.eup %7464 }
 0x569   :  { %v1991_v56 = vadd.f32 1.0, %v7465_v41 }
 0x56a   :  { %v7467_v51 = vpop.eup %7466 }
 0x56b   :  { %7472 = vrcp.f32 %v1991_v56  ;;  %v1992_v46 = vadd.f32 1.0, %v7467_v51  ;;  %v7469_v3 = vpop.eup %7468  ;;  %v9951_v56 = vld [vmem:[#allocation40_spill] sm:$0xff] }
 0x56c   :  { %v7471_v53 = vpop.eup %7470  ;;  %v1993_v4 = vadd.f32 1.0, %v7469_v3 }
 0x56d   :  { %7474 = vrcp.f32 %v1992_v46 }
 0x56e   :  { %7476 = vrcp.f32 %v1993_v4 }
 0x578   :  { %v7473_v36 = vpop.eup %7472 }
 0x579   :  { %v2002_v19 = vmul.f32 %v7473_v36, %v7471_v53  ;;  %v9952_v36 = vsel %vm8154_vm10, %v9943_v61, %v9942_v40  ;;  %v9954_v40 = vsel %vm8158_vm11, %v9949_v33, %v9948_v5 }
 0x57a   :  { %v7475_v47 = vpop.eup %7474 }
 0x57b   :  { %v2001_v48 = vmul.f32 %v7475_v47, %v8454_v6  ;;  %v7477_v50 = vpop.eup %7476 }
 0x57d   :  { %v8578_v32 = vadd.f32 %v2002_v19, %v2001_v48 }
 0x57f   :  { %7478 = vtanh.f32 %v8578_v32 }
 0x58c   :  { %v7479_v57 = vpop.eup %7478 }
 0x58d   :  { %v8581_v49 = vmul.f32 %v7479_v57, %v7477_v50 }
 0x58f   :  { %v2012_v14 = vpack.c.bf16 %v8581_v49, %v8581_v49 }
 0x591   :  { %2238 = vmatmul.mubr.bf16.vlgmr.msra.gmra.mxu1 %v2012_v14  ;;  %2279 = vmatmul.mubr.bf16.vlgmr.msra.gmra.mxu0 %v2012_v14  ;;  %v9953_v14 = vsel %vm8146_vm9, %v9946_v45, %v9945_v63 }
 0x592   :  { %2515 = vmatpush1.bf16.msra.mxu1 %v8467_v1  ;;  %2556 = vmatpush1.bf16.msra.mxu0 %v8469_v7 }
 0x593   :  { %2516 = vmatprep.subr.bf16.mxu1 %v8475_v22  ;;  %2557 = vmatprep.subr.bf16.mxu0 %v8477_v54 }
 0x594   :  { %2546 = vmatprep.mubr.bf16.mxu1 %v9926_v8  ;;  %2587 = vmatprep.mubr.bf16.mxu0 %v9926_v8 }
 0x596   :  { %2517 = vmatpush1.bf16.msra.mxu1 %v8479_v55  ;;  %2558 = vmatpush1.bf16.msra.mxu0 %v8481_v59 }
 0x597   :  { %2518 = vmatprep.subr.bf16.mxu1 %v8487_v58  ;;  %2559 = vmatprep.subr.bf16.mxu0 %v8489_v43 }
 0x59a   :  { %2519 = vmatpush1.bf16.msra.mxu1 %v8491_v9  ;;  %2560 = vmatpush1.bf16.msra.mxu0 %v8493_v10 }
 0x59b   :  { %2520 = vmatprep.subr.bf16.mxu1 %v8499_v12  ;;  %2561 = vmatprep.subr.bf16.mxu0 %v8501_v13 }
 0x59e   :  { %2521 = vmatpush1.bf16.msra.mxu1 %v8503_v15  ;;  %2562 = vmatpush1.bf16.msra.mxu0 %v8505_v16 }
 0x59f   :  { %2522 = vmatprep.subr.bf16.mxu1 %v8509_v17  ;;  %2563 = vmatprep.subr.bf16.mxu0 %v8511_v18 }
 0x5a2   :  { %2523 = vmatpush1.bf16.msra.mxu1 %v8515_v20  ;;  %2564 = vmatpush1.bf16.msra.mxu0 %v8517_v21 }
 0x5a3   :  { %2524 = vmatprep.subr.bf16.mxu1 %v8521_v23  ;;  %2565 = vmatprep.subr.bf16.mxu0 %v8523_v24 }
 0x5a6   :  { %2525 = vmatpush1.bf16.msra.mxu1 %v8527_v26  ;;  %2566 = vmatpush1.bf16.msra.mxu0 %v8529_v28 }
 0x5a7   :  { %2526 = vmatprep.subr.bf16.mxu1 %v8533_v29  ;;  %2567 = vmatprep.subr.bf16.mxu0 %v8535_v31 }
 0x5aa   :  { %2527 = vmatpush1.bf16.msra.mxu1 %v8539_v35  ;;  %2568 = vmatpush1.bf16.msra.mxu0 %v8541_v37 }
 0x5ab   :  { %2528 = vmatprep.subr.bf16.mxu1 %v8545_v38  ;;  %2569 = vmatprep.subr.bf16.mxu0 %v8547_v39 }
 0x5ae   :  { %2529 = vmatpush1.bf16.msra.mxu1 %v8551_v42  ;;  %2570 = vmatpush1.bf16.msra.mxu0 %v8553_v44 }
 0x5af   :  { %2823 = vmatprep.subr.bf16.mxu1 %v8463_v2  ;;  %2864 = vmatprep.subr.bf16.mxu0 %v8465_v60 }
 0x651   :  { %v2239_v6 = vpop.f32.mrf.mxu1  ;;  %v2280_v41 = vpop.f32.mrf.mxu0 }
 0x652   :  { %v2287_v51 = vadd.f32 %v2239_v6, %v9951_v56  ;;  %v2289_v6 = vadd.f32 %v2280_v41, %v9953_v14 }
 0x653   :  { %v2241_v46 = vpop.f32.mrf.mxu1  ;;  %v2282_v3 = vpop.f32.mrf.mxu0 }
 0x654   :  { %v6574_v53 = vmul.f32 -1.442695, %v2287_v51  ;;  %v2288_v19 = vadd.f32 %v2241_v46, %v9952_v36  ;;  %v6576_v56 = vmul.f32 -1.442695, %v2289_v6  ;;  %v2290_v61 = vadd.f32 %v2282_v3, %v9954_v40  ;;  %v9955_v6 = vld [vmem:[#allocation43_spill] sm:$0xff] }
 0x655   :  { %v2243_v47 = vpop.f32.mrf.mxu1  ;;  %v2284_v4 = vpop.f32.mrf.mxu0 }
 0x656   :  { %7480 = vpow2.f32 %v6574_v53  ;;  %v6575_v48 = vmul.f32 -1.442695, %v2288_v19 }
 0x657   :  { %v2244_v50 = vpop.f32.mrf.mxu1  ;;  %v2285_v57 = vpop.f32.mrf.mxu0 }
 0x658   :  { %7482 = vpow2.f32 %v6575_v48 }
 0x659   :  { %7484 = vpow2.f32 %v6576_v56 }
 0x65a   :  { %7486 = vtanh.f32 %v2290_v61 }
 0x663   :  { %v7481_v51 = vpop.eup %7480 }
 0x664   :  { %v2300_v46 = vadd.f32 1.0, %v7481_v51 }
 0x665   :  { %v7483_v53 = vpop.eup %7482 }
 0x666   :  { %7488 = vrcp.f32 %v2300_v46  ;;  %v2301_v36 = vadd.f32 1.0, %v7483_v53  ;;  %v7485_v19 = vpop.eup %7484  ;;  %v9956_v46 = vsel %vm8154_vm10, %v8205_v0, %v8130_v11 }
 0x667   :  { %v7487_v47 = vpop.eup %7486  ;;  %v2302_v41 = vadd.f32 1.0, %v7485_v19 }
 0x668   :  { %7490 = vrcp.f32 %v2301_v36 }
 0x669   :  { %7492 = vrcp.f32 %v2302_v41  ;;  %v9958_v41 = vld [vmem:[#allocation32_spill] sm:$0xff] }
 0x66a   :  { %v9959_v11 = vsel %vm8158_vm11, %v9938_v34, %v9958_v41 }
 0x673   :  { %v7489_v4 = vpop.eup %7488 }
 0x674   :  { %v2311_v63 = vmul.f32 %v7489_v4, %v7487_v47 }
 0x675   :  { %v7491_v45 = vpop.eup %7490 }
 0x676   :  { %v2310_v48 = vmul.f32 %v7491_v45, %v8578_v32  ;;  %v7493_v5 = vpop.eup %7492 }
 0x678   :  { %v8636_v50 = vadd.f32 %v2311_v63, %v2310_v48 }
 0x67a   :  { %7494 = vtanh.f32 %v8636_v50 }
 0x687   :  { %v7495_v33 = vpop.eup %7494 }
 0x688   :  { %v8639_v3 = vmul.f32 %v7495_v33, %v7493_v5 }
 0x68a   :  { %v2321_v57 = vpack.c.bf16 %v8639_v3, %v8639_v3 }
 0x68c   :  { %2547 = vmatmul.mubr.bf16.vlgmr.msra.gmra.mxu1 %v2321_v57  ;;  %2588 = vmatmul.mubr.bf16.vlgmr.msra.gmra.mxu0 %v2321_v57 }
 0x68d   :  { %2824 = vmatpush1.bf16.msra.mxu1 %v8467_v1  ;;  %2865 = vmatpush1.bf16.msra.mxu0 %v8469_v7 }
 0x68e   :  { %2825 = vmatprep.subr.bf16.mxu1 %v8475_v22  ;;  %2866 = vmatprep.subr.bf16.mxu0 %v8477_v54 }
 0x68f   :  { %2855 = vmatprep.mubr.bf16.mxu1 %v9926_v8  ;;  %2896 = vmatprep.mubr.bf16.mxu0 %v9926_v8 }
 0x691   :  { %2826 = vmatpush1.bf16.msra.mxu1 %v8479_v55  ;;  %2867 = vmatpush1.bf16.msra.mxu0 %v8481_v59 }
 0x692   :  { %2827 = vmatprep.subr.bf16.mxu1 %v8487_v58  ;;  %2868 = vmatprep.subr.bf16.mxu0 %v8489_v43 }
 0x695   :  { %2828 = vmatpush1.bf16.msra.mxu1 %v8491_v9  ;;  %2869 = vmatpush1.bf16.msra.mxu0 %v8493_v10 }
 0x696   :  { %2829 = vmatprep.subr.bf16.mxu1 %v8499_v12  ;;  %2870 = vmatprep.subr.bf16.mxu0 %v8501_v13 }
 0x699   :  { %2830 = vmatpush1.bf16.msra.mxu1 %v8503_v15  ;;  %2871 = vmatpush1.bf16.msra.mxu0 %v8505_v16 }
 0x69a   :  { %2831 = vmatprep.subr.bf16.mxu1 %v8509_v17  ;;  %2872 = vmatprep.subr.bf16.mxu0 %v8511_v18 }
 0x69d   :  { %2832 = vmatpush1.bf16.msra.mxu1 %v8515_v20  ;;  %2873 = vmatpush1.bf16.msra.mxu0 %v8517_v21 }
 0x69e   :  { %2833 = vmatprep.subr.bf16.mxu1 %v8521_v23  ;;  %2874 = vmatprep.subr.bf16.mxu0 %v8523_v24 }
 0x6a1   :  { %2834 = vmatpush1.bf16.msra.mxu1 %v8527_v26  ;;  %2875 = vmatpush1.bf16.msra.mxu0 %v8529_v28 }
 0x6a2   :  { %2835 = vmatprep.subr.bf16.mxu1 %v8533_v29  ;;  %2876 = vmatprep.subr.bf16.mxu0 %v8535_v31 }
 0x6a5   :  { %2836 = vmatpush1.bf16.msra.mxu1 %v8539_v35  ;;  %2877 = vmatpush1.bf16.msra.mxu0 %v8541_v37 }
 0x6a6   :  { %2837 = vmatprep.subr.bf16.mxu1 %v8545_v38  ;;  %2878 = vmatprep.subr.bf16.mxu0 %v8547_v39 }
 0x6a9   :  { %2838 = vmatpush1.bf16.msra.mxu1 %v8551_v42  ;;  %2879 = vmatpush1.bf16.msra.mxu0 %v8553_v44 }
 0x6aa   :  { %3132 = vmatprep.subr.bf16.mxu1 %v8463_v2  ;;  %3173 = vmatprep.subr.bf16.mxu0 %v8465_v60  ;;  %v9957_v60 = vsel %vm8146_vm9, %v9935_v27, %v8125_v62 }
 0x74c   :  { %v2548_v32 = vpop.f32.mrf.mxu1  ;;  %v2589_v14 = vpop.f32.mrf.mxu0 }
 0x74d   :  { %v2596_v56 = vadd.f32 %v2548_v32, %v9955_v6  ;;  %v2598_v63 = vadd.f32 %v2589_v14, %v9957_v60 }
 0x74e   :  { %v2550_v40 = vpop.f32.mrf.mxu1  ;;  %v2591_v61 = vpop.f32.mrf.mxu0 }
 0x74f   :  { %v6609_v51 = vmul.f32 -1.442695, %v2596_v56  ;;  %v2597_v53 = vadd.f32 %v2550_v40, %v9956_v46  ;;  %v6611_v45 = vmul.f32 -1.442695, %v2598_v63  ;;  %v2599_v0 = vadd.f32 %v2591_v61, %v9959_v11 }
 0x750   :  { %v2552_v36 = vpop.f32.mrf.mxu1  ;;  %v2593_v19 = vpop.f32.mrf.mxu0 }
 0x751   :  { %7496 = vpow2.f32 %v6609_v51  ;;  %v6610_v47 = vmul.f32 -1.442695, %v2597_v53 }
 0x752   :  { %v2553_v2 = vpop.f32.mrf.mxu1  ;;  %v2594_v4 = vpop.f32.mrf.mxu0 }
 0x753   :  { %7498 = vpow2.f32 %v6610_v47 }
 0x754   :  { %7500 = vpow2.f32 %v6611_v45 }
 0x755   :  { %7502 = vtanh.f32 %v2599_v0  ;;  %v7266_v0 = vld [vmem:[#allocation10 + $0xe4] ss:$16 sps:$4 sm:$0xff]  }
 0x75e   :  { %v7497_v48 = vpop.eup %7496 }
 0x75f   :  { %v2609_v5 = vadd.f32 1.0, %v7497_v48  ;;  %v7269_v48 = vld [vmem:[#allocation10 + $0xec] ss:$16 sps:$4 sm:$0xff]  }
 0x760   :  { %v7499_v33 = vpop.eup %7498 }
 0x761   :  { %7504 = vrcp.f32 %v2609_v5  ;;  %v2610_v57 = vadd.f32 1.0, %v7499_v33  ;;  %v7501_v32 = vpop.eup %7500  ;;  %v7264_v5 = vld [vmem:[#allocation10 + $0xe0] ss:$16 sps:$4 sm:$0xff]   ;;  %v7267_v33 = vld [vmem:[#allocation10 + $0xe8] ss:$16 sps:$4 sm:$0xff]  }
 0x762   :  { %v7503_v6 = vpop.eup %7502  ;;  %v2611_v14 = vadd.f32 1.0, %v7501_v32  ;;  %v7275_v32 = vld [vmem:[#allocation10 + $0xcc] ss:$16 sps:$4 sm:$0xff]  }
 0x763   :  { %7506 = vrcp.f32 %v2610_v57  ;;  %v7272_v57 = vld [vmem:[#allocation10 + $0xc4] ss:$16 sps:$4 sm:$0xff]  }
 0x764   :  { %7508 = vrcp.f32 %v2611_v14  ;;  %v7276_v14 = vld [vmem:[#allocation10 + $0xa0] ss:$16 sps:$4 sm:$0xff]  }
 0x76e   :  { %v7505_v56 = vpop.eup %7504 }
 0x76f   :  { %v2620_v62 = vmul.f32 %v7505_v56, %v7503_v6  ;;  %v7270_v6 = vld [vmem:[#allocation10 + $0xc0] ss:$16 sps:$4 sm:$0xff]   ;;  %v7273_v56 = vld [vmem:[#allocation10 + $0xc8] ss:$16 sps:$4 sm:$0xff]  }
 0x770   :  { %v7507_v27 = vpop.eup %7506 }
 0x771   :  { %v2619_v40 = vmul.f32 %v7507_v27, %v8636_v50  ;;  %v7509_v34 = vpop.eup %7508  ;;  %v7281_v27 = vld [vmem:[#allocation10 + $0xac] ss:$16 sps:$4 sm:$0xff]  }
 0x773   :  { %v8694_v51 = vadd.f32 %v2620_v62, %v2619_v40  ;;  %v7278_v62 = vld [vmem:[#allocation10 + $0xa4] ss:$16 sps:$4 sm:$0xff]   ;;  %v7279_v40 = vld [vmem:[#allocation10 + $0xa8] ss:$16 sps:$4 sm:$0xff]  }
 0x775   :  { %7510 = vtanh.f32 %v8694_v51 }
 0x782   :  { %v7511_v61 = vpop.eup %7510 }
 0x783   :  { %v8697_v46 = vmul.f32 %v7511_v61, %v7509_v34  ;;  %v7284_v34 = vld [vmem:[#allocation10 + $0x84] ss:$16 sps:$4 sm:$0xff]   ;;  %v7285_v61 = vld [vmem:[#allocation10 + $0x88] ss:$16 sps:$4 sm:$0xff]  }
 0x785   :  { %v2630_v53 = vpack.c.bf16 %v8697_v46, %v8697_v46 }
 0x787   :  { %2856 = vmatmul.mubr.bf16.vlgmr.msra.gmra.mxu1 %v2630_v53  ;;  %2897 = vmatmul.mubr.bf16.vlgmr.msra.gmra.mxu0 %v2630_v53  ;;  %v7287_v53 = vld [vmem:[#allocation10 + $0x8c] ss:$16 sps:$4 sm:$0xff]  }
 0x788   :  { %3133 = vmatpush1.bf16.msra.mxu1 %v8467_v1  ;;  %3174 = vmatpush1.bf16.msra.mxu0 %v8469_v7 }
 0x789   :  { %3134 = vmatprep.subr.bf16.mxu1 %v8475_v22  ;;  %3175 = vmatprep.subr.bf16.mxu0 %v8477_v54  ;;  %v9960_v22 = vld [vmem:[#allocation47_spill] sm:$0xff] }
 0x78a   :  { %3164 = vmatprep.mubr.bf16.mxu1 %v9926_v8  ;;  %3205 = vmatprep.mubr.bf16.mxu0 %v9926_v8 }
 0x78c   :  { %3135 = vmatpush1.bf16.msra.mxu1 %v8479_v55  ;;  %3176 = vmatpush1.bf16.msra.mxu0 %v8481_v59 }
 0x78d   :  { %3136 = vmatprep.subr.bf16.mxu1 %v8487_v58  ;;  %3177 = vmatprep.subr.bf16.mxu0 %v8489_v43  ;;  %v9961_v43 = vld [vmem:[#allocation45_spill] sm:$0xff] }
 0x790   :  { %3137 = vmatpush1.bf16.msra.mxu1 %v8491_v9  ;;  %3178 = vmatpush1.bf16.msra.mxu0 %v8493_v10  ;;  %v9962_v9 = vld [vmem:[#allocation30_spill] sm:$0xff] }
 0x791   :  { %3138 = vmatprep.subr.bf16.mxu1 %v8499_v12  ;;  %3179 = vmatprep.subr.bf16.mxu0 %v8501_v13  ;;  %v9963_v10 = vsel %vm8154_vm10, %v9961_v43, %v9962_v9  ;;  %v7297_v43 = vld [vmem:[#allocation10 + $0x48] ss:$16 sps:$4 sm:$0xff]   ;;  %v7302_v9 = vld [vmem:[#allocation10 + $0x24] ss:$16 sps:$4 sm:$0xff]  }
 0x794   :  { %3139 = vmatpush1.bf16.msra.mxu1 %v8503_v15  ;;  %3180 = vmatpush1.bf16.msra.mxu0 %v8505_v16 }
 0x795   :  { %3140 = vmatprep.subr.bf16.mxu1 %v8509_v17  ;;  %3181 = vmatprep.subr.bf16.mxu0 %v8511_v18 }
 0x798   :  { %3141 = vmatpush1.bf16.msra.mxu1 %v8515_v20  ;;  %3182 = vmatpush1.bf16.msra.mxu0 %v8517_v21  ;;  %v9964_v20 = vld [vmem:[#allocation44_spill] sm:$0xff]  ;;  %v9965_v21 = vld [vmem:[#allocation29_spill] sm:$0xff] }
 0x799   :  { %3142 = vmatprep.subr.bf16.mxu1 %v8521_v23  ;;  %3183 = vmatprep.subr.bf16.mxu0 %v8523_v24  ;;  %v9966_v23 = vsel %vm8146_vm9, %v9964_v20, %v9965_v21  ;;  %v8759_v20 = vld [vmem:[#allocation12 + $0xe4] ss:$16 sps:$4 sm:$0xff]   ;;  %v8762_v21 = vld [vmem:[#allocation12 + $0xec] ss:$16 sps:$4 sm:$0xff]  }
 0x79a   :  { %9970 = vst [vmem:[#allocation18_spill] sm:$0xff] %v8759_v20  ;;  %9971 = vst [vmem:[#allocation41_spill] sm:$0xff] %v8762_v21 }
 0x79c   :  { %3143 = vmatpush1.bf16.msra.mxu1 %v8527_v26  ;;  %3184 = vmatpush1.bf16.msra.mxu0 %v8529_v28  ;;  %v9967_v28 = vld [vmem:[#allocation46_spill] sm:$0xff] }
 0x79d   :  { %3144 = vmatprep.subr.bf16.mxu1 %v8533_v29  ;;  %3185 = vmatprep.subr.bf16.mxu0 %v8535_v31  ;;  %v9968_v29 = vld [vmem:[#allocation31_spill] sm:$0xff] }
 0x79e   :  { %v9969_v31 = vsel %vm8158_vm11, %v9967_v28, %v9968_v29 }
 0x7a0   :  { %3145 = vmatpush1.bf16.msra.mxu1 %v8539_v35  ;;  %3186 = vmatpush1.bf16.msra.mxu0 %v8541_v37 }
 0x7a1   :  { %3146 = vmatprep.subr.bf16.mxu1 %v8545_v38  ;;  %3187 = vmatprep.subr.bf16.mxu0 %v8547_v39 }
 0x7a4   :  { %3147 = vmatpush1.bf16.msra.mxu1 %v8551_v42  ;;  %3188 = vmatpush1.bf16.msra.mxu0 %v8553_v44 }
 0x7a5   :  { %3502 = vmatprep.subr.bf16.mxu1 %v7266_v0  ;;  %3575 = vmatprep.subr.bf16.mxu0 %v7269_v48  ;;  %v9979_v0 = vld [vmem:[#allocation52_spill] sm:$0xff]  ;;  %v9980_v48 = vld [vmem:[#allocation53_spill] sm:$0xff] }
 0x847   :  { %v2857_v1 = vpop.f32.mrf.mxu1  ;;  %v2898_v7 = vpop.f32.mrf.mxu0 }
 0x848   :  { %v2905_v54 = vadd.f32 %v2857_v1, %v9960_v22  ;;  %v2907_v24 = vadd.f32 %v2898_v7, %v9966_v23  ;;  %v7290_v1 = vld [vmem:[#allocation10 + $0x64] ss:$16 sps:$4 sm:$0xff]   ;;  %v7293_v7 = vld [vmem:[#allocation10 + $0x6c] ss:$16 sps:$4 sm:$0xff]   ;;  %v7288_v22 = vld [vmem:[#allocation10 + $0x60] ss:$16 sps:$4 sm:$0xff]  }
 0x849   :  { %v2859_v55 = vpop.f32.mrf.mxu1  ;;  %v2900_v59 = vpop.f32.mrf.mxu0 }
 0x84a   :  { %v6644_v58 = vmul.f32 -1.442695, %v2905_v54  ;;  %v2906_v12 = vadd.f32 %v2859_v55, %v9963_v10  ;;  %v6646_v26 = vmul.f32 -1.442695, %v2907_v24  ;;  %v2908_v35 = vadd.f32 %v2900_v59, %v9969_v31  ;;  %v7291_v54 = vld [vmem:[#allocation10 + $0x68] ss:$16 sps:$4 sm:$0xff]  }
 0x84b   :  { %v2861_v13 = vpop.f32.mrf.mxu1  ;;  %v2902_v15 = vpop.f32.mrf.mxu0  ;;  %v7296_v55 = vld [vmem:[#allocation10 + $0x44] ss:$16 sps:$4 sm:$0xff]   ;;  %v7299_v59 = vld [vmem:[#allocation10 + $0x4c] ss:$16 sps:$4 sm:$0xff]  }
 0x84c   :  { %7512 = vpow2.f32 %v6644_v58  ;;  %v6645_v16 = vmul.f32 -1.442695, %v2906_v12  ;;  %v7294_v58 = vld [vmem:[#allocation10 + $0x40] ss:$16 sps:$4 sm:$0xff]   ;;  %v7305_v10 = vld [vmem:[#allocation10 + $0x2c] ss:$16 sps:$4 sm:$0xff]  }
 0x84d   :  { %v2862_v17 = vpop.f32.mrf.mxu1  ;;  %v2903_v18 = vpop.f32.mrf.mxu0  ;;  %v7300_v12 = vld [vmem:[#allocation10 + $0x20] ss:$16 sps:$4 sm:$0xff]   ;;  %v7303_v13 = vld [vmem:[#allocation10 + $0x28] ss:$16 sps:$4 sm:$0xff]   ;;  %v7308_v15 = vld [vmem:[#allocation10 + $0x4] ss:$16 sps:$4 sm:$0xff]  }
 0x84e   :  { %7514 = vpow2.f32 %v6645_v16  ;;  %v7311_v16 = vld [vmem:[#allocation10 + $0xc] ss:$16 sps:$4 sm:$0xff]   ;;  %v7306_v17 = vld [vmem:[#allocation10] ss:$16 sps:$4 sm:$0xff]   ;;  %v7309_v18 = vld [vmem:[#allocation10 + $0x8] ss:$16 sps:$4 sm:$0xff]  }
 0x84f   :  { %7516 = vpow2.f32 %v6646_v26  ;;  %v9972_v26 = vld [vmem:[#allocation54_spill] sm:$0xff] }
 0x850   :  { %7518 = vtanh.f32 %v2908_v35 }
 0x859   :  { %v7513_v37 = vpop.eup %7512 }
 0x85a   :  { %v2918_v38 = vadd.f32 1.0, %v7513_v37  ;;  %v9973_v37 = vld [vmem:[#allocation51_spill] sm:$0xff] }
 0x85b   :  { %v7515_v39 = vpop.eup %7514 }
 0x85c   :  { %7520 = vrcp.f32 %v2918_v38  ;;  %v2919_v42 = vadd.f32 1.0, %v7515_v39  ;;  %v7517_v44 = vpop.eup %7516  ;;  %v9974_v38 = vld [vmem:[#allocation50_spill] sm:$0xff] }
 0x85d   :  { %v7519_v50 = vpop.eup %7518  ;;  %v2920_v2 = vadd.f32 1.0, %v7517_v44  ;;  %v9975_v39 = vsel %vm8154_vm10, %v9973_v37, %v9974_v38  ;;  %v8844_v37 = vld [vmem:[#allocation12 + $0x8c] ss:$16 sps:$4 sm:$0xff]   ;;  %v8848_v38 = vld [vmem:[#allocation12 + $0x80] ss:$16 sps:$4 sm:$0xff]  }
 0x85e   :  { %7522 = vrcp.f32 %v2919_v42 }
 0x85f   :  { %7524 = vrcp.f32 %v2920_v2  ;;  %v9976_v2 = vld [vmem:[#allocation48_spill] sm:$0xff] }
 0x869   :  { %v7521_v36 = vpop.eup %7520 }
 0x86a   :  { %v2929_v19 = vmul.f32 %v7521_v36, %v7519_v50 }
 0x86b   :  { %v7523_v47 = vpop.eup %7522 }
 0x86c   :  { %v2928_v4 = vmul.f32 %v7523_v47, %v8694_v51  ;;  %v7525_v63 = vpop.eup %7524  ;;  %v7282_v51 = vld [vmem:[#allocation10 + $0x80] ss:$16 sps:$4 sm:$0xff]  }
 0x86e   :  { %v8750_v60 = vadd.f32 %v2929_v19, %v2928_v4  ;;  %v9977_v4 = vld [vmem:[#allocation49_spill] sm:$0xff] }
 0x870   :  { %7526 = vtanh.f32 %v8750_v60 }
 0x87d   :  { %v7527_v45 = vpop.eup %7526 }
 0x87e   :  { %v8753_v41 = vmul.f32 %v7527_v45, %v7525_v63  ;;  %v9978_v63 = vsel %vm8146_vm9, %v9976_v2, %v9977_v4  ;;  %v8882_v2 = vld [vmem:[#allocation12 + $0x44] ss:$16 sps:$4 sm:$0xff]   ;;  %v8884_v4 = vld [vmem:[#allocation12 + $0x4c] ss:$16 sps:$4 sm:$0xff]  }
 0x880   :  { %v2939_v11 = vpack.c.bf16 %v8753_v41, %v8753_v41 }
 0x882   :  { %3165 = vmatmul.mubr.bf16.vlgmr.msra.gmra.mxu1 %v2939_v11  ;;  %3206 = vmatmul.mubr.bf16.vlgmr.msra.gmra.mxu0 %v2939_v11 }
 0x883   :  { %3534 = vmatprep.mubr.bf16.mxu1 %v9926_v8  ;;  %3607 = vmatprep.mubr.bf16.mxu0 %v9926_v8 }
 0x884   :  { %3503 = vmatpush1.bf16.msra.mxu1 %v7264_v5  ;;  %3576 = vmatpush1.bf16.msra.mxu0 %v7267_v33  ;;  %v9981_v5 = vsel %vm8158_vm11, %v9979_v0, %v9980_v48  ;;  %v8908_v0 = vld [vmem:[#allocation12 + $0x20] ss:$16 sps:$4 sm:$0xff]  }
 0x885   :  { %3504 = vmatprep.subr.bf16.mxu1 %v7272_v57  ;;  %3577 = vmatprep.subr.bf16.mxu0 %v7275_v32 }
 0x888   :  { %3505 = vmatpush1.bf16.msra.mxu1 %v7270_v6  ;;  %3578 = vmatpush1.bf16.msra.mxu0 %v7273_v56 }
 0x889   :  { %3506 = vmatprep.subr.bf16.mxu1 %v7278_v62  ;;  %3579 = vmatprep.subr.bf16.mxu0 %v7281_v27 }
 0x88c   :  { %3507 = vmatpush1.bf16.msra.mxu1 %v7276_v14  ;;  %3580 = vmatpush1.bf16.msra.mxu0 %v7279_v40 }
 0x88d   :  { %3508 = vmatprep.subr.bf16.mxu1 %v7284_v34  ;;  %3581 = vmatprep.subr.bf16.mxu0 %v7287_v53 }
 0x890   :  { %3509 = vmatpush1.bf16.msra.mxu1 %v7282_v51  ;;  %3582 = vmatpush1.bf16.msra.mxu0 %v7285_v61 }
 0x891   :  { %3510 = vmatprep.subr.bf16.mxu1 %v7290_v1  ;;  %3583 = vmatprep.subr.bf16.mxu0 %v7293_v7 }
 0x894   :  { %3511 = vmatpush1.bf16.msra.mxu1 %v7288_v22  ;;  %3584 = vmatpush1.bf16.msra.mxu0 %v7291_v54  ;;  %v8784_v54 = vld [vmem:[#allocation12 + $0xe0] ss:$16 sps:$4 sm:$0xff]  }
 0x895   :  { %3512 = vmatprep.subr.bf16.mxu1 %v7296_v55  ;;  %3585 = vmatprep.subr.bf16.mxu0 %v7299_v59  ;;  %v9982_v55 = vld [vmem:[#allocation55_spill] sm:$0xff] }
 0x898   :  { %3513 = vmatpush1.bf16.msra.mxu1 %v7294_v58  ;;  %3586 = vmatpush1.bf16.msra.mxu0 %v7297_v43  ;;  %v9985_v43 = vld [vmem:[#allocation27_spill] sm:$0xff] }
 0x899   :  { %3514 = vmatprep.subr.bf16.mxu1 %v7302_v9  ;;  %3587 = vmatprep.subr.bf16.mxu0 %v7305_v10  ;;  %v8798_v9 = vld [vmem:[#allocation12 + $0xe8] ss:$16 sps:$4 sm:$0xff]   ;;  %v8914_v48 = vsel %vm334_vm8, %v8753_v41, %v9985_v43 }
 0x89a   :  { %9993 = vst [vmem:[#allocation38_spill] sm:$0xff] %v8914_v48 }
 0x89c   :  { %3515 = vmatpush1.bf16.msra.mxu1 %v7300_v12  ;;  %3588 = vmatpush1.bf16.msra.mxu0 %v7303_v13  ;;  %v8802_v12 = vld [vmem:[#allocation12 + $0xc4] ss:$16 sps:$4 sm:$0xff]   ;;  %v8804_v13 = vld [vmem:[#allocation12 + $0xcc] ss:$16 sps:$4 sm:$0xff]  }
 0x89d   :  { %3516 = vmatprep.subr.bf16.mxu1 %v7308_v15  ;;  %3589 = vmatprep.subr.bf16.mxu0 %v7311_v16  ;;  %v8808_v15 = vld [vmem:[#allocation12 + $0xc0] ss:$16 sps:$4 sm:$0xff]   ;;  %v8810_v16 = vld [vmem:[#allocation12 + $0xc8] ss:$16 sps:$4 sm:$0xff]  }
 0x8a0   :  { %3517 = vmatpush1.bf16.msra.mxu1 %v7306_v17  ;;  %3590 = vmatpush1.bf16.msra.mxu0 %v7309_v18  ;;  %v8814_v17 = vld [vmem:[#allocation12 + $0xa4] ss:$16 sps:$4 sm:$0xff]   ;;  %v8816_v18 = vld [vmem:[#allocation12 + $0xac] ss:$16 sps:$4 sm:$0xff]  }
 0x8a1   :  { %3908 = vmatprep.subr.bf16.mxu1 %v8759_v20  ;;  %3949 = vmatprep.subr.bf16.mxu0 %v8762_v21 }
 0x942   :  { %v3166_v23 = vpop.f32.mrf.mxu1  ;;  %v3207_v24 = vpop.f32.mrf.mxu0 }
 0x943   :  { %v3214_v28 = vadd.f32 %v3166_v23, %v9972_v26  ;;  %v3216_v45 = vadd.f32 %v3207_v24, %v9978_v63  ;;  %v9987_v23 = vld [vmem:[#allocation17_spill] sm:$0xff]  ;;  %v8828_v26 = vld [vmem:[#allocation12 + $0xa0] ss:$16 sps:$4 sm:$0xff]   ;;  %v8894_v63 = vld [vmem:[#allocation12 + $0x24] ss:$16 sps:$4 sm:$0xff]  }
 0x944   :  { %v3168_v29 = vpop.f32.mrf.mxu1  ;;  %v3209_v31 = vpop.f32.mrf.mxu0  ;;  %v8824_v24 = vsel %vm334_vm8, %v9987_v23, %v8697_v46 }
 0x945   :  { %v6679_v35 = vmul.f32 -1.442695, %v3214_v28  ;;  %v3215_v42 = vadd.f32 %v3168_v29, %v9975_v39  ;;  %v6681_v11 = vmul.f32 -1.442695, %v3216_v45  ;;  %v3217_v33 = vadd.f32 %v3209_v31, %v9981_v5  ;;  %9988 = vst [vmem:[#allocation34_spill] sm:$0xff] %v8824_v24 }
 0x946   :  { %v3170_v44 = vpop.f32.mrf.mxu1  ;;  %v3211_v50 = vpop.f32.mrf.mxu0  ;;  %v8834_v28 = vsel %vm334_vm8, %v8581_v49, %v8639_v3  ;;  %v8836_v29 = vld [vmem:[#allocation12 + $0xa8] ss:$16 sps:$4 sm:$0xff]   ;;  %v8896_v45 = vld [vmem:[#allocation12 + $0x2c] ss:$16 sps:$4 sm:$0xff]  }
 0x947   :  { %7528 = vpow2.f32 %v6679_v35  ;;  %v6680_v36 = vmul.f32 -1.442695, %v3215_v42  ;;  %9989 = vst [vmem:[#allocation37_spill] sm:$0xff] %v8834_v28  ;;  %v3285_v31 = vpack.c.bf16 %v8834_v28, %v8824_v24  ;;  %v8842_v35 = vld [vmem:[#allocation12 + $0x84] ss:$16 sps:$4 sm:$0xff]   ;;  %v8864_v50 = vsel %vm334_vm8, %v8697_v46, %v9987_v23 }
 0x948   :  { %v3171_v19 = vpop.f32.mrf.mxu1  ;;  %v3212_v47 = vpop.f32.mrf.mxu0  ;;  %v8850_v39 = vld [vmem:[#allocation12 + $0x88] ss:$16 sps:$4 sm:$0xff]   ;;  %v8854_v42 = vld [vmem:[#allocation12 + $0x64] ss:$16 sps:$4 sm:$0xff]   ;;  %v8856_v44 = vld [vmem:[#allocation12 + $0x6c] ss:$16 sps:$4 sm:$0xff]  }
 0x949   :  { %7530 = vpow2.f32 %v6680_v36  ;;  %9990 = vst [vmem:[#allocation33_spill] sm:$0xff] %v8864_v50  ;;  %v8868_v36 = vld [vmem:[#allocation12 + $0x60] ss:$16 sps:$4 sm:$0xff]   ;;  %v8874_v19 = vsel %vm334_vm8, %v8639_v3, %v8581_v49  ;;  %v8876_v47 = vld [vmem:[#allocation12 + $0x68] ss:$16 sps:$4 sm:$0xff]  }
 0x94a   :  { %7532 = vpow2.f32 %v6681_v11  ;;  %9991 = vst [vmem:[#allocation36_spill] sm:$0xff] %v8874_v19  ;;  %v3286_v46 = vpack.c.bf16 %v8864_v50, %v8874_v19  ;;  %v8888_v49 = vld [vmem:[#allocation12 + $0x40] ss:$16 sps:$4 sm:$0xff]   ;;  %v8890_v3 = vld [vmem:[#allocation12 + $0x48] ss:$16 sps:$4 sm:$0xff]  }
 0x94b   :  { %7534 = vtanh.f32 %v3217_v33  ;;  %v8916_v5 = vld [vmem:[#allocation12 + $0x28] ss:$16 sps:$4 sm:$0xff]  }
 0x954   :  { %v7529_v57 = vpop.eup %7528 }
 0x955   :  { %v3227_v32 = vadd.f32 1.0, %v7529_v57  ;;  %v8922_v57 = vld [vmem:[#allocation12 + $0x4] ss:$16 sps:$4 sm:$0xff]  }
 0x956   :  { %v7531_v6 = vpop.eup %7530 }
 0x957   :  { %7536 = vrcp.f32 %v3227_v32  ;;  %v3228_v56 = vadd.f32 1.0, %v7531_v6  ;;  %v7533_v62 = vpop.eup %7532  ;;  %v8924_v32 = vld [vmem:[#allocation12 + $0xc] ss:$16 sps:$4 sm:$0xff]   ;;  %v8930_v6 = vld [vmem:[#allocation12 + $0x8] ss:$16 sps:$4 sm:$0xff]  }
 0x958   :  { %v7535_v27 = vpop.eup %7534  ;;  %v3229_v34 = vadd.f32 1.0, %v7533_v62  ;;  %9995 = vst [vmem:[#allocation43_spill] sm:$0xff] %v8930_v6 }
 0x959   :  { %7538 = vrcp.f32 %v3228_v56  ;;  %v3320_v56 = vld [vmem:[%s9767_s7] sm:$0xf] }
 0x95a   :  { %7540 = vrcp.f32 %v3229_v34 }
 0x964   :  { %v7537_v14 = vpop.eup %7536 }
 0x965   :  { %v3238_v40 = vmul.f32 %v7537_v14, %v7535_v27 }
 0x966   :  { %v7539_v51 = vpop.eup %7538 }
 0x967   :  { %v3237_v61 = vmul.f32 %v7539_v51, %v8750_v60  ;;  %v7541_v1 = vpop.eup %7540  ;;  %v8796_v60 = vsel %vm334_vm8, %v9985_v43, %v8753_v41  ;;  %v8928_v41 = vld [vmem:[#allocation12] ss:$16 sps:$4 sm:$0xff]  }
 0x968   :  { %9986 = vst [vmem:[#allocation39_spill] sm:$0xff] %v8796_v60  ;;  %9994 = vst [vmem:[#allocation40_spill] sm:$0xff] %v8928_v41  ;;  %v9996_v51 = vld [vmem:[#allocation28_spill] sm:$0xff] }
 0x969   :  { %v3239_v53 = vadd.f32 %v3238_v40, %v3237_v61  ;;  %v9997_v34 = vsub.s32 0, %v9996_v51 }
 0x96b   :  { %7542 = vtanh.f32 %v3239_v53  ;;  %v8989_v61 = vrot.slane %v3320_v56, %v9997_v34  ;;  %v9998_v53 = vsub.s32 2, %v9996_v51 }
 0x978   :  { %v7543_v7 = vpop.eup %7542 }
 0x979   :  { %v8782_v22 = vmul.f32 %v7543_v7, %v7541_v1  ;;  %v8993_v1 = vrot.slane %v3320_v56, %v9998_v53 }
 0x97b   :  { %v8790_v58 = vsel %vm334_vm8, %v9982_v55, %v8782_v22  ;;  %v8904_v11 = vsel %vm334_vm8, %v8782_v22, %v9982_v55  ;;  %v9999_v55 = vsub.s32 1, %v9996_v51 }
 0x97c   :  { %9984 = vst [vmem:[#allocation42_spill] sm:$0xff] %v8790_v58  ;;  %v3284_v10 = vpack.c.bf16 %v8796_v60, %v8790_v58  ;;  %9992 = vst [vmem:[#allocation35_spill] sm:$0xff] %v8904_v11  ;;  %v3287_v33 = vpack.c.bf16 %v8904_v11, %v8914_v48 }
 0x97d   :  { %v8997_v43 = vrot.slane %v3320_v56, %v9999_v55 }
 0x97e   :  { %3535 = vmatmul.mubr.bf16.vlgmr.msra.gmra.mxu1 %v3284_v10  ;;  %3608 = vmatmul.mubr.bf16.vlgmr.msra.gmra.mxu0 %v3284_v10  ;;  %v10000_v10 = vsub.s32 3, %v9996_v51 }
 0x97f   :  { %3909 = vmatpush1.bf16.msra.mxu1 %v8784_v54  ;;  %3950 = vmatpush1.bf16.msra.mxu0 %v8798_v9 }
 0x980   :  { %3910 = vmatprep.subr.bf16.mxu1 %v8802_v12  ;;  %3951 = vmatprep.subr.bf16.mxu0 %v8804_v13  ;;  %v9001_v23 = vrot.slane %v3320_v56, %v10000_v10 }
 0x981   :  { %3544 = vmatprep.mubr.bf16.mxu1 %v9926_v8  ;;  %3617 = vmatprep.mubr.bf16.mxu0 %v9926_v8 }
 0x983   :  { %3911 = vmatpush1.bf16.msra.mxu1 %v8808_v15  ;;  %3952 = vmatpush1.bf16.msra.mxu0 %v8810_v16 }
 0x984   :  { %3912 = vmatprep.subr.bf16.mxu1 %v8814_v17  ;;  %3953 = vmatprep.subr.bf16.mxu0 %v8816_v18 }
 0x986   :  { %3545 = vmatmul.mubr.bf16.gmra.mxu1 %v3285_v31  ;;  %3618 = vmatmul.mubr.bf16.gmra.mxu0 %v3285_v31 }
 0x987   :  { %3913 = vmatpush1.bf16.msra.mxu1 %v8828_v26  ;;  %3954 = vmatpush1.bf16.msra.mxu0 %v8836_v29 }
 0x988   :  { %3914 = vmatprep.subr.bf16.mxu1 %v8842_v35  ;;  %3955 = vmatprep.subr.bf16.mxu0 %v8844_v37 }
 0x989   :  { %3554 = vmatprep.mubr.bf16.mxu1 %v9926_v8  ;;  %3627 = vmatprep.mubr.bf16.mxu0 %v9926_v8 }
 0x98b   :  { %3915 = vmatpush1.bf16.msra.mxu1 %v8848_v38  ;;  %3956 = vmatpush1.bf16.msra.mxu0 %v8850_v39 }
 0x98c   :  { %3916 = vmatprep.subr.bf16.mxu1 %v8854_v42  ;;  %3957 = vmatprep.subr.bf16.mxu0 %v8856_v44 }
 0x98e   :  { %3555 = vmatmul.mubr.bf16.gmra.mxu1 %v3286_v46  ;;  %3628 = vmatmul.mubr.bf16.gmra.mxu0 %v3286_v46 }
 0x98f   :  { %3917 = vmatpush1.bf16.msra.mxu1 %v8868_v36  ;;  %3958 = vmatpush1.bf16.msra.mxu0 %v8876_v47 }
 0x990   :  { %3918 = vmatprep.subr.bf16.mxu1 %v8882_v2  ;;  %3959 = vmatprep.subr.bf16.mxu0 %v8884_v4 }
 0x991   :  { %3564 = vmatprep.mubr.bf16.mxu1 %v9926_v8  ;;  %3637 = vmatprep.mubr.bf16.mxu0 %v9926_v8 }
 0x993   :  { %3919 = vmatpush1.bf16.msra.mxu1 %v8888_v49  ;;  %3960 = vmatpush1.bf16.msra.mxu0 %v8890_v3 }
 0x994   :  { %3920 = vmatprep.subr.bf16.mxu1 %v8894_v63  ;;  %3961 = vmatprep.subr.bf16.mxu0 %v8896_v45 }
 0x996   :  { %3565 = vmatmul.mubr.bf16.gmra.mxu1 %v3287_v33  ;;  %3638 = vmatmul.mubr.bf16.gmra.mxu0 %v3287_v33 }
 0x997   :  { %3921 = vmatpush1.bf16.msra.mxu1 %v8908_v0  ;;  %3962 = vmatpush1.bf16.msra.mxu0 %v8916_v5 }
 0x998   :  { %3922 = vmatprep.subr.bf16.mxu1 %v8922_v57  ;;  %3963 = vmatprep.subr.bf16.mxu0 %v8924_v32 }
 0x999   :  { %3940 = vmatprep.mubr.bf16.mxu1 %v9926_v8  ;;  %3981 = vmatprep.mubr.bf16.mxu0 %v9926_v8 }
 0x99b   :  { %3923 = vmatpush1.bf16.msra.mxu1 %v8928_v41  ;;  %3964 = vmatpush1.bf16.msra.mxu0 %v8930_v6 }
 0x99c   :  { %4216 = vmatprep.subr.bf16.mxu1 %v8759_v20  ;;  %4257 = vmatprep.subr.bf16.mxu0 %v8762_v21 }
 0x99e   :  { %3941 = vmatmul.mubr.bf16.vlgmr.msra.gmra.mxu1 %v9926_v8  ;;  %3982 = vmatmul.mubr.bf16.vlgmr.msra.gmra.mxu0 %v9926_v8 }
 0x99f   :  { %4217 = vmatpush1.bf16.msra.mxu1 %v8784_v54  ;;  %4258 = vmatpush1.bf16.msra.mxu0 %v8798_v9 }
 0x9a0   :  { %4218 = vmatprep.subr.bf16.mxu1 %v8802_v12  ;;  %4259 = vmatprep.subr.bf16.mxu0 %v8804_v13 }
 0x9a1   :  { %4248 = vmatprep.mubr.bf16.mxu1 %v9926_v8  ;;  %4289 = vmatprep.mubr.bf16.mxu0 %v9926_v8 }
 0x9a3   :  { %4219 = vmatpush1.bf16.msra.mxu1 %v8808_v15  ;;  %4260 = vmatpush1.bf16.msra.mxu0 %v8810_v16 }
 0x9a4   :  { %4220 = vmatprep.subr.bf16.mxu1 %v8814_v17  ;;  %4261 = vmatprep.subr.bf16.mxu0 %v8816_v18 }
 0x9a7   :  { %4221 = vmatpush1.bf16.msra.mxu1 %v8828_v26  ;;  %4262 = vmatpush1.bf16.msra.mxu0 %v8836_v29 }
 0x9a8   :  { %4222 = vmatprep.subr.bf16.mxu1 %v8842_v35  ;;  %4263 = vmatprep.subr.bf16.mxu0 %v8844_v37 }
 0x9ab   :  { %4223 = vmatpush1.bf16.msra.mxu1 %v8848_v38  ;;  %4264 = vmatpush1.bf16.msra.mxu0 %v8850_v39 }
 0x9ac   :  { %4224 = vmatprep.subr.bf16.mxu1 %v8854_v42  ;;  %4265 = vmatprep.subr.bf16.mxu0 %v8856_v44 }
 0x9af   :  { %4225 = vmatpush1.bf16.msra.mxu1 %v8868_v36  ;;  %4266 = vmatpush1.bf16.msra.mxu0 %v8876_v47 }
 0x9b0   :  { %4226 = vmatprep.subr.bf16.mxu1 %v8882_v2  ;;  %4267 = vmatprep.subr.bf16.mxu0 %v8884_v4 }
 0x9b3   :  { %4227 = vmatpush1.bf16.msra.mxu1 %v8888_v49  ;;  %4268 = vmatpush1.bf16.msra.mxu0 %v8890_v3 }
 0x9b4   :  { %4228 = vmatprep.subr.bf16.mxu1 %v8894_v63  ;;  %4269 = vmatprep.subr.bf16.mxu0 %v8896_v45 }
 0x9b7   :  { %4229 = vmatpush1.bf16.msra.mxu1 %v8908_v0  ;;  %4270 = vmatpush1.bf16.msra.mxu0 %v8916_v5 }
 0x9b8   :  { %4230 = vmatprep.subr.bf16.mxu1 %v8922_v57  ;;  %4271 = vmatprep.subr.bf16.mxu0 %v8924_v32 }
 0x9bb   :  { %4231 = vmatpush1.bf16.msra.mxu1 %v8928_v41  ;;  %4272 = vmatpush1.bf16.msra.mxu0 %v8930_v6 }
 0x9bc   :  { %4524 = vmatprep.subr.bf16.mxu1 %v8759_v20  ;;  %4565 = vmatprep.subr.bf16.mxu0 %v8762_v21 }
 0xa3e   :  { %v8979_v62 = vpop.f32.mrf.mxu1  ;;  %v8981_v27 = vpop.f32.mrf.mxu0 }
 0xa40   :  { %v8983_v14 = vpop.f32.mrf.mxu1  ;;  %v8985_v40 = vpop.f32.mrf.mxu0 }
 0xa42   :  { %v3540_v7 = vpop.f32.mrf.mxu1  ;;  %v3613_v22 = vpop.f32.mrf.mxu0 }
 0xa43   :  { %v9004_v31 = vadd.f32 %v3540_v7, %v8989_v61  ;;  %v9007_v46 = vadd.f32 %v3613_v22, %v8993_v1 }
 0xa44   :  { %v3542_v33 = vpop.f32.mrf.mxu1  ;;  %v3615_v34 = vpop.f32.mrf.mxu0 }
 0xa45   :  { %10001 = vst [vmem:[#allocation32_spill] sm:$0xff] %v9007_v46  ;;  %v9010_v53 = vadd.f32 %v3542_v33, %v8997_v43  ;;  %v9013_v60 = vadd.f32 %v3615_v34, %v9001_v23 }
 0xa46   :  { %v3546_v55 = vpop.f32.mrf.mxu1  ;;  %v3619_v58 = vpop.f32.mrf.mxu0 }
 0xa47   :  { %10002 = vst [vmem:[#allocation47_spill] sm:$0xff] %v9010_v53  ;;  %10003 = vst [vmem:[#allocation45_spill] sm:$0xff] %v9013_v60  ;;  %v3547_v51 = vadd.f32 %v3546_v55, %v8989_v61  ;;  %v9017_v56 = vadd.f32 %v3619_v58, %v8993_v1 }
 0xa48   :  { %v3548_v7 = vpop.f32.mrf.mxu1  ;;  %v3621_v10 = vpop.f32.mrf.mxu0 }
 0xa49   :  { %v9020_v22 = vadd.f32 %v3548_v7, %v8997_v43  ;;  %v9023_v11 = vadd.f32 %v3621_v10, %v9001_v23 }
 0xa4a   :  { %v3550_v33 = vpop.f32.mrf.mxu1  ;;  %v3623_v48 = vpop.f32.mrf.mxu0 }
 0xa4b   :  { %10004 = vst [vmem:[#allocation30_spill] sm:$0xff] %v9023_v11  ;;  %v3551_v34 = vadd.f32 %v3550_v33, %v8989_v61  ;;  %v9027_v50 = vadd.f32 %v3623_v48, %v8993_v1 }
 0xa4c   :  { %v3552_v19 = vpop.f32.mrf.mxu1  ;;  %v3625_v55 = vpop.f32.mrf.mxu0 }
 0xa4d   :  { %10005 = vst [vmem:[#allocation44_spill] sm:$0xff] %v9027_v50  ;;  %v9030_v58 = vadd.f32 %v3552_v19, %v8997_v43  ;;  %v9033_v28 = vadd.f32 %v3625_v55, %v9001_v23 }
 0xa4e   :  { %v3556_v7 = vpop.f32.mrf.mxu1  ;;  %v3629_v24 = vpop.f32.mrf.mxu0 }
 0xa4f   :  { %10006 = vst [vmem:[#allocation29_spill] sm:$0xff] %v9030_v58  ;;  %10007 = vst [vmem:[#allocation46_spill] sm:$0xff] %v9033_v28  ;;  %v3557_v10 = vadd.f32 %v3556_v7, %v8989_v61  ;;  %v9037_v21 = vadd.f32 %v3629_v24, %v8993_v1  ;;  %v3537_v28 = vadd.f32 %v8979_v62, %v8989_v61 }
 0xa50   :  { %v3558_v20 = vpop.f32.mrf.mxu1  ;;  %v3631_v33 = vpop.f32.mrf.mxu0 }
 0xa51   :  { %10008 = vst [vmem:[#allocation31_spill] sm:$0xff] %v9037_v21  ;;  %v9040_v48 = vadd.f32 %v3558_v20, %v8997_v43  ;;  %v9043_v6 = vadd.f32 %v3631_v33, %v9001_v23  ;;  %v9047_v19 = vsel %vm334_vm8, %v3551_v34, %v3557_v10  ;;  %v9055_v41 = vsel %vm334_vm8, %v3557_v10, %v3551_v34 }
 0xa52   :  { %10011 = vst [vmem:[#allocation50_spill] sm:$0xff] %v9047_v19  ;;  %v3560_v7 = vpop.f32.mrf.mxu1  ;;  %v3633_v24 = vpop.f32.mrf.mxu0  ;;  %10012 = vst [vmem:[#allocation48_spill] sm:$0xff] %v9055_v41 }
 0xa53   :  { %10009 = vst [vmem:[#allocation54_spill] sm:$0xff] %v9040_v48  ;;  %10010 = vst [vmem:[#allocation51_spill] sm:$0xff] %v9043_v6  ;;  %v3561_v33 = vadd.f32 %v3560_v7, %v8989_v61  ;;  %v9063_v19 = vadd.f32 %v3633_v24, %v8993_v1 }
 0xa54   :  { %v3562_v10 = vpop.f32.mrf.mxu1  ;;  %v3635_v41 = vpop.f32.mrf.mxu0 }
 0xa55   :  { %10013 = vst [vmem:[#allocation49_spill] sm:$0xff] %v9063_v19  ;;  %v9082_v20 = vadd.f32 %v3562_v10, %v8997_v43  ;;  %v9085_v55 = vadd.f32 %v3635_v41, %v9001_v23  ;;  %v9089_v34 = vsel %vm334_vm8, %v3547_v51, %v3561_v33  ;;  %v9097_v24 = vsel %vm334_vm8, %v3561_v33, %v3547_v51 }
 0xa56   :  { %v3566_v21 = vpop.f32.mrf.mxu1  ;;  %v3639_v50 = vpop.f32.mrf.mxu0  ;;  %10015 = vst [vmem:[#allocation53_spill] sm:$0xff] %v9097_v24 }
 0xa57   :  { %10014 = vst [vmem:[#allocation52_spill] sm:$0xff] %v9085_v55  ;;  %v3567_v10 = vadd.f32 %v3566_v21, %v8989_v61  ;;  %v9105_v6 = vadd.f32 %v3639_v50, %v8993_v1 }
 0xa58   :  { %v3568_v33 = vpop.f32.mrf.mxu1  ;;  %v3641_v24 = vpop.f32.mrf.mxu0 }
 0xa59   :  { %10016 = vst [vmem:[#allocation55_spill] sm:$0xff] %v9105_v6  ;;  %v9124_v41 = vadd.f32 %v3568_v33, %v8997_v43  ;;  %v9127_v7 = vadd.f32 %v3641_v24, %v9001_v23  ;;  %v9132_v51 = vsel %vm334_vm8, %v9004_v31, %v3567_v10  ;;  %v9143_v24 = vsel %vm334_vm8, %v3567_v10, %v9004_v31 }
 0xa5a   :  { %v3570_v50 = vpop.f32.mrf.mxu1  ;;  %v3643_v48 = vpop.f32.mrf.mxu0  ;;  %10019 = vst [vmem:[#allocation28_spill] sm:$0xff] %v9143_v24  ;;  %v9163_v10 = vadd.f32 %v8981_v27, %v8993_v1 }
 0xa5b   :  { %10017 = vst [vmem:[#allocation27_spill] sm:$0xff] %v9124_v41  ;;  %10018 = vst [vmem:[#allocation17_spill] sm:$0xff] %v9127_v7  ;;  %v3571_v58 = vadd.f32 %v3570_v50, %v8989_v61  ;;  %v9151_v55 = vadd.f32 %v3643_v48, %v8993_v1  ;;  %v9175_v50 = vadd.f32 %v8983_v14, %v8997_v43 }
 0xa5c   :  { %10021 = vst [vmem:[#allocation57_spill] sm:$0xff] %v9163_v10  ;;  %v3572_v33 = vpop.f32.mrf.mxu1  ;;  %v3645_v21 = vpop.f32.mrf.mxu0  ;;  %v9187_v61 = vadd.f32 %v8985_v40, %v9001_v23 }
 0xa5d   :  { %10020 = vst [vmem:[#allocation56_spill] sm:$0xff] %v9151_v55  ;;  %10022 = vst [vmem:[#allocation58_spill] sm:$0xff] %v9175_v50  ;;  %v9178_v31 = vadd.f32 %v3572_v33, %v8997_v43  ;;  %v9181_v27 = vadd.f32 %v3645_v21, %v9001_v23  ;;  %v3648_v1 = vsel %vm334_vm8, %v3537_v28, %v3571_v58 }
 0xa5e   :  { %10025 = vst [vmem:[#allocation61_spill] sm:$0xff] %v9187_v61  ;;  %v3942_v62 = vpop.f32.mrf.mxu1  ;;  %v3983_v24 = vpop.f32.mrf.mxu0  ;;  %v9191_v48 = vsel %vm334_vm8, %v3571_v58, %v3537_v28  ;;  %v3650_v19 = vsel %vm8146_vm9, %v9163_v10, %v9151_v55 }
 0xa5f   :  { %10023 = vst [vmem:[#allocation59_spill] sm:$0xff] %v9178_v31  ;;  %10024 = vst [vmem:[#allocation60_spill] sm:$0xff] %v9181_v27  ;;  %v3990_v43 = vadd.f32 %v3942_v62, %v3648_v1  ;;  %v3649_v21 = vsel %vm8154_vm10, %v9175_v50, %v9178_v31  ;;  %v3992_v23 = vadd.f32 %v3983_v24, %v3650_v19 }
 0xa60   :  { %10026 = vst [vmem:[#allocation62_spill] sm:$0xff] %v9191_v48  ;;  %v3944_v33 = vpop.f32.mrf.mxu1  ;;  %v3985_v40 = vpop.f32.mrf.mxu0  ;;  %v3651_v28 = vsel %vm8158_vm11, %v9187_v61, %v9181_v27 }
 0xa61   :  { %v6746_v58 = vmul.f32 -1.442695, %v3990_v43  ;;  %v3991_v14 = vadd.f32 %v3944_v33, %v3649_v21  ;;  %v6748_v43 = vmul.f32 -1.442695, %v3992_v23  ;;  %v3993_v33 = vadd.f32 %v3985_v40, %v3651_v28 }
 0xa62   :  { %v3946_v62 = vpop.f32.mrf.mxu1  ;;  %v3987_v1 = vpop.f32.mrf.mxu0 }
 0xa63   :  { %7544 = vpow2.f32 %v6746_v58  ;;  %v6747_v48 = vmul.f32 -1.442695, %v3991_v14 }
 0xa64   :  { %v3947_v59 = vpop.f32.mrf.mxu1  ;;  %v3988_v11 = vpop.f32.mrf.mxu0 }
 0xa65   :  { %7546 = vpow2.f32 %v6747_v48 }
 0xa66   :  { %7548 = vpow2.f32 %v6748_v43  ;;  %v10089_v25 = vld [vmem:[#allocation60_spill] sm:$0xff] }
 0xa70   :  { %v7545_v21 = vpop.eup %7544 }
 0xa71   :  { %v4003_v62 = vadd.f32 1.0, %v7545_v21  ;;  %v10029_v21 = vld [vmem:[#allocation43_spill] sm:$0xff] }
 0xa72   :  { %v7547_v58 = vpop.eup %7546 }
 0xa73   :  { %7550 = vrcp.f32 %v4003_v62  ;;  %v4004_v59 = vadd.f32 1.0, %v7547_v58  ;;  %v7549_v11 = vpop.eup %7548  ;;  %v10031_v62 = vld [vmem:[#allocation41_spill] sm:$0xff] }
 0xa74   :  { %7552 = vtanh.f32 %v3993_v33  ;;  %v4005_v19 = vadd.f32 1.0, %v7549_v11  ;;  %v10030_v33 = vld [vmem:[#allocation18_spill] sm:$0xff] }
 0xa75   :  { %7554 = vrcp.f32 %v4004_v59 }
 0xa76   :  { %7556 = vrcp.f32 %v4005_v19  ;;  %v10032_v19 = vsel %vm8154_vm10, %v9010_v53, %v9124_v41  ;;  %v10050_v53 = vld [vmem:[#allocation46_spill] sm:$0xff]  ;;  %v10051_v41 = vld [vmem:[#allocation51_spill] sm:$0xff] }
 0xa80   :  { %v7551_v48 = vpop.eup %7550 }
 0xa81   :  { %v7553_v14 = vpop.eup %7552 }
 0xa82   :  { %v7555_v1 = vpop.eup %7554  ;;  %v4014_v10 = vmul.f32 %v7553_v14, %v7551_v48 }
 0xa83   :  { %v4013_v24 = vmul.f32 0.0, %v7555_v1  ;;  %v7557_v40 = vpop.eup %7556 }
 0xa85   :  { %v9217_v55 = vadd.f32 %v4014_v10, %v4013_v24  ;;  %v10028_v10 = vld [vmem:[#allocation40_spill] sm:$0xff] }
 0xa87   :  { %7558 = vtanh.f32 %v9217_v55 }
 0xa94   :  { %v7559_v23 = vpop.eup %7558 }
 0xa95   :  { %v9220_v28 = vmul.f32 %v7559_v23, %v7557_v40 }
 0xa97   :  { %10027 = vst [vmem:[#allocation63_spill] sm:$0xff] %v9220_v28  ;;  %v4023_v43 = vpack.c.bf16 %v9220_v28, %v9220_v28 }
 0xa99   :  { %4249 = vmatmul.mubr.bf16.vlgmr.msra.gmra.mxu1 %v4023_v43  ;;  %4290 = vmatmul.mubr.bf16.vlgmr.msra.gmra.mxu0 %v4023_v43 }
 0xa9a   :  { %4525 = vmatpush1.bf16.msra.mxu1 %v8784_v54  ;;  %4566 = vmatpush1.bf16.msra.mxu0 %v8798_v9 }
 0xa9b   :  { %4526 = vmatprep.subr.bf16.mxu1 %v8802_v12  ;;  %4567 = vmatprep.subr.bf16.mxu0 %v8804_v13 }
 0xa9c   :  { %4556 = vmatprep.mubr.bf16.mxu1 %v9926_v8  ;;  %4597 = vmatprep.mubr.bf16.mxu0 %v9926_v8 }
 0xa9e   :  { %4527 = vmatpush1.bf16.msra.mxu1 %v8808_v15  ;;  %4568 = vmatpush1.bf16.msra.mxu0 %v8810_v16 }
 0xa9f   :  { %4528 = vmatprep.subr.bf16.mxu1 %v8814_v17  ;;  %4569 = vmatprep.subr.bf16.mxu0 %v8816_v18 }
 0xaa2   :  { %4529 = vmatpush1.bf16.msra.mxu1 %v8828_v26  ;;  %4570 = vmatpush1.bf16.msra.mxu0 %v8836_v29 }
 0xaa3   :  { %4530 = vmatprep.subr.bf16.mxu1 %v8842_v35  ;;  %4571 = vmatprep.subr.bf16.mxu0 %v8844_v37 }
 0xaa6   :  { %4531 = vmatpush1.bf16.msra.mxu1 %v8848_v38  ;;  %4572 = vmatpush1.bf16.msra.mxu0 %v8850_v39 }
 0xaa7   :  { %4532 = vmatprep.subr.bf16.mxu1 %v8854_v42  ;;  %4573 = vmatprep.subr.bf16.mxu0 %v8856_v44 }
 0xaaa   :  { %4533 = vmatpush1.bf16.msra.mxu1 %v8868_v36  ;;  %4574 = vmatpush1.bf16.msra.mxu0 %v8876_v47 }
 0xaab   :  { %4534 = vmatprep.subr.bf16.mxu1 %v8882_v2  ;;  %4575 = vmatprep.subr.bf16.mxu0 %v8884_v4 }
 0xaae   :  { %4535 = vmatpush1.bf16.msra.mxu1 %v8888_v49  ;;  %4576 = vmatpush1.bf16.msra.mxu0 %v8890_v3 }
 0xaaf   :  { %4536 = vmatprep.subr.bf16.mxu1 %v8894_v63  ;;  %4577 = vmatprep.subr.bf16.mxu0 %v8896_v45 }
 0xab2   :  { %4537 = vmatpush1.bf16.msra.mxu1 %v8908_v0  ;;  %4578 = vmatpush1.bf16.msra.mxu0 %v8916_v5 }
 0xab3   :  { %4538 = vmatprep.subr.bf16.mxu1 %v8922_v57  ;;  %4579 = vmatprep.subr.bf16.mxu0 %v8924_v32 }
 0xab6   :  { %4539 = vmatpush1.bf16.msra.mxu1 %v10028_v10  ;;  %4580 = vmatpush1.bf16.msra.mxu0 %v10029_v21 }
 0xab7   :  { %4832 = vmatprep.subr.bf16.mxu1 %v10030_v33  ;;  %4873 = vmatprep.subr.bf16.mxu0 %v10031_v62 }
 0xb59   :  { %v4250_v58 = vpop.f32.mrf.mxu1  ;;  %v4291_v59 = vpop.f32.mrf.mxu0 }
 0xb5a   :  { %v4298_v11 = vadd.f32 %v4250_v58, %v9132_v51  ;;  %v10033_v51 = vsel %vm8146_vm9, %v9007_v46, %v9105_v6  ;;  %v10047_v46 = vld [vmem:[#allocation44_spill] sm:$0xff] }
 0xb5b   :  { %v4252_v48 = vpop.f32.mrf.mxu1  ;;  %v4293_v14 = vpop.f32.mrf.mxu0  ;;  %v4300_v62 = vadd.f32 %v4291_v59, %v10033_v51 }
 0xb5c   :  { %v6781_v1 = vmul.f32 -1.442695, %v4298_v11  ;;  %v4299_v24 = vadd.f32 %v4252_v48, %v10032_v19  ;;  %v10034_v11 = vsel %vm8158_vm11, %v9013_v60, %v9127_v7 }
 0xb5d   :  { %v4254_v40 = vpop.f32.mrf.mxu1  ;;  %v4295_v23 = vpop.f32.mrf.mxu0  ;;  %v6783_v58 = vmul.f32 -1.442695, %v4300_v62  ;;  %v4301_v48 = vadd.f32 %v4293_v14, %v10034_v11 }
 0xb5e   :  { %7560 = vpow2.f32 %v6781_v1  ;;  %v6782_v43 = vmul.f32 -1.442695, %v4299_v24 }
 0xb5f   :  { %v4255_v33 = vpop.f32.mrf.mxu1  ;;  %v4296_v28 = vpop.f32.mrf.mxu0 }
 0xb60   :  { %7562 = vpow2.f32 %v6782_v43 }
 0xb61   :  { %7564 = vpow2.f32 %v6783_v58 }
 0xb62   :  { %7566 = vtanh.f32 %v4301_v48 }
 0xb6b   :  { %v7561_v19 = vpop.eup %7560 }
 0xb6c   :  { %v4311_v40 = vadd.f32 1.0, %v7561_v19 }
 0xb6d   :  { %v7563_v1 = vpop.eup %7562 }
 0xb6e   :  { %7568 = vrcp.f32 %v4311_v40  ;;  %v4312_v28 = vadd.f32 1.0, %v7563_v1  ;;  %v7565_v24 = vpop.eup %7564 }
 0xb6f   :  { %v7567_v23 = vpop.eup %7566  ;;  %v4313_v51 = vadd.f32 1.0, %v7565_v24 }
 0xb70   :  { %7570 = vrcp.f32 %v4312_v28 }
 0xb71   :  { %7572 = vrcp.f32 %v4313_v51  ;;  %v9354_v51 = vld [vmem:[#allocation12 + $0xcc] ss:$16 sps:$4 sm:$0xff]  }
 0xb7b   :  { %v7569_v43 = vpop.eup %7568 }
 0xb7c   :  { %v4322_v33 = vmul.f32 %v7569_v43, %v7567_v23  ;;  %v9340_v23 = vld [vmem:[#allocation12 + $0xe4] ss:$16 sps:$4 sm:$0xff]   ;;  %v9344_v43 = vld [vmem:[#allocation12 + $0xe0] ss:$16 sps:$4 sm:$0xff]  }
 0xb7d   :  { %v7571_v59 = vpop.eup %7570 }
 0xb7e   :  { %v4321_v62 = vmul.f32 %v7571_v59, %v9217_v55  ;;  %v7573_v14 = vpop.eup %7572  ;;  %v9352_v59 = vld [vmem:[#allocation12 + $0xc4] ss:$16 sps:$4 sm:$0xff]  }
 0xb80   :  { %v9275_v61 = vadd.f32 %v4322_v33, %v4321_v62  ;;  %v9346_v33 = vld [vmem:[#allocation12 + $0xe8] ss:$16 sps:$4 sm:$0xff]   ;;  %v9356_v62 = vld [vmem:[#allocation12 + $0xc0] ss:$16 sps:$4 sm:$0xff]  }
 0xb82   :  { %7574 = vtanh.f32 %v9275_v61 }
 0xb8f   :  { %v7575_v58 = vpop.eup %7574 }
 0xb90   :  { %v9278_v11 = vmul.f32 %v7575_v58, %v7573_v14  ;;  %v9358_v14 = vld [vmem:[#allocation12 + $0xc8] ss:$16 sps:$4 sm:$0xff]   ;;  %v9364_v58 = vld [vmem:[#allocation12 + $0xa4] ss:$16 sps:$4 sm:$0xff]  }
 0xb92   :  { %10035 = vst [vmem:[#allocation40_spill] sm:$0xff] %v9278_v11  ;;  %v4331_v48 = vpack.c.bf16 %v9278_v11, %v9278_v11 }
 0xb94   :  { %4557 = vmatmul.mubr.bf16.vlgmr.msra.gmra.mxu1 %v4331_v48  ;;  %4598 = vmatmul.mubr.bf16.vlgmr.msra.gmra.mxu0 %v4331_v48  ;;  %v9366_v48 = vld [vmem:[#allocation12 + $0xac] ss:$16 sps:$4 sm:$0xff]  }
 0xb95   :  { %4833 = vmatpush1.bf16.msra.mxu1 %v8784_v54  ;;  %4874 = vmatpush1.bf16.msra.mxu0 %v8798_v9 }
 0xb96   :  { %4834 = vmatprep.subr.bf16.mxu1 %v8802_v12  ;;  %4875 = vmatprep.subr.bf16.mxu0 %v8804_v13 }
 0xb97   :  { %4864 = vmatprep.mubr.bf16.mxu1 %v9926_v8  ;;  %4905 = vmatprep.mubr.bf16.mxu0 %v9926_v8 }
 0xb99   :  { %4835 = vmatpush1.bf16.msra.mxu1 %v8808_v15  ;;  %4876 = vmatpush1.bf16.msra.mxu0 %v8810_v16 }
 0xb9a   :  { %4836 = vmatprep.subr.bf16.mxu1 %v8814_v17  ;;  %4877 = vmatprep.subr.bf16.mxu0 %v8816_v18  ;;  %v10036_v17 = vsel %vm8154_vm10, %v9020_v22, %v9082_v20 }
 0xb9d   :  { %4837 = vmatpush1.bf16.msra.mxu1 %v8828_v26  ;;  %4878 = vmatpush1.bf16.msra.mxu0 %v8836_v29 }
 0xb9e   :  { %4838 = vmatprep.subr.bf16.mxu1 %v8842_v35  ;;  %4879 = vmatprep.subr.bf16.mxu0 %v8844_v37 }
 0xba1   :  { %4839 = vmatpush1.bf16.msra.mxu1 %v8848_v38  ;;  %4880 = vmatpush1.bf16.msra.mxu0 %v8850_v39  ;;  %v10037_v39 = vld [vmem:[#allocation49_spill] sm:$0xff] }
 0xba2   :  { %4840 = vmatprep.subr.bf16.mxu1 %v8854_v42  ;;  %4881 = vmatprep.subr.bf16.mxu0 %v8856_v44  ;;  %v10038_v42 = vsel %vm8146_vm9, %v9017_v56, %v10037_v39 }
 0xba5   :  { %4841 = vmatpush1.bf16.msra.mxu1 %v8868_v36  ;;  %4882 = vmatpush1.bf16.msra.mxu0 %v8876_v47  ;;  %v10039_v47 = vld [vmem:[#allocation30_spill] sm:$0xff] }
 0xba6   :  { %4842 = vmatprep.subr.bf16.mxu1 %v8882_v2  ;;  %4883 = vmatprep.subr.bf16.mxu0 %v8884_v4  ;;  %v10040_v2 = vld [vmem:[#allocation52_spill] sm:$0xff] }
 0xba7   :  { %v10041_v4 = vsel %vm8158_vm11, %v10039_v47, %v10040_v2 }
 0xba9   :  { %4843 = vmatpush1.bf16.msra.mxu1 %v8888_v49  ;;  %4884 = vmatpush1.bf16.msra.mxu0 %v8890_v3 }
 0xbaa   :  { %4844 = vmatprep.subr.bf16.mxu1 %v8894_v63  ;;  %4885 = vmatprep.subr.bf16.mxu0 %v8896_v45 }
 0xbad   :  { %4845 = vmatpush1.bf16.msra.mxu1 %v8908_v0  ;;  %4886 = vmatpush1.bf16.msra.mxu0 %v8916_v5 }
 0xbae   :  { %4846 = vmatprep.subr.bf16.mxu1 %v8922_v57  ;;  %4887 = vmatprep.subr.bf16.mxu0 %v8924_v32 }
 0xbb1   :  { %4847 = vmatpush1.bf16.msra.mxu1 %v10028_v10  ;;  %4888 = vmatpush1.bf16.msra.mxu0 %v10029_v21 }
 0xbb2   :  { %5140 = vmatprep.subr.bf16.mxu1 %v9340_v23 }
 0xc54   :  { %v4558_v54 = vpop.f32.mrf.mxu1  ;;  %v4599_v9 = vpop.f32.mrf.mxu0 }
 0xc55   :  { %v4606_v12 = vadd.f32 %v4558_v54, %v9089_v34  ;;  %v4608_v44 = vadd.f32 %v4599_v9, %v10038_v42  ;;  %v9368_v54 = vld [vmem:[#allocation12 + $0xa0] ss:$16 sps:$4 sm:$0xff]   ;;  %v9370_v9 = vld [vmem:[#allocation12 + $0xa8] ss:$16 sps:$4 sm:$0xff]  }
 0xc56   :  { %v4560_v13 = vpop.f32.mrf.mxu1  ;;  %v4601_v15 = vpop.f32.mrf.mxu0  ;;  %v9406_v42 = vld [vmem:[#allocation12 + $0x48] ss:$16 sps:$4 sm:$0xff]  }
 0xc57   :  { %v6816_v16 = vmul.f32 -1.442695, %v4606_v12  ;;  %v4607_v18 = vadd.f32 %v4560_v13, %v10036_v17  ;;  %v6818_v36 = vmul.f32 -1.442695, %v4608_v44  ;;  %v4609_v49 = vadd.f32 %v4601_v15, %v10041_v4  ;;  %v9376_v12 = vld [vmem:[#allocation12 + $0x84] ss:$16 sps:$4 sm:$0xff]  }
 0xc58   :  { %v4562_v26 = vpop.f32.mrf.mxu1  ;;  %v4603_v29 = vpop.f32.mrf.mxu0  ;;  %v9378_v13 = vld [vmem:[#allocation12 + $0x8c] ss:$16 sps:$4 sm:$0xff]   ;;  %v9380_v15 = vld [vmem:[#allocation12 + $0x80] ss:$16 sps:$4 sm:$0xff]   ;;  %v9386_v17 = vld [vmem:[#allocation12 + $0x64] ss:$16 sps:$4 sm:$0xff]  }
 0xc59   :  { %7576 = vpow2.f32 %v6816_v16  ;;  %v6817_v35 = vmul.f32 -1.442695, %v4607_v18  ;;  %v9382_v16 = vld [vmem:[#allocation12 + $0x88] ss:$16 sps:$4 sm:$0xff]   ;;  %v9388_v18 = vld [vmem:[#allocation12 + $0x6c] ss:$16 sps:$4 sm:$0xff]  }
 0xc5a   :  { %v4563_v37 = vpop.f32.mrf.mxu1  ;;  %v4604_v38 = vpop.f32.mrf.mxu0  ;;  %v9392_v26 = vld [vmem:[#allocation12 + $0x60] ss:$16 sps:$4 sm:$0xff]   ;;  %v9394_v29 = vld [vmem:[#allocation12 + $0x68] ss:$16 sps:$4 sm:$0xff]   ;;  %v9410_v44 = vld [vmem:[#allocation12 + $0x24] ss:$16 sps:$4 sm:$0xff]  }
 0xc5b   :  { %7578 = vpow2.f32 %v6817_v35  ;;  %v9398_v35 = vld [vmem:[#allocation12 + $0x44] ss:$16 sps:$4 sm:$0xff]   ;;  %v9400_v37 = vld [vmem:[#allocation12 + $0x4c] ss:$16 sps:$4 sm:$0xff]   ;;  %v9404_v38 = vld [vmem:[#allocation12 + $0x40] ss:$16 sps:$4 sm:$0xff]  }
 0xc5c   :  { %7580 = vpow2.f32 %v6818_v36  ;;  %v9412_v36 = vld [vmem:[#allocation12 + $0x2c] ss:$16 sps:$4 sm:$0xff]   ;;  %v9416_v4 = vld [vmem:[#allocation12 + $0x20] ss:$16 sps:$4 sm:$0xff]  }
 0xc5d   :  { %7582 = vtanh.f32 %v4609_v49  ;;  %v9418_v49 = vld [vmem:[#allocation12 + $0x28] ss:$16 sps:$4 sm:$0xff]  }
 0xc66   :  { %v7577_v3 = vpop.eup %7576 }
 0xc67   :  { %v4619_v63 = vadd.f32 1.0, %v7577_v3  ;;  %v9422_v3 = vld [vmem:[#allocation12 + $0x4] ss:$16 sps:$4 sm:$0xff]  }
 0xc68   :  { %v7579_v45 = vpop.eup %7578 }
 0xc69   :  { %7584 = vrcp.f32 %v4619_v63  ;;  %v4620_v0 = vadd.f32 1.0, %v7579_v45  ;;  %v7581_v5 = vpop.eup %7580  ;;  %v9424_v63 = vld [vmem:[#allocation12 + $0xc] ss:$16 sps:$4 sm:$0xff]   ;;  %v9428_v45 = vld [vmem:[#allocation12] ss:$16 sps:$4 sm:$0xff]  }
 0xc6a   :  { %v7583_v57 = vpop.eup %7582  ;;  %v4621_v10 = vadd.f32 1.0, %v7581_v5 }
 0xc6b   :  { %7586 = vrcp.f32 %v4620_v0  ;;  %v9430_v0 = vld [vmem:[#allocation12 + $0x8] ss:$16 sps:$4 sm:$0xff]  }
 0xc6c   :  { %7588 = vrcp.f32 %v4621_v10 }
 0xc76   :  { %v7585_v32 = vpop.eup %7584 }
 0xc77   :  { %v4630_v55 = vmul.f32 %v7585_v32, %v7583_v57  ;;  %v10043_v32 = vld [vmem:[#allocation50_spill] sm:$0xff] }
 0xc78   :  { %v7587_v34 = vpop.eup %7586 }
 0xc79   :  { %v4629_v21 = vmul.f32 %v7587_v34, %v9275_v61  ;;  %v7589_v40 = vpop.eup %7588  ;;  %v9342_v61 = vld [vmem:[#allocation12 + $0xec] ss:$16 sps:$4 sm:$0xff]  }
 0xc7a   :  { %5181 = vmatprep.subr.bf16.mxu0 %v9342_v61 }
 0xc7b   :  { %v9331_v19 = vadd.f32 %v4630_v55, %v4629_v21 }
 0xc7d   :  { %7590 = vtanh.f32 %v9331_v19 }
 0xc8a   :  { %v7591_v1 = vpop.eup %7590 }
 0xc8b   :  { %v9334_v28 = vmul.f32 %v7591_v1, %v7589_v40  ;;  %v10044_v40 = vld [vmem:[#allocation29_spill] sm:$0xff]  ;;  %v10045_v1 = vld [vmem:[#allocation54_spill] sm:$0xff] }
 0xc8d   :  { %10042 = vst [vmem:[#allocation43_spill] sm:$0xff] %v9334_v28  ;;  %v4639_v24 = vpack.c.bf16 %v9334_v28, %v9334_v28  ;;  %v10052_v28 = vsel %vm8158_vm11, %v10050_v53, %v10051_v41 }
 0xc8f   :  { %4865 = vmatmul.mubr.bf16.vlgmr.msra.gmra.mxu1 %v4639_v24  ;;  %4906 = vmatmul.mubr.bf16.vlgmr.msra.gmra.mxu0 %v4639_v24  ;;  %v10046_v24 = vsel %vm8154_vm10, %v10044_v40, %v10045_v1 }
 0xc90   :  { %5172 = vmatprep.mubr.bf16.mxu1 %v9926_v8  ;;  %5213 = vmatprep.mubr.bf16.mxu0 %v9926_v8 }
 0xc91   :  { %5141 = vmatpush1.bf16.msra.mxu1 %v9344_v43  ;;  %5182 = vmatpush1.bf16.msra.mxu0 %v9346_v33 }
 0xc92   :  { %5142 = vmatprep.subr.bf16.mxu1 %v9352_v59  ;;  %5183 = vmatprep.subr.bf16.mxu0 %v9354_v51 }
 0xc95   :  { %5143 = vmatpush1.bf16.msra.mxu1 %v9356_v62  ;;  %5184 = vmatpush1.bf16.msra.mxu0 %v9358_v14 }
 0xc96   :  { %5144 = vmatprep.subr.bf16.mxu1 %v9364_v58  ;;  %5185 = vmatprep.subr.bf16.mxu0 %v9366_v48 }
 0xc99   :  { %5145 = vmatpush1.bf16.msra.mxu1 %v9368_v54  ;;  %5186 = vmatpush1.bf16.msra.mxu0 %v9370_v9 }
 0xc9a   :  { %5146 = vmatprep.subr.bf16.mxu1 %v9376_v12  ;;  %5187 = vmatprep.subr.bf16.mxu0 %v9378_v13 }
 0xc9d   :  { %5147 = vmatpush1.bf16.msra.mxu1 %v9380_v15  ;;  %5188 = vmatpush1.bf16.msra.mxu0 %v9382_v16 }
 0xc9e   :  { %5148 = vmatprep.subr.bf16.mxu1 %v9386_v17  ;;  %5189 = vmatprep.subr.bf16.mxu0 %v9388_v18 }
 0xca1   :  { %5149 = vmatpush1.bf16.msra.mxu1 %v9392_v26  ;;  %5190 = vmatpush1.bf16.msra.mxu0 %v9394_v29 }
 0xca2   :  { %5150 = vmatprep.subr.bf16.mxu1 %v9398_v35  ;;  %5191 = vmatprep.subr.bf16.mxu0 %v9400_v37 }
 0xca5   :  { %5151 = vmatpush1.bf16.msra.mxu1 %v9404_v38  ;;  %5192 = vmatpush1.bf16.msra.mxu0 %v9406_v42 }
 0xca6   :  { %5152 = vmatprep.subr.bf16.mxu1 %v9410_v44  ;;  %5193 = vmatprep.subr.bf16.mxu0 %v9412_v36 }
 0xca9   :  { %5153 = vmatpush1.bf16.msra.mxu1 %v9416_v4  ;;  %5194 = vmatpush1.bf16.msra.mxu0 %v9418_v49 }
 0xcaa   :  { %5154 = vmatprep.subr.bf16.mxu1 %v9422_v3  ;;  %5195 = vmatprep.subr.bf16.mxu0 %v9424_v63 }
 0xcad   :  { %5155 = vmatpush1.bf16.msra.mxu1 %v9428_v45  ;;  %5196 = vmatpush1.bf16.msra.mxu0 %v9430_v0 }
 0xcae   :  { %5448 = vmatprep.subr.bf16.mxu1 %v9340_v23  ;;  %5489 = vmatprep.subr.bf16.mxu0 %v9342_v61 }
 0xd4f   :  { %v4866_v5 = vpop.f32.mrf.mxu1  ;;  %v4907_v57 = vpop.f32.mrf.mxu0 }
 0xd50   :  { %v4914_v55 = vadd.f32 %v4866_v5, %v10043_v32  ;;  %v10048_v5 = vld [vmem:[#allocation31_spill] sm:$0xff] }
 0xd51   :  { %v4868_v34 = vpop.f32.mrf.mxu1  ;;  %v4909_v10 = vpop.f32.mrf.mxu0  ;;  %v10049_v32 = vsel %vm8146_vm9, %v10047_v46, %v10048_v5 }
 0xd52   :  { %v6851_v21 = vmul.f32 -1.442695, %v4914_v55  ;;  %v4915_v11 = vadd.f32 %v4868_v34, %v10046_v24  ;;  %v4916_v6 = vadd.f32 %v4907_v57, %v10049_v32  ;;  %v4917_v34 = vadd.f32 %v4909_v10, %v10052_v28 }
 0xd53   :  { %v4870_v27 = vpop.f32.mrf.mxu1  ;;  %v4911_v50 = vpop.f32.mrf.mxu0 }
 0xd54   :  { %7592 = vpow2.f32 %v6851_v21  ;;  %v6852_v31 = vmul.f32 -1.442695, %v4915_v11  ;;  %v6853_v55 = vmul.f32 -1.442695, %v4916_v6 }
 0xd55   :  { %v4871_v60 = vpop.f32.mrf.mxu1  ;;  %v4912_v7 = vpop.f32.mrf.mxu0 }
 0xd56   :  { %7594 = vpow2.f32 %v6852_v31 }
 0xd57   :  { %7596 = vpow2.f32 %v6853_v55 }
 0xd58   :  { %7598 = vtanh.f32 %v4917_v34 }
 0xd61   :  { %v7593_v27 = vpop.eup %7592 }
 0xd62   :  { %v4927_v50 = vadd.f32 1.0, %v7593_v27 }
 0xd63   :  { %v7595_v11 = vpop.eup %7594 }
 0xd64   :  { %7600 = vrcp.f32 %v4927_v50  ;;  %v4928_v60 = vadd.f32 1.0, %v7595_v11  ;;  %v7597_v7 = vpop.eup %7596  ;;  %v10053_v50 = vld [vmem:[#allocation48_spill] sm:$0xff] }
 0xd65   :  { %v7599_v31 = vpop.eup %7598  ;;  %v4929_v6 = vadd.f32 1.0, %v7597_v7 }
 0xd66   :  { %7602 = vrcp.f32 %v4928_v60 }
 0xd67   :  { %7604 = vrcp.f32 %v4929_v6 }
 0xd71   :  { %v7601_v21 = vpop.eup %7600 }
 0xd72   :  { %v4938_v24 = vmul.f32 %v7601_v21, %v7599_v31  ;;  %v10054_v21 = vsel %vm8154_vm10, %v10045_v1, %v10044_v40  ;;  %v10056_v40 = vsel %vm8158_vm11, %v10051_v41, %v10050_v53 }
 0xd73   :  { %v7603_v57 = vpop.eup %7602 }
 0xd74   :  { %v4937_v32 = vmul.f32 %v7603_v57, %v9331_v19  ;;  %v7605_v28 = vpop.eup %7604 }
 0xd76   :  { %v9455_v47 = vadd.f32 %v4938_v24, %v4937_v32 }
 0xd78   :  { %7606 = vtanh.f32 %v9455_v47 }
 0xd85   :  { %v7607_v10 = vpop.eup %7606 }
 0xd86   :  { %v9458_v55 = vmul.f32 %v7607_v10, %v7605_v28 }
 0xd88   :  { %v4947_v34 = vpack.c.bf16 %v9458_v55, %v9458_v55 }
 0xd8a   :  { %5173 = vmatmul.mubr.bf16.vlgmr.msra.gmra.mxu1 %v4947_v34  ;;  %5214 = vmatmul.mubr.bf16.vlgmr.msra.gmra.mxu0 %v4947_v34  ;;  %v10055_v34 = vsel %vm8146_vm9, %v10048_v5, %v10047_v46 }
 0xd8b   :  { %5449 = vmatpush1.bf16.msra.mxu1 %v9344_v43  ;;  %5490 = vmatpush1.bf16.msra.mxu0 %v9346_v33 }
 0xd8c   :  { %5450 = vmatprep.subr.bf16.mxu1 %v9352_v59  ;;  %5491 = vmatprep.subr.bf16.mxu0 %v9354_v51 }
 0xd8d   :  { %5480 = vmatprep.mubr.bf16.mxu1 %v9926_v8  ;;  %5521 = vmatprep.mubr.bf16.mxu0 %v9926_v8 }
 0xd8f   :  { %5451 = vmatpush1.bf16.msra.mxu1 %v9356_v62  ;;  %5492 = vmatpush1.bf16.msra.mxu0 %v9358_v14 }
 0xd90   :  { %5452 = vmatprep.subr.bf16.mxu1 %v9364_v58  ;;  %5493 = vmatprep.subr.bf16.mxu0 %v9366_v48 }
 0xd93   :  { %5453 = vmatpush1.bf16.msra.mxu1 %v9368_v54  ;;  %5494 = vmatpush1.bf16.msra.mxu0 %v9370_v9 }
 0xd94   :  { %5454 = vmatprep.subr.bf16.mxu1 %v9376_v12  ;;  %5495 = vmatprep.subr.bf16.mxu0 %v9378_v13 }
 0xd97   :  { %5455 = vmatpush1.bf16.msra.mxu1 %v9380_v15  ;;  %5496 = vmatpush1.bf16.msra.mxu0 %v9382_v16 }
 0xd98   :  { %5456 = vmatprep.subr.bf16.mxu1 %v9386_v17  ;;  %5497 = vmatprep.subr.bf16.mxu0 %v9388_v18 }
 0xd9b   :  { %5457 = vmatpush1.bf16.msra.mxu1 %v9392_v26  ;;  %5498 = vmatpush1.bf16.msra.mxu0 %v9394_v29 }
 0xd9c   :  { %5458 = vmatprep.subr.bf16.mxu1 %v9398_v35  ;;  %5499 = vmatprep.subr.bf16.mxu0 %v9400_v37 }
 0xd9f   :  { %5459 = vmatpush1.bf16.msra.mxu1 %v9404_v38  ;;  %5500 = vmatpush1.bf16.msra.mxu0 %v9406_v42 }
 0xda0   :  { %5460 = vmatprep.subr.bf16.mxu1 %v9410_v44  ;;  %5501 = vmatprep.subr.bf16.mxu0 %v9412_v36 }
 0xda3   :  { %5461 = vmatpush1.bf16.msra.mxu1 %v9416_v4  ;;  %5502 = vmatpush1.bf16.msra.mxu0 %v9418_v49 }
 0xda4   :  { %5462 = vmatprep.subr.bf16.mxu1 %v9422_v3  ;;  %5503 = vmatprep.subr.bf16.mxu0 %v9424_v63 }
 0xda7   :  { %5463 = vmatpush1.bf16.msra.mxu1 %v9428_v45  ;;  %5504 = vmatpush1.bf16.msra.mxu0 %v9430_v0 }
 0xda8   :  { %5756 = vmatprep.subr.bf16.mxu1 %v9340_v23  ;;  %5797 = vmatprep.subr.bf16.mxu0 %v9342_v61 }
 0xe4a   :  { %v5174_v19 = vpop.f32.mrf.mxu1  ;;  %v5215_v27 = vpop.f32.mrf.mxu0 }
 0xe4b   :  { %v5222_v11 = vadd.f32 %v5174_v19, %v10053_v50  ;;  %v5224_v19 = vadd.f32 %v5215_v27, %v10055_v34 }
 0xe4c   :  { %v5176_v60 = vpop.f32.mrf.mxu1  ;;  %v5217_v7 = vpop.f32.mrf.mxu0 }
 0xe4d   :  { %v6886_v31 = vmul.f32 -1.442695, %v5222_v11  ;;  %v5223_v24 = vadd.f32 %v5176_v60, %v10054_v21  ;;  %v6888_v50 = vmul.f32 -1.442695, %v5224_v19  ;;  %v5225_v1 = vadd.f32 %v5217_v7, %v10056_v40  ;;  %v10057_v19 = vld [vmem:[#allocation53_spill] sm:$0xff] }
 0xe4e   :  { %v5178_v57 = vpop.f32.mrf.mxu1  ;;  %v5219_v6 = vpop.f32.mrf.mxu0 }
 0xe4f   :  { %7608 = vpow2.f32 %v6886_v31  ;;  %v6887_v32 = vmul.f32 -1.442695, %v5223_v24 }
 0xe50   :  { %v5179_v28 = vpop.f32.mrf.mxu1  ;;  %v5220_v10 = vpop.f32.mrf.mxu0 }
 0xe51   :  { %7610 = vpow2.f32 %v6887_v32 }
 0xe52   :  { %7612 = vpow2.f32 %v6888_v50 }
 0xe53   :  { %7614 = vtanh.f32 %v5225_v1 }
 0xe5c   :  { %v7609_v11 = vpop.eup %7608 }
 0xe5d   :  { %v5235_v60 = vadd.f32 1.0, %v7609_v11 }
 0xe5e   :  { %v7611_v31 = vpop.eup %7610 }
 0xe5f   :  { %7616 = vrcp.f32 %v5235_v60  ;;  %v5236_v21 = vadd.f32 1.0, %v7611_v31  ;;  %v7613_v24 = vpop.eup %7612  ;;  %v10058_v60 = vsel %vm8154_vm10, %v9082_v20, %v9020_v22 }
 0xe60   :  { %v7615_v57 = vpop.eup %7614  ;;  %v5237_v27 = vadd.f32 1.0, %v7613_v24 }
 0xe61   :  { %7618 = vrcp.f32 %v5236_v21 }
 0xe62   :  { %7620 = vrcp.f32 %v5237_v27  ;;  %v10060_v27 = vld [vmem:[#allocation30_spill] sm:$0xff] }
 0xe63   :  { %v10061_v22 = vsel %vm8158_vm11, %v10040_v2, %v10060_v27  ;;  %v10068_v27 = vld [vmem:[#allocation36_spill] sm:$0xff] }
 0xe6c   :  { %v7617_v6 = vpop.eup %7616 }
 0xe6d   :  { %v5246_v46 = vmul.f32 %v7617_v6, %v7615_v57 }
 0xe6e   :  { %v7619_v5 = vpop.eup %7618 }
 0xe6f   :  { %v5245_v32 = vmul.f32 %v7619_v5, %v9455_v47  ;;  %v7621_v53 = vpop.eup %7620 }
 0xe71   :  { %v9513_v28 = vadd.f32 %v5246_v46, %v5245_v32 }
 0xe73   :  { %7622 = vtanh.f32 %v9513_v28 }
 0xe80   :  { %v7623_v41 = vpop.eup %7622 }
 0xe81   :  { %v9516_v7 = vmul.f32 %v7623_v41, %v7621_v53 }
 0xe83   :  { %v5255_v10 = vpack.c.bf16 %v9516_v7, %v9516_v7 }
 0xe85   :  { %5481 = vmatmul.mubr.bf16.vlgmr.msra.gmra.mxu1 %v5255_v10  ;;  %5522 = vmatmul.mubr.bf16.vlgmr.msra.gmra.mxu0 %v5255_v10 }
 0xe86   :  { %5757 = vmatpush1.bf16.msra.mxu1 %v9344_v43  ;;  %5798 = vmatpush1.bf16.msra.mxu0 %v9346_v33 }
 0xe87   :  { %5758 = vmatprep.subr.bf16.mxu1 %v9352_v59  ;;  %5799 = vmatprep.subr.bf16.mxu0 %v9354_v51 }
 0xe88   :  { %5788 = vmatprep.mubr.bf16.mxu1 %v9926_v8  ;;  %5829 = vmatprep.mubr.bf16.mxu0 %v9926_v8 }
 0xe8a   :  { %5759 = vmatpush1.bf16.msra.mxu1 %v9356_v62  ;;  %5800 = vmatpush1.bf16.msra.mxu0 %v9358_v14 }
 0xe8b   :  { %5760 = vmatprep.subr.bf16.mxu1 %v9364_v58  ;;  %5801 = vmatprep.subr.bf16.mxu0 %v9366_v48 }
 0xe8e   :  { %5761 = vmatpush1.bf16.msra.mxu1 %v9368_v54  ;;  %5802 = vmatpush1.bf16.msra.mxu0 %v9370_v9 }
 0xe8f   :  { %5762 = vmatprep.subr.bf16.mxu1 %v9376_v12  ;;  %5803 = vmatprep.subr.bf16.mxu0 %v9378_v13 }
 0xe92   :  { %5763 = vmatpush1.bf16.msra.mxu1 %v9380_v15  ;;  %5804 = vmatpush1.bf16.msra.mxu0 %v9382_v16 }
 0xe93   :  { %5764 = vmatprep.subr.bf16.mxu1 %v9386_v17  ;;  %5805 = vmatprep.subr.bf16.mxu0 %v9388_v18 }
 0xe96   :  { %5765 = vmatpush1.bf16.msra.mxu1 %v9392_v26  ;;  %5806 = vmatpush1.bf16.msra.mxu0 %v9394_v29 }
 0xe97   :  { %5766 = vmatprep.subr.bf16.mxu1 %v9398_v35  ;;  %5807 = vmatprep.subr.bf16.mxu0 %v9400_v37 }
 0xe9a   :  { %5767 = vmatpush1.bf16.msra.mxu1 %v9404_v38  ;;  %5808 = vmatpush1.bf16.msra.mxu0 %v9406_v42 }
 0xe9b   :  { %5768 = vmatprep.subr.bf16.mxu1 %v9410_v44  ;;  %5809 = vmatprep.subr.bf16.mxu0 %v9412_v36 }
 0xe9e   :  { %5769 = vmatpush1.bf16.msra.mxu1 %v9416_v4  ;;  %5810 = vmatpush1.bf16.msra.mxu0 %v9418_v49 }
 0xe9f   :  { %5770 = vmatprep.subr.bf16.mxu1 %v9422_v3  ;;  %5811 = vmatprep.subr.bf16.mxu0 %v9424_v63 }
 0xea2   :  { %5771 = vmatpush1.bf16.msra.mxu1 %v9428_v45  ;;  %5812 = vmatpush1.bf16.msra.mxu0 %v9430_v0 }
 0xea3   :  { %6064 = vmatprep.subr.bf16.mxu1 %v9340_v23  ;;  %6105 = vmatprep.subr.bf16.mxu0 %v9342_v61  ;;  %v10059_v61 = vsel %vm8146_vm9, %v10037_v39, %v9017_v56 }
 0xf45   :  { %v5482_v47 = vpop.f32.mrf.mxu1  ;;  %v5523_v34 = vpop.f32.mrf.mxu0 }
 0xf46   :  { %v5530_v50 = vadd.f32 %v5482_v47, %v10057_v19  ;;  %v5532_v46 = vadd.f32 %v5523_v34, %v10059_v61  ;;  %v10066_v61 = vld [vmem:[#allocation21_spill] sm:$0xff] }
 0xf47   :  { %v5484_v40 = vpop.f32.mrf.mxu1  ;;  %v5525_v1 = vpop.f32.mrf.mxu0 }
 0xf48   :  { %v6921_v11 = vmul.f32 -1.442695, %v5530_v50  ;;  %v5531_v31 = vadd.f32 %v5484_v40, %v10058_v60  ;;  %v6923_v5 = vmul.f32 -1.442695, %v5532_v46  ;;  %v5533_v20 = vadd.f32 %v5525_v1, %v10061_v22 }
 0xf49   :  { %v5486_v21 = vpop.f32.mrf.mxu1  ;;  %v5527_v24 = vpop.f32.mrf.mxu0 }
 0xf4a   :  { %7624 = vpow2.f32 %v6921_v11  ;;  %v6922_v57 = vmul.f32 -1.442695, %v5531_v31  ;;  %v6186_v21 = vsel %vm334_vm8, %v9458_v55, %v9516_v7  ;;  %v6187_v24 = vsel %vm334_vm8, %v9516_v7, %v9458_v55  ;;  %v6994_v31 = vld [vmem:[%s9769_s9] ss:$0 sm:$0xff] }
 0xf4b   :  { %v5487_v23 = vpop.f32.mrf.mxu1  ;;  %v5528_v6 = vpop.f32.mrf.mxu0 }
 0xf4c   :  { %7626 = vpow2.f32 %v6922_v57  ;;  %v10063_v57 = vld [vmem:[#allocation22_spill] sm:$0xff]  ;;  %v10065_v6 = vld [vmem:[#allocation37_spill] sm:$0xff] }
 0xf4d   :  { %7628 = vpow2.f32 %v6923_v5  ;;  %v3271_v46 = vadd.f32 %v10066_v61, %v10065_v6  ;;  %v10067_v5 = vld [vmem:[#allocation24_spill] sm:$0xff]  ;;  %v7408_v61 = vld [vmem:[%s9768_s8 + $0x38] sm:$0xff]  }
 0xf4e   :  { %7630 = vtanh.f32 %v5533_v20  ;;  %v3272_v22 = vadd.f32 %v10068_v27, %v10067_v5  ;;  %v10069_v20 = vld [vmem:[#allocation33_spill] sm:$0xff]  ;;  %v7411_v5 = vld [vmem:[%s9768_s8 + $0x20] sm:$0xff]   ;;  %v7412_v27 = vld [vmem:[%s9768_s8 + $0x18] sm:$0xff]  }
 0xf57   :  { %v7625_v32 = vpop.eup %7624 }
 0xf58   :  { %v5543_v53 = vadd.f32 1.0, %v7625_v32  ;;  %v10070_v32 = vld [vmem:[#allocation23_spill] sm:$0xff] }
 0xf59   :  { %v7627_v41 = vpop.eup %7626 }
 0xf5a   :  { %7632 = vrcp.f32 %v5543_v53  ;;  %v5544_v10 = vadd.f32 1.0, %v7627_v41  ;;  %v7629_v47 = vpop.eup %7628  ;;  %v3273_v53 = vadd.f32 %v10070_v32, %v10069_v20  ;;  %v7414_v20 = vld [vmem:[%s9768_s8 + $0x8] sm:$0xff]   ;;  %v7415_v32 = vld [vmem:[%s9768_s8] sm:$0xff]  }
 0xf5b   :  { %v7631_v19 = vpop.eup %7630  ;;  %v5545_v34 = vadd.f32 1.0, %v7629_v47 }
 0xf5c   :  { %7634 = vrcp.f32 %v5544_v10  ;;  %v10071_v10 = vld [vmem:[#allocation43_spill] sm:$0xff] }
 0xf5d   :  { %7636 = vrcp.f32 %v5545_v34 }
 0xf67   :  { %v7633_v50 = vpop.eup %7632 }
 0xf68   :  { %v5554_v56 = vmul.f32 %v7633_v50, %v7631_v19  ;;  %v9598_v19 = vadd.f32 %v6186_v21, %v3271_v46  ;;  %v9600_v50 = vadd.f32 %v6187_v24, %v3272_v22  ;;  %v7410_v46 = vld [vmem:[%s9768_s8 + $0x28] sm:$0xff]   ;;  %v7413_v22 = vld [vmem:[%s9768_s8 + $0x10] sm:$0xff]  }
 0xf69   :  { %v7635_v39 = vpop.eup %7634 }
 0xf6a   :  { %v5553_v40 = vmul.f32 %v7635_v39, %v9513_v28  ;;  %v7637_v2 = vpop.eup %7636  ;;  %v10064_v28 = vld [vmem:[#allocation34_spill] sm:$0xff] }
 0xf6b   :  { %v3270_v23 = vadd.f32 %v10064_v28, %v10063_v57 }
 0xf6c   :  { %v9571_v11 = vadd.f32 %v5554_v56, %v5553_v40 }
 0xf6e   :  { %7638 = vtanh.f32 %v9571_v11 }
 0xf7b   :  { %v7639_v1 = vpop.eup %7638 }
 0xf7c   :  { %v5557_v60 = vmul.f32 %v7639_v1, %v7637_v2 }
 0xf7e   :  { %v5563_v41 = vpack.c.bf16 %v5557_v60, %v5557_v60  ;;  %v6183_v47 = vsel %vm334_vm8, %v10071_v10, %v5557_v60  ;;  %v6188_v55 = vsel %vm334_vm8, %v5557_v60, %v10071_v10  ;;  %v10082_v10 = vld [vmem:[#allocation62_spill] sm:$0xff] }
 0xf7f   :  { %v9596_v7 = vadd.f32 %v6183_v47, %v3270_v23  ;;  %v9602_v56 = vadd.f32 %v6188_v55, %v3273_v53 }
 0xf80   :  { %5789 = vmatmul.mubr.bf16.vlgmr.msra.gmra.mxu1 %v5563_v41  ;;  %5830 = vmatmul.mubr.bf16.vlgmr.msra.gmra.mxu0 %v5563_v41 }
 0xf81   :  { %6065 = vmatpush1.bf16.msra.mxu1 %v9344_v43  ;;  %6106 = vmatpush1.bf16.msra.mxu0 %v9346_v33  ;;  %v6208_v39 = vpack.c.bf16 %v9598_v19, %v9596_v7  ;;  %v6209_v34 = vpack.c.bf16 %v9602_v56, %v9600_v50  ;;  %v10072_v33 = vld [vmem:[#allocation28_spill] sm:$0xff] }
 0xf82   :  { %6066 = vmatprep.subr.bf16.mxu1 %v9352_v59  ;;  %6107 = vmatprep.subr.bf16.mxu0 %v9354_v51 }
 0xf83   :  { %6096 = vmatprep.mubr.bf16.mxu1 %v9926_v8  ;;  %6137 = vmatprep.mubr.bf16.mxu0 %v9926_v8 }
 0xf85   :  { %6067 = vmatpush1.bf16.msra.mxu1 %v9356_v62  ;;  %6108 = vmatpush1.bf16.msra.mxu0 %v9358_v14 }
 0xf86   :  { %6068 = vmatprep.subr.bf16.mxu1 %v9364_v58  ;;  %6109 = vmatprep.subr.bf16.mxu0 %v9366_v48  ;;  %v10073_v58 = vld [vmem:[#allocation27_spill] sm:$0xff] }
 0xf87   :  { %v10074_v48 = vld [vmem:[#allocation47_spill] sm:$0xff] }
 0xf89   :  { %6069 = vmatpush1.bf16.msra.mxu1 %v9368_v54  ;;  %6110 = vmatpush1.bf16.msra.mxu0 %v9370_v9  ;;  %v10075_v54 = vsel %vm8154_vm10, %v10073_v58, %v10074_v48 }
 0xf8a   :  { %6070 = vmatprep.subr.bf16.mxu1 %v9376_v12  ;;  %6111 = vmatprep.subr.bf16.mxu0 %v9378_v13 }
 0xf8d   :  { %6071 = vmatpush1.bf16.msra.mxu1 %v9380_v15  ;;  %6112 = vmatpush1.bf16.msra.mxu0 %v9382_v16 }
 0xf8e   :  { %6072 = vmatprep.subr.bf16.mxu1 %v9386_v17  ;;  %6113 = vmatprep.subr.bf16.mxu0 %v9388_v18  ;;  %v10076_v18 = vld [vmem:[#allocation55_spill] sm:$0xff] }
 0xf91   :  { %6073 = vmatpush1.bf16.msra.mxu1 %v9392_v26  ;;  %6114 = vmatpush1.bf16.msra.mxu0 %v9394_v29  ;;  %v10077_v26 = vld [vmem:[#allocation32_spill] sm:$0xff] }
 0xf92   :  { %6074 = vmatprep.subr.bf16.mxu1 %v9398_v35  ;;  %6115 = vmatprep.subr.bf16.mxu0 %v9400_v37  ;;  %v10078_v29 = vsel %vm8146_vm9, %v10076_v18, %v10077_v26  ;;  %v10090_v18 = vld [vmem:[#allocation61_spill] sm:$0xff] }
 0xf93   :  { %v10091_v26 = vsel %vm8158_vm11, %v10089_v25, %v10090_v18 }
 0xf95   :  { %6075 = vmatpush1.bf16.msra.mxu1 %v9404_v38  ;;  %6116 = vmatpush1.bf16.msra.mxu0 %v9406_v42  ;;  %v10079_v38 = vld [vmem:[#allocation17_spill] sm:$0xff] }
 0xf96   :  { %6076 = vmatprep.subr.bf16.mxu1 %v9410_v44  ;;  %6117 = vmatprep.subr.bf16.mxu0 %v9412_v36  ;;  %v10080_v42 = vld [vmem:[#allocation45_spill] sm:$0xff] }
 0xf97   :  { %v10081_v44 = vsel %vm8158_vm11, %v10079_v38, %v10080_v42 }
 0xf99   :  { %6077 = vmatpush1.bf16.msra.mxu1 %v9416_v4  ;;  %6118 = vmatpush1.bf16.msra.mxu0 %v9418_v49 }
 0xf9a   :  { %6078 = vmatprep.subr.bf16.mxu1 %v9422_v3  ;;  %6119 = vmatprep.subr.bf16.mxu0 %v9424_v63 }
 0xf9d   :  { %6079 = vmatpush1.bf16.msra.mxu1 %v9428_v45  ;;  %6120 = vmatpush1.bf16.msra.mxu0 %v9430_v0 }
 0xf9e   :  { %7083 = vmatprep.subr.bf16.mxu1 %v7408_v61 }
0x1040   :  { %v5790_v8 = vpop.f32.mrf.mxu1  ;;  %v5831_v43 = vpop.f32.mrf.mxu0 }
0x1041   :  { %v5838_v59 = vadd.f32 %v5790_v8, %v10072_v33  ;;  %v5840_v35 = vadd.f32 %v5831_v43, %v10078_v29  ;;  %v10083_v33 = vld [vmem:[#allocation59_spill] sm:$0xff] }
0x1042   :  { %v5792_v51 = vpop.f32.mrf.mxu1  ;;  %v5833_v62 = vpop.f32.mrf.mxu0 }
0x1043   :  { %v6956_v14 = vmul.f32 -1.442695, %v5838_v59  ;;  %v5839_v9 = vadd.f32 %v5792_v51, %v10075_v54  ;;  %v6958_v37 = vmul.f32 -1.442695, %v5840_v35  ;;  %v5841_v36 = vadd.f32 %v5833_v62, %v10081_v44  ;;  %v10084_v59 = vld [vmem:[#allocation58_spill] sm:$0xff] }
0x1044   :  { %v5794_v12 = vpop.f32.mrf.mxu1  ;;  %v5835_v13 = vpop.f32.mrf.mxu0  ;;  %v10085_v51 = vsel %vm8154_vm10, %v10083_v33, %v10084_v59 }
0x1045   :  { %7640 = vpow2.f32 %v6956_v14  ;;  %v6957_v15 = vmul.f32 -1.442695, %v5839_v9  ;;  %v10086_v12 = vld [vmem:[#allocation56_spill] sm:$0xff]  ;;  %v10087_v13 = vld [vmem:[#allocation57_spill] sm:$0xff] }
0x1046   :  { %v5795_v16 = vpop.f32.mrf.mxu1  ;;  %v5836_v17 = vpop.f32.mrf.mxu0 }
0x1047   :  { %7642 = vpow2.f32 %v6957_v15  ;;  %v10088_v15 = vsel %vm8146_vm9, %v10086_v12, %v10087_v13 }
0x1048   :  { %7644 = vpow2.f32 %v6958_v37 }
0x1049   :  { %7646 = vtanh.f32 %v5841_v36 }
0x1052   :  { %v7641_v4 = vpop.eup %7640 }
0x1053   :  { %v5851_v49 = vadd.f32 1.0, %v7641_v4 }
0x1054   :  { %v7643_v3 = vpop.eup %7642 }
0x1055   :  { %7648 = vrcp.f32 %v5851_v49  ;;  %v5852_v63 = vadd.f32 1.0, %v7643_v3  ;;  %v7645_v45 = vpop.eup %7644 }
0x1056   :  { %v7647_v0 = vpop.eup %7646  ;;  %v5853_v60 = vadd.f32 1.0, %v7645_v45 }
0x1057   :  { %7650 = vrcp.f32 %v5852_v63 }
0x1058   :  { %7652 = vrcp.f32 %v5853_v60 }
0x1062   :  { %v7649_v40 = vpop.eup %7648 }
0x1063   :  { %v5862_v2 = vmul.f32 %v7649_v40, %v7647_v0 }
0x1064   :  { %v7651_v1 = vpop.eup %7650 }
0x1065   :  { %v5861_v21 = vmul.f32 %v7651_v1, %v9571_v11  ;;  %v7653_v57 = vpop.eup %7652  ;;  %v7409_v11 = vld [vmem:[%s9768_s8 + $0x30] sm:$0xff]  }
0x1067   :  { %v9657_v24 = vadd.f32 %v5862_v2, %v5861_v21  ;;  %v10092_v2 = vld [vmem:[#allocation40_spill] sm:$0xff]  ;;  %v10093_v21 = vld [vmem:[#allocation26_spill] sm:$0xff] }
0x1069   :  { %7654 = vtanh.f32 %v9657_v24 }
0x1076   :  { %v7655_v28 = vpop.eup %7654 }
0x1077   :  { %v9660_v23 = vmul.f32 %v7655_v28, %v7653_v57  ;;  %v10094_v57 = vld [vmem:[#allocation38_spill] sm:$0xff] }
0x1078   :  { %v3274_v28 = vadd.f32 %v10094_v57, %v10093_v21 }
0x1079   :  { %v5871_v6 = vpack.c.bf16 %v9660_v23, %v9660_v23  ;;  %v6180_v1 = vsel %vm334_vm8, %v10092_v2, %v9660_v23  ;;  %v6189_v60 = vsel %vm334_vm8, %v9660_v23, %v10092_v2 }
0x107b   :  { %6097 = vmatmul.mubr.bf16.vlgmr.msra.gmra.mxu1 %v5871_v6  ;;  %6138 = vmatmul.mubr.bf16.vlgmr.msra.gmra.mxu0 %v5871_v6  ;;  %v10096_v6 = vld [vmem:[#allocation25_spill] sm:$0xff] }
0x107c   :  { %7084 = vmatpush3.bf16.msra.mxu1 %v7408_v61 }
0x107d   :  { %7085 = vmatprep.subr.bf16.mxu1 %v7409_v11 }
0x1080   :  { %7086 = vmatpush3.bf16.msra.mxu1 %v7409_v11  ;;  %v10097_v11 = vld [vmem:[#allocation20_spill] sm:$0xff] }
0x1081   :  { %7087 = vmatprep.subr.bf16.mxu1 %v7410_v46 }
0x1084   :  { %7088 = vmatpush3.bf16.msra.mxu1 %v7410_v46  ;;  %v10098_v46 = vld [vmem:[#allocation42_spill] sm:$0xff] }
0x1085   :  { %7089 = vmatprep.subr.bf16.mxu1 %v7411_v5 }
0x1088   :  { %7090 = vmatpush3.bf16.msra.mxu1 %v7411_v5  ;;  %v3268_v5 = vadd.f32 %v10098_v46, %v10097_v11 }
0x1089   :  { %7091 = vmatprep.subr.bf16.mxu1 %v7412_v27 }
0x108c   :  { %7092 = vmatpush3.bf16.msra.mxu1 %v7412_v27  ;;  %v10099_v27 = vld [vmem:[#allocation39_spill] sm:$0xff] }
0x108d   :  { %7093 = vmatprep.subr.bf16.mxu1 %v7413_v22 }
0x1090   :  { %7094 = vmatpush3.bf16.msra.mxu1 %v7413_v22  ;;  %v10100_v22 = vld [vmem:[#allocation19_spill] sm:$0xff] }
0x1091   :  { %7095 = vmatprep.subr.bf16.mxu1 %v7414_v20 }
0x1094   :  { %7096 = vmatpush3.bf16.msra.mxu1 %v7414_v20  ;;  %v3269_v20 = vadd.f32 %v10100_v22, %v10099_v27 }
0x1095   :  { %7097 = vmatprep.subr.bf16.mxu1 %v7415_v32 }
0x1098   :  { %7098 = vmatpush3.bf16.msra.mxu1 %v7415_v32  ;;  %v10101_v32 = vld [vmem:[#allocation63_spill] sm:$0xff] }
0x113b   :  { %v6098_v53 = vpop.f32.mrf.mxu1  ;;  %v6139_v41 = vpop.f32.mrf.mxu0 }
0x113c   :  { %v6146_v47 = vadd.f32 %v6098_v53, %v10082_v10  ;;  %v6148_v16 = vadd.f32 %v6139_v41, %v10088_v15  ;;  %v6200_v10 = vadd.f32 %v6180_v1, %v3269_v20 }
0x113d   :  { %v6100_v55 = vpop.f32.mrf.mxu1  ;;  %v6141_v8 = vpop.f32.mrf.mxu0 }
0x113e   :  { %v6991_v43 = vmul.f32 -1.442695, %v6146_v47  ;;  %v6147_v62 = vadd.f32 %v6100_v55, %v10085_v51  ;;  %v6993_v17 = vmul.f32 -1.442695, %v6148_v16  ;;  %v6149_v29 = vadd.f32 %v6141_v8, %v10091_v26 }
0x113f   :  { %v6102_v14 = vpop.f32.mrf.mxu1  ;;  %v6143_v58 = vpop.f32.mrf.mxu0  ;;  %v6205_v47 = vadd.f32 %v6189_v60, %v3274_v28 }
0x1140   :  { %7656 = vpow2.f32 %v6991_v43  ;;  %v6992_v48 = vmul.f32 -1.442695, %v6147_v62 }
0x1141   :  { %v6103_v54 = vpop.f32.mrf.mxu1  ;;  %v6144_v9 = vpop.f32.mrf.mxu0 }
0x1142   :  { %7658 = vpow2.f32 %v6992_v48 }
0x1143   :  { %7660 = vpow2.f32 %v6993_v17 }
0x1144   :  { %7662 = vtanh.f32 %v6149_v29 }
0x114d   :  { %v7657_v35 = vpop.eup %7656 }
0x114e   :  { %v6159_v37 = vadd.f32 1.0, %v7657_v35 }
0x114f   :  { %v7659_v38 = vpop.eup %7658 }
0x1150   :  { %7664 = vrcp.f32 %v6159_v37  ;;  %v6160_v42 = vadd.f32 1.0, %v7659_v38  ;;  %v7661_v52 = vpop.eup %7660 }
0x1151   :  { %v7663_v44 = vpop.eup %7662  ;;  %v6161_v3 = vadd.f32 1.0, %v7661_v52 }
0x1152   :  { %7666 = vrcp.f32 %v6160_v42 }
0x1153   :  { %7668 = vrcp.f32 %v6161_v3 }
0x115d   :  { %v7665_v36 = vpop.eup %7664 }
0x115e   :  { %v6170_v4 = vmul.f32 %v7665_v36, %v7663_v44 }
0x115f   :  { %v7667_v49 = vpop.eup %7666 }
0x1160   :  { %v6169_v30 = vmul.f32 %v7667_v49, %v9657_v24  ;;  %v7669_v45 = vpop.eup %7668  ;;  %v10095_v24 = vld [vmem:[#allocation35_spill] sm:$0xff] }
0x1161   :  { %v3275_v61 = vadd.f32 %v10096_v6, %v10095_v24 }
0x1162   :  { %v6171_v63 = vadd.f32 %v6170_v4, %v6169_v30 }
0x1164   :  { %7670 = vtanh.f32 %v6171_v63 }
0x1171   :  { %v7671_v0 = vpop.eup %7670 }
0x1172   :  { %v6173_v40 = vmul.f32 %v7671_v0, %v7669_v45 }
0x1174   :  { %v6177_v53 = vsel %vm334_vm8, %v10101_v32, %v6173_v40  ;;  %v6190_v23 = vsel %vm334_vm8, %v6173_v40, %v10101_v32 }
0x1175   :  { %v6199_v41 = vadd.f32 %v6177_v53, %v3268_v5  ;;  %v6206_v55 = vadd.f32 %v6190_v23, %v3275_v61 }
0x1177   :  { %v6207_v8 = vpack.c.bf16 %v6200_v10, %v6199_v41  ;;  %v6210_v43 = vpack.c.bf16 %v6206_v55, %v6205_v47 }
0x1179   :  { %7099 = vmatprep.mubr.bf16.mxu1 %v6207_v8 }
0x117a   :  { %7100 = vmatmul.mubr.bf16.vlgmr.msra.gmra.mxu1 %v6208_v39 }
0x117b   :  { %7103 = vmatprep.mubr.bf16.mxu1 %v6209_v34 }
0x1182   :  { %7104 = vmatmul.mubr.bf16.gmra.mxu1 %v6210_v43 }
0x123a   :  { %v7101_v33 = vpop.f32.mrf.mxu1 }
0x123b   :  { %v6325_v59 = vadd.f32 %v7101_v33, %v6994_v31 }
0x123c   :  { %v6316_v51 = vpop.f32.mrf.mxu1 }
0x123d   :  { %6349 = vst [vmem:[%s9770_s10 + $0x10] sm:$0xff] %v6325_v59  ;;  %v6317_v62 = vadd.f32 %v6994_v31, %v6316_v51 }
0x123e   :  { %v7102_v14 = vpop.f32.mrf.mxu1 }
0x123f   :  { %6347 = vst [vmem:[%s9770_s10] sm:$0xff] %v6317_v62  ;;  %v6328_v7 = vadd.f32 %v7102_v14, %v6994_v31 }
0x1240   :  { %v6319_v19 = vpop.f32.mrf.mxu1 }
0x1241   :  { %6350 = vst [vmem:[%s9770_s10 + $0x18] sm:$0xff] %v6328_v7  ;;  %v6320_v50 = vadd.f32 %v6994_v31, %v6319_v19 }
0x1242   :  { %v7105_v56 = vpop.f32.mrf.mxu1 }
0x1243   :  { %6348 = vst [vmem:[%s9770_s10 + $0x8] sm:$0xff] %v6320_v50  ;;  %v6341_v39 = vadd.f32 %v7105_v56, %v6994_v31 }
0x1244   :  { %v6332_v34 = vpop.f32.mrf.mxu1 }
0x1245   :  { %6353 = vst [vmem:[%s9770_s10 + $0x30] sm:$0xff] %v6341_v39  ;;  %v6333_v58 = vadd.f32 %v6994_v31, %v6332_v34 }
0x1246   :  { %v7106_v48 = vpop.f32.mrf.mxu1 }
0x1247   :  { %6351 = vst [vmem:[%s9770_s10 + $0x20] sm:$0xff] %v6333_v58  ;;  %v6344_v54 = vadd.f32 %v7106_v48, %v6994_v31 }
0x1248   :  { %v6335_v9 = vpop.f32.mrf.mxu1 }
0x1249   :  { %6354 = vst [vmem:[%s9770_s10 + $0x38] sm:$0xff] %v6344_v54  ;;  %v6336_v12 = vadd.f32 %v6994_v31, %v6335_v9 }
0x124b   :  { %6352 = vst [vmem:[%s9770_s10 + $0x28] sm:$0xff] %v6336_v12 }
0x124c   :  { %6359 = vsyncpa [#allocation6], 1 }
0x124d   :  { %6360 = vsyncpa [#allocation8], 1 }
0x124e   :  { %6361 = vsyncpa [#allocation11], 1 }

</bundles_post_ra>
